<compile_context>
chip_gen: v5e
topology: v5e:2x2
jax: 0.10.0
libtpu: 0.0.40
codegen_flags: <defaults>
</compile_context>

<pallas_src>
import functools

import jax
import jax.numpy as jnp
from jax import lax
from jax.experimental import pallas as pl
from jax.experimental.pallas import tpu as pltpu


_K_SLAB = 256   # fused (y, x)-plane slab width: multiple of 128 (v5e) / 256 (v6e, v7x)


def _trilinear_sample_kernel(occ_ref, coord_ref, out_ref, *, D, H, W, k_slab):
    """Trilinear interpolation of a dense voxel grid at TN query points.

    occ_ref   : (D_pad, HW_pad) bf16 -- z-slabs x fused (y, x) plane, zero padded
    coord_ref : (3, TN)         f32  -- query coords, rows (x, y, z) in [-1, 1]
    out_ref   : (1, TN)         f32  -- interpolated occupancy (lane-dense row)
    """
    d_pad, hw_pad = occ_ref.shape
    tn = coord_ref.shape[1]
    num_slabs = hw_pad // k_slab

    # align_corners=True mapping [-1, 1] -> [0, dim-1]; all (1, TN), lane-dense.
    fx = (coord_ref[0:1, :] + 1.0) * (0.5 * (W - 1))
    fy = (coord_ref[1:2, :] + 1.0) * (0.5 * (H - 1))
    fz = (coord_ref[2:3, :] + 1.0) * (0.5 * (D - 1))

    # Slab-local plane-position template, hoisted out of the K loop.
    base = lax.broadcasted_iota(jnp.int32, (k_slab, 1), 0).astype(jnp.float32)
    inv_w = jnp.float32(1.0 / W)
    w_f = jnp.float32(W)

    def k_body(k, acc):
        off = k * k_slab
        # Float index decomposition p -> (iy, ix); exact for p < 2^24 and
        # avoids vector integer div/mod.
        p = base + off.astype(jnp.float32)                        # (k_slab, 1)
        iy = jnp.floor((p + 0.5) * inv_w)
        ix = p - iy * w_f
        # Separable hat weights over this plane slab: (k_slab, TN).  Corners
        # outside the grid get weight 0 (padding_mode='zeros'); padded plane
        # positions hit zero occupancy columns, so their weights are harmless.
        wx = jnp.maximum(0.0, 1.0 - jnp.abs(fx - ix))
        wy = jnp.maximum(0.0, 1.0 - jnp.abs(fy - iy))
        wyx = (wy * wx).astype(jnp.bfloat16)
        occ_slab = occ_ref[:, pl.ds(pl.multiple_of(off, k_slab), k_slab)]
        # Single-pass bf16 MXU contraction over the slab, f32 accumulation.
        return acc + jnp.dot(occ_slab, wyx, preferred_element_type=jnp.float32)

    acc = lax.fori_loop(0, num_slabs, k_body,
                        jnp.zeros((d_pad, tn), jnp.float32),
                        unroll=num_slabs <= 4)

    # z hat weights + sublane reduction over depth slabs -> (1, TN) row.
    iz = lax.broadcasted_iota(jnp.int32, (d_pad, 1), 0).astype(jnp.float32)
    wz = jnp.maximum(0.0, 1.0 - jnp.abs(fz - iz))                 # (d_pad, TN)
    out_ref[...] = jnp.sum(acc * wz, axis=0, keepdims=True).astype(out_ref.dtype)


def _pick_tile_n(n, *, max_tile=1024, min_tile=256):
    """Largest lane-aligned tile (multiple of 256) that still yields >= 2 grid
    steps (keeps both v7x TensorCores busy); 256 floor for tiny batches."""
    tile = max_tile
    while tile > min_tile and pl.cdiv(n, tile) < 2:
        tile //= 2
    return tile


def interpolate_grid_pallas(occ_grid, coords, *, tile_n=None):
    """occ_grid: (D, H, W), coords: (N, 3) f32 in [-1, 1]  ->  (N,) f32."""
    D, H, W = occ_grid.shape
    N = coords.shape[0]
    HW = H * W
    k_slab = _K_SLAB
    # TODO(synk): for res >= 64 grids a gather-based 8-corner variant (scalar-
    # prefetched z-slab DMA) should replace the dense plane contraction.

    # MXU / layout padding: fused-plane K to a multiple of the slab width,
    # D to a multiple of 16 (bf16 sublane tile).  Padded voxels are zero, so
    # they contribute nothing regardless of their hat weights.
    hw_pad = pl.cdiv(HW, k_slab) * k_slab
    d_pad = pl.cdiv(D, 16) * 16
    occ2d = jnp.pad(occ_grid.astype(jnp.float32).reshape(D, HW),
                    ((0, d_pad - D), (0, hw_pad - HW))).astype(jnp.bfloat16)

    # Lane-dense (3, N) coordinates; pad the query axis to a multiple of tile_n.
    # TODO(synk): production callers should emit (3, N) directly to skip the
    # host-side transpose / pad passes over coords.
    if tile_n is None:
        tile_n = _pick_tile_n(N)
    coords_t = coords.astype(jnp.float32).T                       # (3, N)
    n_pad = pl.cdiv(N, tile_n) * tile_n
    if n_pad != N:
        coords_t = jnp.pad(coords_t, ((0, 0), (0, n_pad - N)))
    grid = (n_pad // tile_n,)

    kernel = functools.partial(_trilinear_sample_kernel, D=D, H=H, W=W,
                               k_slab=k_slab)
    cost = pl.CostEstimate(
        flops=2 * n_pad * d_pad * hw_pad + 10 * n_pad * hw_pad + 4 * n_pad * d_pad,
        transcendentals=0,
        bytes_accessed=2 * d_pad * hw_pad + 4 * (3 * n_pad + n_pad),
    )

    # Explicit VMEM budget: resident occ + per-tile working set, 2x headroom.
    vmem_bytes = (2 * d_pad * hw_pad * 2            # resident occ (bf16, <= 2 bufs)
                  + 2 * 2 * 8 * tile_n * 4          # coords/out rows, 2 bufs, 8-sublane pad
                  + k_slab * tile_n * 10            # wy/wx (f32) + wyx (bf16) slabs
                  + 3 * d_pad * tile_n * 4)         # accumulator, wz, product
    vmem_limit = int(min(max(2 * vmem_bytes, 16 << 20), 100 << 20))

    def _call(single_buffer_resident):
        occ_spec_kwargs = (
            dict(pipeline_mode=pl.Buffered(1)) if single_buffer_resident else {})
        return pl.pallas_call(
            kernel,
            out_shape=jax.ShapeDtypeStruct((1, n_pad), jnp.float32),
            grid_spec=pltpu.PrefetchScalarGridSpec(
                num_scalar_prefetch=0,
                grid=grid,
                in_specs=[
                    # Grid-invariant occupancy slab, resident in VMEM.
                    pl.BlockSpec((d_pad, hw_pad), lambda i: (0, 0),
                                 **occ_spec_kwargs),
                    # Per-step query tile, lane-dense.
                    pl.BlockSpec((3, tile_n), lambda i: (0, i)),
                ],
                out_specs=pl.BlockSpec((1, tile_n), lambda i: (0, i)),
            ),
            compiler_params=pltpu.CompilerParams(
                dimension_semantics=("parallel",),
                vmem_limit_bytes=vmem_limit),
            cost_estimate=cost,
        )(occ2d, coords_t)

    try:
        # Single-buffer the never-changing occupancy block (halves its VMEM).
        out = _call(True)
    except Exception:  # pragma: no cover - builds without per-operand buffering
        out = _call(False)
    return out[0, :N]


class SampleOccGridPallas:
    """JAX/Pallas analogue of SampleOccGrid.

    The voxelized-scene shared dict is a plain Python dict of precomputed
    occupancy grids; dataset preparation / multiprocessing caching from the
    PyTorch module is host-side I/O and is replaced by deterministic synthetic
    grids.
    """
    # TODO(synk): dataset loading, multiprocessing Pool caching and DictProxy
    # sharing are host-side and have no Pallas equivalent.

    def __init__(self, grid_resolution_sample, voxelized_scenes):
        self.grid_resolution_sample = grid_resolution_sample
        self.voxelized_scenes_shared_dict = dict(voxelized_scenes)

    def forward(self, data):
        scene_name = data['scene_name']
        occ_grid = self.voxelized_scenes_shared_dict[scene_name]
        coords = data['coordinates']                     # (N, 3), N = res**3
        res = self.grid_resolution_sample
        occ_sampled = interpolate_grid_pallas(occ_grid, coords)
        data['occupancy_grid'] = occ_sampled.reshape(res, res, res)
        return data


def _reference_trilinear(occ, coords):
    """Pure-JAX reference: 8-corner gather trilinear interp (align_corners=True)."""
    D, H, W = occ.shape
    x, y, z = coords[:, 0], coords[:, 1], coords[:, 2]
    fx = (x + 1.0) * 0.5 * (W - 1)
    fy = (y + 1.0) * 0.5 * (H - 1)
    fz = (z + 1.0) * 0.5 * (D - 1)
    x0 = jnp.floor(fx).astype(jnp.int32)
    y0 = jnp.floor(fy).astype(jnp.int32)
    z0 = jnp.floor(fz).astype(jnp.int32)
    out = jnp.zeros_like(fx)
    for dz in (0, 1):
        for dy in (0, 1):
            for dx in (0, 1):
                xi, yi, zi = x0 + dx, y0 + dy, z0 + dz
                wx = 1.0 - jnp.abs(fx - xi)
                wy = 1.0 - jnp.abs(fy - yi)
                wz = 1.0 - jnp.abs(fz - zi)
                valid = ((xi >= 0) & (xi < W) & (yi >= 0) & (yi < H)
                         & (zi >= 0) & (zi < D))
                w = jnp.where(valid, wx * wy * wz, 0.0)
                val = occ[jnp.clip(zi, 0, D - 1),
                          jnp.clip(yi, 0, H - 1),
                          jnp.clip(xi, 0, W - 1)]
                out = out + w * val
    return out


if __name__ == "__main__":
    key = jax.random.PRNGKey(0)
    k_occ, k_jit = jax.random.split(key)

    # Synthetic voxelized scene: small non-cubic binary occupancy grid.
    D, H, W = 8, 12, 16
    occ_grid = jax.random.bernoulli(k_occ, p=0.3, shape=(D, H, W)).astype(jnp.float32)

    # Coordinate grid sampled at grid_resolution_sample = 10 with small jitter,
    # normalized to [-1, 1] (x, y, z) -- what SampleCoordinateGrid would emit.
    # N = 1000 is NOT a multiple of tile_n -> exercises the padded tail tile
    # and the 2-step grid (both v7x TensorCores busy).
    res = 10
    lin = jnp.linspace(-0.9, 0.9, res)
    zz, yy, xx = jnp.meshgrid(lin, lin, lin, indexing="ij")
    coords = jnp.stack([xx.ravel(), yy.ravel(), zz.ravel()], axis=-1)   # (1000, 3)
    coords = coords + 0.02 * jax.random.uniform(k_jit, coords.shape,
                                                minval=-1.0, maxval=1.0)
    coords = jnp.clip(coords, -0.99, 0.99).astype(jnp.float32)

    module = SampleOccGridPallas(
        grid_resolution_sample=res,
        voxelized_scenes={"scene0000_00": occ_grid},
    )
    data = {"scene_name": "scene0000_00", "coordinates": coords}
    data = module.forward(data)
    occ_sampled = jax.block_until_ready(data["occupancy_grid"])

    assert occ_sampled.shape == (res, res, res)
    ref = _reference_trilinear(occ_grid, coords).reshape(res, res, res)
    # bf16 hat-weight quantization bounds the absolute error by ~2^-8 (3.9e-3)
    # in the theoretical worst case (typical error ~1e-4); occupancy is binary
    # so this is immaterial.  Fall back to an f32/HIGH dot if tighter accuracy
    # is ever required.
    assert jnp.allclose(occ_sampled, ref, atol=4e-3), "mismatch vs reference"

    print("KERNEL_OK")
</pallas_src>

<mosaic_0001>
module attributes {stable_mosaic.version = 11 : i64} {
  func.func @_trilinear_sample_kernel(%arg0: i32, %arg1: memref<16x256xbf16, #tpu.memory_space<vmem>>, %arg2: memref<3x512xf32, #tpu.memory_space<vmem>>, %arg3: memref<1x512xf32, #tpu.memory_space<vmem>>) attributes {dimension_semantics = [#tpu.dimension_semantics<parallel>], iteration_bounds = array<i64: 2>, scalar_prefetch = 0 : i64, scratch_operands = 0 : i64, tpu.core_type = #tpu.core_type<tc>, window_params = [{pipeline_mode = #tpu.pipeline_mode<synchronous>, transform_indices = @transform_0, window_bounds = array<i64: 16, 256>}, {transform_indices = @transform_1, window_bounds = array<i64: 3, 512>}, {transform_indices = @transform_2, window_bounds = array<i64: 1, 512>}]} {
    %c0 = arith.constant 0 : index
    %c0_0 = arith.constant 0 : index
    %0 = vector.load %arg2[%c0, %c0_0] : memref<3x512xf32, #tpu.memory_space<vmem>>, vector<1x512xf32>
    %cst = arith.constant 1.000000e+00 : f32
    %1 = vector.broadcast %cst : f32 to vector<1x512xf32>
    %2 = arith.addf %0, %1 : vector<1x512xf32>
    %cst_1 = arith.constant 7.500000e+00 : f32
    %3 = vector.broadcast %cst_1 : f32 to vector<1x512xf32>
    %4 = arith.mulf %2, %3 : vector<1x512xf32>
    %c1 = arith.constant 1 : index
    %c0_2 = arith.constant 0 : index
    %5 = vector.load %arg2[%c1, %c0_2] : memref<3x512xf32, #tpu.memory_space<vmem>>, vector<1x512xf32>
    %cst_3 = arith.constant 1.000000e+00 : f32
    %6 = vector.broadcast %cst_3 : f32 to vector<1x512xf32>
    %7 = arith.addf %5, %6 : vector<1x512xf32>
    %cst_4 = arith.constant 5.500000e+00 : f32
    %8 = vector.broadcast %cst_4 : f32 to vector<1x512xf32>
    %9 = arith.mulf %7, %8 : vector<1x512xf32>
    %c2 = arith.constant 2 : index
    %c0_5 = arith.constant 0 : index
    %10 = vector.load %arg2[%c2, %c0_5] : memref<3x512xf32, #tpu.memory_space<vmem>>, vector<1x512xf32>
    %cst_6 = arith.constant 1.000000e+00 : f32
    %11 = vector.broadcast %cst_6 : f32 to vector<1x512xf32>
    %12 = arith.addf %10, %11 : vector<1x512xf32>
    %cst_7 = arith.constant 3.500000e+00 : f32
    %13 = vector.broadcast %cst_7 : f32 to vector<1x512xf32>
    %14 = arith.mulf %12, %13 : vector<1x512xf32>
    %15 = tpu.iota {dimensions = array<i32: 0>} : vector<256x1xi32>
    %16 = arith.sitofp %15 : vector<256x1xi32> to vector<256x1xf32>
    %cst_8 = arith.constant 0.000000e+00 : f32
    %17 = vector.broadcast %cst_8 : f32 to vector<16x512xf32>
    %cst_9 = arith.constant 6.250000e-02 : f32
    %cst_10 = arith.constant 1.600000e+01 : f32
    %c0_i32 = arith.constant 0 : i32
    %c256_i32 = arith.constant 256 : i32
    %18 = arith.muli %c0_i32, %c256_i32 : i32
    %19 = arith.sitofp %18 : i32 to f32
    %20 = vector.broadcast %19 : f32 to vector<256x1xf32>
    %21 = arith.addf %16, %20 : vector<256x1xf32>
    %cst_11 = arith.constant 5.000000e-01 : f32
    %22 = vector.broadcast %cst_11 : f32 to vector<256x1xf32>
    %23 = arith.addf %21, %22 : vector<256x1xf32>
    %24 = vector.broadcast %cst_9 : f32 to vector<256x1xf32>
    %25 = arith.mulf %23, %24 : vector<256x1xf32>
    %26 = math.floor %25 : vector<256x1xf32>
    %27 = vector.broadcast %cst_10 : f32 to vector<256x1xf32>
    %28 = arith.mulf %26, %27 : vector<256x1xf32>
    %29 = arith.subf %21, %28 : vector<256x1xf32>
    %30 = vector.broadcast %4 : vector<1x512xf32> to vector<256x512xf32>
    %31 = vector.broadcast %29 : vector<256x1xf32> to vector<256x512xf32>
    %32 = arith.subf %30, %31 : vector<256x512xf32>
    %33 = math.absf %32 : vector<256x512xf32>
    %cst_12 = arith.constant 1.000000e+00 : f32
    %34 = vector.broadcast %cst_12 : f32 to vector<256x512xf32>
    %35 = arith.subf %34, %33 : vector<256x512xf32>
    %cst_13 = arith.constant 0.000000e+00 : f32
    %36 = vector.broadcast %cst_13 : f32 to vector<256x512xf32>
    %37 = arith.maximumf %36, %35 : vector<256x512xf32>
    %38 = vector.broadcast %9 : vector<1x512xf32> to vector<256x512xf32>
    %39 = vector.broadcast %26 : vector<256x1xf32> to vector<256x512xf32>
    %40 = arith.subf %38, %39 : vector<256x512xf32>
    %41 = math.absf %40 : vector<256x512xf32>
    %cst_14 = arith.constant 1.000000e+00 : f32
    %42 = vector.broadcast %cst_14 : f32 to vector<256x512xf32>
    %43 = arith.subf %42, %41 : vector<256x512xf32>
    %cst_15 = arith.constant 0.000000e+00 : f32
    %44 = vector.broadcast %cst_15 : f32 to vector<256x512xf32>
    %45 = arith.maximumf %44, %43 : vector<256x512xf32>
    %46 = arith.mulf %45, %37 : vector<256x512xf32>
    %47 = arith.truncf %46 : vector<256x512xf32> to vector<256x512xbf16>
    %48 = tpu.assume_multiple %18, 256 : i32
    %c0_16 = arith.constant 0 : index
    %49 = arith.index_cast %48 : i32 to index
    %50 = vector.load %arg1[%c0_16, %49] : memref<16x256xbf16, #tpu.memory_space<vmem>>, vector<16x256xbf16>
    %cst_17 = arith.constant dense<0.000000e+00> : vector<16x512xf32>
    %51 = tpu.matmul %50, %47, %cst_17 {dimension_numbers = #tpu.dot_dimension_numbers<[1], [0], [0], [1], [0, 0, 1, 1], [], []>} : vector<16x256xbf16>, vector<256x512xbf16>, vector<16x512xf32> -> vector<16x512xf32>
    %52 = arith.addf %17, %51 : vector<16x512xf32>
    %c1_i32 = arith.constant 1 : i32
    %53 = tpu.iota {dimensions = array<i32: 0>} : vector<16x1xi32>
    %54 = arith.sitofp %53 : vector<16x1xi32> to vector<16x1xf32>
    %55 = vector.broadcast %14 : vector<1x512xf32> to vector<16x512xf32>
    %56 = vector.broadcast %54 : vector<16x1xf32> to vector<16x512xf32>
    %57 = arith.subf %55, %56 : vector<16x512xf32>
    %58 = math.absf %57 : vector<16x512xf32>
    %cst_18 = arith.constant 1.000000e+00 : f32
    %59 = vector.broadcast %cst_18 : f32 to vector<16x512xf32>
    %60 = arith.subf %59, %58 : vector<16x512xf32>
    %cst_19 = arith.constant 0.000000e+00 : f32
    %61 = vector.broadcast %cst_19 : f32 to vector<16x512xf32>
    %62 = arith.maximumf %61, %60 : vector<16x512xf32>
    %63 = arith.mulf %52, %62 : vector<16x512xf32>
    %cst_20 = arith.constant dense<0.000000e+00> : vector<512xf32>
    %64 = vector.multi_reduction <add>, %63, %cst_20 [0] : vector<16x512xf32> to vector<512xf32>
    %65 = vector.shape_cast %64 : vector<512xf32> to vector<1x512xf32>
    %c0_21 = arith.constant 0 : index
    %c0_22 = arith.constant 0 : index
    %66 = vector.load %arg3[%c0_21, %c0_22] : memref<1x512xf32, #tpu.memory_space<vmem>>, vector<1x512xf32>
    tpu.vector_store %arg3[%c0_21, %c0_22], %65 {strides = array<i32>} : memref<1x512xf32, #tpu.memory_space<vmem>>, vector<1x512xf32>,
    return
  }
  func.func @transform_0(%arg0: i32) -> (i32, i32) {
    %c0_i32 = arith.constant 0 : i32
    %c0_i32_0 = arith.constant 0 : i32
    %c0_i32_1 = arith.constant 0 : i32
    return %c0_i32, %c0_i32_0 : i32, i32
  }
  func.func @transform_1(%arg0: i32) -> (i32, i32) {
    %c0_i32 = arith.constant 0 : i32
    %c0_i32_0 = arith.constant 0 : i32
    return %c0_i32, %arg0 : i32, i32
  }
  func.func @transform_2(%arg0: i32) -> (i32, i32) {
    %c0_i32 = arith.constant 0 : i32
    %c0_i32_0 = arith.constant 0 : i32
    return %c0_i32, %arg0 : i32, i32
  }
}

module attributes {stable_mosaic.version = 11 : i64} {
  func.func @_trilinear_sample_kernel(%arg0: i32, %arg1: memref<16x256xbf16, #tpu.memory_space<vmem>>, %arg2: memref<3x512xf32, #tpu.memory_space<vmem>>, %arg3: memref<1x512xf32, #tpu.memory_space<vmem>>) attributes {dimension_semantics = [#tpu.dimension_semantics<parallel>], iteration_bounds = array<i64: 2>, scalar_prefetch = 0 : i64, scratch_operands = 0 : i64, tpu.core_type = #tpu.core_type<tc>, window_params = [{pipeline_mode = #tpu.pipeline_mode<synchronous>, transform_indices = @transform_0, window_bounds = array<i64: 16, 256>}, {transform_indices = @transform_1, window_bounds = array<i64: 3, 512>}, {transform_indices = @transform_2, window_bounds = array<i64: 1, 512>}]} {
    %c0 = arith.constant 0 : index
    %c0_0 = arith.constant 0 : index
    %0 = vector.load %arg2[%c0, %c0_0] : memref<3x512xf32, #tpu.memory_space<vmem>>, vector<1x512xf32>
    %cst = arith.constant 1.000000e+00 : f32
    %1 = vector.broadcast %cst : f32 to vector<1x512xf32>
    %2 = arith.addf %0, %1 : vector<1x512xf32>
    %cst_1 = arith.constant 7.500000e+00 : f32
    %3 = vector.broadcast %cst_1 : f32 to vector<1x512xf32>
    %4 = arith.mulf %2, %3 : vector<1x512xf32>
    %c1 = arith.constant 1 : index
    %c0_2 = arith.constant 0 : index
    %5 = vector.load %arg2[%c1, %c0_2] : memref<3x512xf32, #tpu.memory_space<vmem>>, vector<1x512xf32>
    %cst_3 = arith.constant 1.000000e+00 : f32
    %6 = vector.broadcast %cst_3 : f32 to vector<1x512xf32>
    %7 = arith.addf %5, %6 : vector<1x512xf32>
    %cst_4 = arith.constant 5.500000e+00 : f32
    %8 = vector.broadcast %cst_4 : f32 to vector<1x512xf32>
    %9 = arith.mulf %7, %8 : vector<1x512xf32>
    %c2 = arith.constant 2 : index
    %c0_5 = arith.constant 0 : index
    %10 = vector.load %arg2[%c2, %c0_5] : memref<3x512xf32, #tpu.memory_space<vmem>>, vector<1x512xf32>
    %cst_6 = arith.constant 1.000000e+00 : f32
    %11 = vector.broadcast %cst_6 : f32 to vector<1x512xf32>
    %12 = arith.addf %10, %11 : vector<1x512xf32>
    %cst_7 = arith.constant 3.500000e+00 : f32
    %13 = vector.broadcast %cst_7 : f32 to vector<1x512xf32>
    %14 = arith.mulf %12, %13 : vector<1x512xf32>
    %15 = tpu.iota {dimensions = array<i32: 0>} : vector<256x1xi32>
    %16 = arith.sitofp %15 : vector<256x1xi32> to vector<256x1xf32>
    %cst_8 = arith.constant 0.000000e+00 : f32
    %17 = vector.broadcast %cst_8 : f32 to vector<16x512xf32>
    %cst_9 = arith.constant 6.250000e-02 : f32
    %cst_10 = arith.constant 1.600000e+01 : f32
    %c0_i32 = arith.constant 0 : i32
    %c256_i32 = arith.constant 256 : i32
    %18 = arith.muli %c0_i32, %c256_i32 : i32
    %19 = arith.sitofp %18 : i32 to f32
    %20 = vector.broadcast %19 : f32 to vector<256x1xf32>
    %21 = arith.addf %16, %20 : vector<256x1xf32>
    %cst_11 = arith.constant 5.000000e-01 : f32
    %22 = vector.broadcast %cst_11 : f32 to vector<256x1xf32>
    %23 = arith.addf %21, %22 : vector<256x1xf32>
    %24 = vector.broadcast %cst_9 : f32 to vector<256x1xf32>
    %25 = arith.mulf %23, %24 : vector<256x1xf32>
    %26 = math.floor %25 : vector<256x1xf32>
    %27 = vector.broadcast %cst_10 : f32 to vector<256x1xf32>
    %28 = arith.mulf %26, %27 : vector<256x1xf32>
    %29 = arith.subf %21, %28 : vector<256x1xf32>
    %30 = vector.broadcast %4 : vector<1x512xf32> to vector<256x512xf32>
    %31 = vector.broadcast %29 : vector<256x1xf32> to vector<256x512xf32>
    %32 = arith.subf %30, %31 : vector<256x512xf32>
    %33 = math.absf %32 : vector<256x512xf32>
    %cst_12 = arith.constant 1.000000e+00 : f32
    %34 = vector.broadcast %cst_12 : f32 to vector<256x512xf32>
    %35 = arith.subf %34, %33 : vector<256x512xf32>
    %cst_13 = arith.constant 0.000000e+00 : f32
    %36 = vector.broadcast %cst_13 : f32 to vector<256x512xf32>
    %37 = arith.maximumf %36, %35 : vector<256x512xf32>
    %38 = vector.broadcast %9 : vector<1x512xf32> to vector<256x512xf32>
    %39 = vector.broadcast %26 : vector<256x1xf32> to vector<256x512xf32>
    %40 = arith.subf %38, %39 : vector<256x512xf32>
    %41 = math.absf %40 : vector<256x512xf32>
    %cst_14 = arith.constant 1.000000e+00 : f32
    %42 = vector.broadcast %cst_14 : f32 to vector<256x512xf32>
    %43 = arith.subf %42, %41 : vector<256x512xf32>
    %cst_15 = arith.constant 0.000000e+00 : f32
    %44 = vector.broadcast %cst_15 : f32 to vector<256x512xf32>
    %45 = arith.maximumf %44, %43 : vector<256x512xf32>
    %46 = arith.mulf %45, %37 : vector<256x512xf32>
    %47 = arith.truncf %46 : vector<256x512xf32> to vector<256x512xbf16>
    %48 = tpu.assume_multiple %18, 256 : i32
    %c0_16 = arith.constant 0 : index
    %49 = arith.index_cast %48 : i32 to index
    %50 = vector.load %arg1[%c0_16, %49] : memref<16x256xbf16, #tpu.memory_space<vmem>>, vector<16x256xbf16>
    %cst_17 = arith.constant dense<0.000000e+00> : vector<16x512xf32>
    %51 = tpu.matmul %50, %47, %cst_17 {dimension_numbers = #tpu.dot_dimension_numbers<[1], [0], [0], [1], [0, 0, 1, 1], [], []>} : vector<16x256xbf16>, vector<256x512xbf16>, vector<16x512xf32> -> vector<16x512xf32>
    %52 = arith.addf %17, %51 : vector<16x512xf32>
    %c1_i32 = arith.constant 1 : i32
    %53 = tpu.iota {dimensions = array<i32: 0>} : vector<16x1xi32>
    %54 = arith.sitofp %53 : vector<16x1xi32> to vector<16x1xf32>
    %55 = vector.broadcast %14 : vector<1x512xf32> to vector<16x512xf32>
    %56 = vector.broadcast %54 : vector<16x1xf32> to vector<16x512xf32>
    %57 = arith.subf %55, %56 : vector<16x512xf32>
    %58 = math.absf %57 : vector<16x512xf32>
    %cst_18 = arith.constant 1.000000e+00 : f32
    %59 = vector.broadcast %cst_18 : f32 to vector<16x512xf32>
    %60 = arith.subf %59, %58 : vector<16x512xf32>
    %cst_19 = arith.constant 0.000000e+00 : f32
    %61 = vector.broadcast %cst_19 : f32 to vector<16x512xf32>
    %62 = arith.maximumf %61, %60 : vector<16x512xf32>
    %63 = arith.mulf %52, %62 : vector<16x512xf32>
    %cst_20 = arith.constant dense<0.000000e+00> : vector<512xf32>
    %64 = vector.multi_reduction <add>, %63, %cst_20 [0] : vector<16x512xf32> to vector<512xf32>
    %65 = vector.shape_cast %64 : vector<512xf32> to vector<1x512xf32>
    %c0_21 = arith.constant 0 : index
    %c0_22 = arith.constant 0 : index
    %66 = vector.load %arg3[%c0_21, %c0_22] : memref<1x512xf32, #tpu.memory_space<vmem>>, vector<1x512xf32>
    tpu.vector_store %arg3[%c0_21, %c0_22], %65 {strides = array<i32>} : memref<1x512xf32, #tpu.memory_space<vmem>>, vector<1x512xf32>,
    return
  }
  func.func @transform_0(%arg0: i32) -> (i32, i32) {
    %c0_i32 = arith.constant 0 : i32
    %c0_i32_0 = arith.constant 0 : i32
    %c0_i32_1 = arith.constant 0 : i32
    return %c0_i32, %c0_i32_0 : i32, i32
  }
  func.func @transform_1(%arg0: i32) -> (i32, i32) {
    %c0_i32 = arith.constant 0 : i32
    %c0_i32_0 = arith.constant 0 : i32
    return %c0_i32, %arg0 : i32, i32
  }
  func.func @transform_2(%arg0: i32) -> (i32, i32) {
    %c0_i32 = arith.constant 0 : i32
    %c0_i32_0 = arith.constant 0 : i32
    return %c0_i32, %arg0 : i32, i32
  }
}

</mosaic_0001>

<bundles_post_ra>
// kernel: tpu_custom_call.1
= control target key start
LH: loop header
LB: loop body
LE: loop exit
PB: predicated region body
PF: predicated region fallthrough
CT: control target
= control target key end

     0   :  { %7 = vsyncpa [#allocation3], 0  ;;  %s3238_s0 = inlined_call_operand.hbm [shape: bf16[16,256], index: 0, kind: input, shape index: {}]   ;;  %s3239_s1 = inlined_call_operand.hbm [shape: f32[3,1024], index: 1, kind: input, shape index: {}]   ;;  %s3240_s2 = inlined_call_operand.hbm [shape: f32[1,1024], index: 2, kind: output, shape index: {}]  }
   0x1   :  { %8 = vsyncpa [#allocation6], 0 }
   0x2   :  { %10 = vsyncpa [#allocation6 + $0x1], 0 }
   0x3   :  { %11 = vsyncpa [#allocation4], 0 }
   0x4   :  { %13 = vsyncpa [#allocation4 + $0x1], 0  ;;  %s2238_s9 = smov 0   ;;  %s2240_s10 = smov 0  }
   0x5   :  { %s2242_s11 = smov 0   ;;  %s2244_s12 = smov 0  }
   0x6 LB: > { %s108_s15 = sshll.u32 %s3238_s0, 4  ;;  %s2262_s16 = sadd.s32 4294967295, %s2218_s12   ;;  %s2218_s12 = sphi %s2244_s12, %s3412_s12   ;;  %s2214_s11 = sphi %s2242_s11, %s3411_s11   ;;  %s2210_s10 = sphi %s2240_s10, %s3410_s10   ;;  %s2206_s9 = sphi %s2238_s9, %s3409_s9   ;;  %s109_s15 = int_to_ptr.hbm [resolvable:$true] %s108_s15 }
   0x7   : > { %p2002_p0 = scmp.ge.s32.totalorder %s2218_s12, 1  ;;  %p61_p1 = scmp.eq.s32.totalorder %s2262_s16, 0 }
   0x8   : > { %p97_p2 = scmp.lt.s32.totalorder %s2218_s12, 3  ;;  %s2220_s18 = smov [#allocation2]  }
   0x9   : > { %s110_s19 = sshll.u32 %s2220_s18, 4  ;;  %s2221_s20 = smov 128   ;;  %s111_s19 = int_to_ptr.vmem [resolvable:$true] %s110_s19 }
   0xa   : > { %p2267_p3 = pnand %p2002_p0, %p97_p2  ;;  %s2222_s21 = smov 8  }
   0xb   : > { %s2001_s22 = sadd.s32 4294967294, %s2218_s12   ;;  %s2278_s23 = sadd.s32 1, %s2218_s12  }
   0xc   : > { %p2037_p4 = pneg %p2267_p3  ;;  %s47_s24 = sadd.s32 1, %s2214_s11 }
   0xd   : > { %s44_s25 = ssub.s32 %s2218_s12, %s2278_s23  ;;  %p54_p7 = scmp.ne.s32.totalorder %s2214_s11, %s2210_s10 }
   0xe   : > { %p2038_p6 = pnand %p2037_p4, %p61_p1  ;;  %p45_p8 = scmp.eq.s32.totalorder %s44_s25, 0 }
   0xf   : > { %p55_p9 = scmp.eq.s32.totalorder %s2218_s12, 0  ;;  %p60_p10 = scmp.ne.s32.totalorder %s2210_s10, %s2206_s9 }
  0x10   : > { %2040 = dma.hbm_to_vmem [thread:$0]  (!%p2038_p6), %s109_s15, 256, %s111_s19, [#allocation3], %s2221_s20, %s2221_s20, %s2222_s21  }
  0x11   : > { %p84_p11 = scmp.eq.s32.totalorder %s2262_s16, 1  ;;  %p2294_p12 = por %p61_p1, %p60_p10 }
  0x12   : > { %s2290_s26 = scalar_select %p45_p8, %s2214_s11, %s47_s24  }
  0x13   : > { %p2298_p13 = por %p84_p11, %p54_p7  ;;  %p90_p0 = scmp.eq.s32.totalorder %s2001_s22, 1 }
  0x14   : > { %p56_p2 = por %p55_p9, %p54_p7  ;;  %s124_s29 = sand.u32 1, %s2214_s11  }
  0x15   : > { %p2303_p4 = por %p90_p0, %p60_p10  ;;  %p2050_p6 = scmp.lt.s32.totalorder %s2218_s12, 2 }
  0x16   : > { %s2005_s3 = sshll.u32 %s124_s29, 4  ;;  %s2026_s4 = sshll.u32 %s2218_s12, 4 }
  0x17   : > { %s133_s7 = scalar_lea.hbm %s3239_s1, %s2026_s4  ;;  %s128_s13 = scalar_lea.vmem [#allocation5], %s2005_s3 }
  0x18   : > { %s135_s8 = sshll.u32 %s133_s7, 4  ;;  %s137_s14 = sshll.u32 %s128_s13, 4  ;;  %s136_s8 = int_to_ptr.hbm [resolvable:$true] %s135_s8  ;;  %s138_s14 = int_to_ptr.vmem [resolvable:$true] %s137_s14 }
  0x19   : > { %p2312_p8 = pnand %p2050_p6, %p56_p2  ;;  %s125_s18 = scalar_lea.sflag [#allocation6], %s124_s29 }
  0x1a   : > { %s2118_s19 = sshra.s32 %s136_s8, 4  ;;  %s2125_s24 = scalar_lea.hbm %s3239_s1, 32  ;;  %s2119_s19 = int_to_ptr.hbm [resolvable:$true] %s2118_s19 }
  0x1b   : > { %s2120_s20 = scalar_lea.hbm %s2119_s19, 16  ;;  %p2122_p9 = pneg %p2312_p8 }
  0x1c   : > { %p2121_p7 = scmp.ne.s32.totalorder %s2119_s19, %s2120_s20  ;;  %p2126_p0 = scmp.lt.s32.totalorder %s2119_s19, %s3239_s1 }
  0x1d   : > { %p2127_p2 = scmp.lt.s32.totalorder %s2125_s24, %s2120_s20 }
  0x1e   : > { %p2123_p10 = pnand %p2122_p9, %p2121_p7 }
  0x1f   : > { %p2128_p6 = por %p2127_p2, %p2126_p0 }
  0x20   : > { %p2124_p11 = pneg %p2123_p10 }
  0x22   : > { %p2129_p5 = pnand %p2128_p6, %p2124_p11 }
  0x24   : > { %2132 = shalt.err (!%p2129_p5)
}
  0x25   : > { %2044 = dma.hbm_to_vmem [thread:$0]  (!%p2312_p8), %s136_s8, 256, %s138_s14, %s125_s18  }
  0x26   : > { %146 = sbr.rel (%p2267_p3) target bundleno = 592 (0x250), region = 28 }
  0x2b   : > { %2193 = dma.done.wait (%p61_p1), [#allocation3], 256  }
  0x2c   : > { %2195 = vsyncadd (%p61_p1), [#allocation3], 4294967040  ;;  %s2333_s29 = sand.u32 1, %s2210_s10  }
  0x2d   : > { %s2010_s4 = sshll.u32 %s2333_s29, 4  ;;  %s154_s5 = scalar_lea.sflag [#allocation6], %s2333_s29 }
  0x2e   : > { %s2337_s6 = scalar_lea.vmem [#allocation5], %s2010_s4 }
  0x2f   : > { %2197 = dma.done.wait (%p2294_p12), %s154_s5, 256  }
  0x30   : > { %2199 = vsyncadd (%p2294_p12), %s154_s5, 4294967040  ;;  %v3241_v0 = vlaneseq  ;;  %v181_v14 = vld [vmem:[%s2337_s6] ss:$4 sm:$0xf]  ;;  %s2011_s17 = sshll.u32 %s2333_s29, 2  ;;  %s2023_s27 = sshll.u32 %s2262_s16, 2 }
  0x31   : > { %v2012_v15 = vld [vmem:[%s2337_s6 + $0x1] ss:$4 sm:$0xf]  ;;  %v182_v20 = vadd.f32 1.0, %v181_v14  ;;  %s1914_s13 = scalar_lea.hbm %s3240_s2, %s2023_s27  ;;  %vm1891_vm0 = vcmask 1040384   ;;  %vm1893_vm1 = vcmask 1042434  }
  0x32   : > { %v2344_v1 = vshrl.u32 %v3241_v0, 7  ;;  %v186_v21 = vadd.f32 1.0, %v2012_v15  ;;  %s178_s14 = scalar_lea.vmem [#allocation7], %s2011_s17  ;;  %s1918_s18 = sshll.u32 %s1914_s13, 4  ;;  %vm1895_vm2 = vcmask 1041408   ;;  %s1919_s18 = int_to_ptr.hbm [resolvable:$true] %s1918_s18 }
  0x33   : > { %v183_v28 = vmul.f32 7.5, %v182_v20  ;;  %s1916_s15 = sshll.u32 %s178_s14, 4  ;;  %s1904_s16 = scalar_lea.sflag [#allocation4], %s2333_s29  ;;  %s1917_s15 = int_to_ptr.vmem [resolvable:$true] %s1916_s15 }
  0x34   : > { %v207_v2 = vadd.s32 112, %v2344_v1  ;;  %v208_v3 = vadd.s32 120, %v2344_v1  ;;  %v223_v4 = vadd.s32 240, %v2344_v1  ;;  %v224_v5 = vadd.s32 248, %v2344_v1  ;;  %s2162_s19 = sshra.s32 %s1919_s18, 4  ;;  %s2168_s24 = scalar_lea.hbm %s3240_s2, 8  ;;  %s2163_s19 = int_to_ptr.hbm [resolvable:$true] %s2162_s19 }
  0x35   : > { %v2351_v6 = vadd.s32 96, %v2344_v1  ;;  %v2354_v7 = vadd.s32 104, %v2344_v1  ;;  %v2357_v8 = vadd.s32 224, %v2344_v1  ;;  %v2360_v9 = vadd.s32 232, %v2344_v1  ;;  %s2164_s20 = scalar_lea.hbm %s2163_s19, 4  ;;  %p2169_p12 = scmp.lt.s32.totalorder %s2163_s19, %s3240_s2 }
  0x36   : > { %v239_v10 = vcvt.s32.f32 %v207_v2  ;;  %v240_v11 = vcvt.s32.f32 %v208_v3  ;;  %v255_v12 = vcvt.s32.f32 %v223_v4  ;;  %v256_v13 = vcvt.s32.f32 %v224_v5  ;;  %p2165_p1 = scmp.ne.s32.totalorder %s2163_s19, %s2164_s20  ;;  %p2170_p8 = scmp.lt.s32.totalorder %s2168_s24, %s2164_s20 }
  0x37   : > { %v237_v16 = vcvt.s32.f32 %v2351_v6  ;;  %v238_v17 = vcvt.s32.f32 %v2354_v7  ;;  %v253_v18 = vcvt.s32.f32 %v2357_v8  ;;  %v254_v19 = vcvt.s32.f32 %v2360_v9 }
  0x38   : > { %v303_v22 = vadd.f32 0.5, %v239_v10  ;;  %v304_v23 = vadd.f32 0.5, %v240_v11  ;;  %v319_v24 = vadd.f32 0.5, %v255_v12  ;;  %v320_v25 = vadd.f32 0.5, %v256_v13  ;;  %p2166_p3 = pnand %p2165_p1, %p2298_p13  ;;  %p2171_p7 = por %p2170_p8, %p2169_p12 }
  0x39   : > { %v301_v26 = vadd.f32 0.5, %v237_v16  ;;  %v302_v27 = vadd.f32 0.5, %v238_v17  ;;  %v187_v29 = vmul.f32 5.5, %v186_v21  ;;  %v2372_v36 = vperm.slane %v183_v28, 0 }
  0x3a   : > { %v335_v30 = vmul.f32 0.0625, %v303_v22  ;;  %v336_v31 = vmul.f32 0.0625, %v304_v23  ;;  %v351_v32 = vmul.f32 0.0625, %v319_v24  ;;  %v352_v33 = vmul.f32 0.0625, %v320_v25  ;;  %p2167_p5 = pneg %p2166_p3 }
  0x3b   : > { %v333_v34 = vmul.f32 0.0625, %v301_v26  ;;  %v334_v35 = vmul.f32 0.0625, %v302_v27  ;;  %v2374_v37 = vperm.slane %v183_v28, 1  ;;  %v2376_v38 = vperm.slane %v183_v28, 2 }
  0x3c   : > { %v2378_v39 = vperm.slane %v183_v28, 3  ;;  %v2380_v40 = vperm.slane %v187_v29, 0  ;;  %v2382_v41 = vperm.slane %v187_v29, 1  ;;  %v2384_v42 = vperm.slane %v187_v29, 2  ;;  %p2172_p9 = pnand %p2171_p7, %p2167_p5 }
  0x3d   : > { %v2386_v43 = vperm.slane %v187_v29, 3  ;;  %v2388_v44 = vfloor.f32 %v335_v30  ;;  %v2390_v45 = vfloor.f32 %v336_v31  ;;  %v2392_v46 = vfloor.f32 %v351_v32 }
  0x3e   : > { %v2394_v47 = vfloor.f32 %v352_v33  ;;  %v2396_v48 = vfloor.f32 %v333_v34  ;;  %v2398_v49 = vfloor.f32 %v334_v35  ;;  %v2402_v50 = vadd.f32 0.5, %v253_v18 }
  0x3f   : > { %v2406_v51 = vadd.f32 0.5, %v254_v19  ;;  %v399_v52 = vmul.f32 16.0, %v2388_v44  ;;  %v400_v53 = vmul.f32 16.0, %v2390_v45  ;;  %v1035_v54 = vsub.f32 %v2380_v40, %v2388_v44 }
  0x40   : > { %v1039_v55 = vsub.f32 %v2380_v40, %v2390_v45  ;;  %v415_v56 = vmul.f32 16.0, %v2392_v46  ;;  %v416_v57 = vmul.f32 16.0, %v2394_v47  ;;  %v1099_v58 = vsub.f32 %v2380_v40, %v2392_v46 }
  0x41   : > { %v1103_v59 = vsub.f32 %v2380_v40, %v2394_v47  ;;  %v2420_v60 = vsub.f32 %v239_v10, %v399_v52  ;;  %v2422_v61 = vsub.f32 %v240_v11, %v400_v53  ;;  %v1163_v62 = vand.u32 2147483647, %v1035_v54 }
  0x42   : > { %v1167_v63 = vand.u32 2147483647, %v1039_v55  ;;  %v2424_v2 = vsub.f32 %v255_v12, %v415_v56  ;;  %v2426_v3 = vsub.f32 %v256_v13, %v416_v57  ;;  %v1227_v4 = vand.u32 2147483647, %v1099_v58 }
  0x43   : > { %v1231_v5 = vand.u32 2147483647, %v1103_v59  ;;  %v514_v14 = vsub.f32 %v2372_v36, %v2420_v60  ;;  %v518_v15 = vsub.f32 %v2372_v36, %v2422_v61  ;;  %v1291_v20 = vsub.f32 1.0, %v1163_v62 }
  0x44   : > { %v1295_v21 = vsub.f32 1.0, %v1167_v63  ;;  %v578_v10 = vsub.f32 %v2372_v36, %v2424_v2  ;;  %v582_v11 = vsub.f32 %v2372_v36, %v2426_v3  ;;  %v1355_v12 = vsub.f32 1.0, %v1227_v4 }
  0x45   : > { %v1359_v22 = vsub.f32 1.0, %v1231_v5  ;;  %v642_v13 = vand.u32 2147483647, %v514_v14  ;;  %v646_v23 = vand.u32 2147483647, %v518_v15  ;;  %v1419_v24 = vmax.f32 %v1291_v20, 0.0 }
  0x46   : > { %v1423_v25 = vmax.f32 %v1295_v21, 0.0  ;;  %v706_v26 = vand.u32 2147483647, %v578_v10  ;;  %v710_v27 = vand.u32 2147483647, %v582_v11  ;;  %v1483_v28 = vmax.f32 %v1355_v12, 0.0 }
  0x47   : > { %v1487_v29 = vmax.f32 %v1359_v22, 0.0  ;;  %v770_v30 = vsub.f32 1.0, %v642_v13  ;;  %v774_v31 = vsub.f32 1.0, %v646_v23  ;;  %v515_v32 = vsub.f32 %v2374_v37, %v2420_v60 }
  0x48   : > { %v519_v33 = vsub.f32 %v2374_v37, %v2422_v61  ;;  %v834_v34 = vsub.f32 1.0, %v706_v26  ;;  %v838_v35 = vsub.f32 1.0, %v710_v27  ;;  %v1036_v52 = vsub.f32 %v2382_v41, %v2388_v44 }
  0x49   : > { %v1040_v53 = vsub.f32 %v2382_v41, %v2390_v45  ;;  %v898_v54 = vmax.f32 %v770_v30, 0.0  ;;  %v902_v55 = vmax.f32 %v774_v31, 0.0  ;;  %v643_v56 = vand.u32 2147483647, %v515_v32 }
  0x4a   : > { %v647_v57 = vand.u32 2147483647, %v519_v33  ;;  %v962_v58 = vmax.f32 %v834_v34, 0.0  ;;  %v966_v59 = vmax.f32 %v838_v35, 0.0  ;;  %v1164_v62 = vand.u32 2147483647, %v1036_v52 }
  0x4b   : > { %v1168_v63 = vand.u32 2147483647, %v1040_v53  ;;  %v1547_v4 = vmul.f32 %v1419_v24, %v898_v54  ;;  %v1551_v5 = vmul.f32 %v1423_v25, %v902_v55  ;;  %v771_v14 = vsub.f32 1.0, %v643_v56 }
  0x4c   : > { %v775_v15 = vsub.f32 1.0, %v647_v57  ;;  %v1611_v20 = vmul.f32 %v1483_v28, %v962_v58  ;;  %v1615_v21 = vmul.f32 %v1487_v29, %v966_v59  ;;  %v1292_v10 = vsub.f32 1.0, %v1164_v62 }
  0x4d   : > { %v1296_v11 = vsub.f32 1.0, %v1168_v63  ;;  %v1647_v12 = vpack.c.bf16 %v1551_v5, %v1547_v4  ;;  %v899_v22 = vmax.f32 %v771_v14, 0.0  ;;  %v579_v23 = vsub.f32 %v2374_v37, %v2424_v2 }
  0x4e   : > { %v903_v13 = vmax.f32 %v775_v15, 0.0  ;;  %v1679_v26 = vpack.c.bf16 %v1615_v21, %v1611_v20  ;;  %v1420_v27 = vmax.f32 %v1292_v10, 0.0  ;;  %v583_v31 = vsub.f32 %v2374_v37, %v2426_v3 }
  0x4f   : > { %v1424_v30 = vmax.f32 %v1296_v11, 0.0  ;;  %1695 = vmatpush.bf16.msra.mxu0 %v1647_v12  ;;  %v707_v24 = vand.u32 2147483647, %v579_v23  ;;  %v1100_v25 = vsub.f32 %v2382_v41, %v2392_v46  ;;  %v1104_v28 = vsub.f32 %v2382_v41, %v2394_v47 }
  0x50   : > { %v397_v29 = vmul.f32 16.0, %v2396_v48  ;;  %1709 = vmatpush.bf16.msra.mxu1 %v1679_v26  ;;  %v1548_v32 = vmul.f32 %v1420_v27, %v899_v22  ;;  %v711_v34 = vand.u32 2147483647, %v583_v31  ;;  %v398_v35 = vmul.f32 16.0, %v2398_v49 }
  0x51   : > { %v1552_v33 = vmul.f32 %v1424_v30, %v903_v13  ;;  %v835_v52 = vsub.f32 1.0, %v707_v24  ;;  %v1228_v53 = vand.u32 2147483647, %v1100_v25  ;;  %v1232_v54 = vand.u32 2147483647, %v1104_v28 }
  0x52   : > { %v2456_v55 = vsub.f32 %v237_v16, %v397_v29  ;;  %v839_v57 = vsub.f32 1.0, %v711_v34  ;;  %v2460_v58 = vsub.f32 %v238_v17, %v398_v35  ;;  %v1027_v59 = vsub.f32 %v2380_v40, %v2396_v48 }
  0x53   : > { %v1648_v56 = vpack.c.bf16 %v1552_v33, %v1548_v32  ;;  %v963_v62 = vmax.f32 %v835_v52, 0.0  ;;  %v1356_v63 = vsub.f32 1.0, %v1228_v53  ;;  %v1360_v4 = vsub.f32 1.0, %v1232_v54 }
  0x54   : > { %v506_v5 = vsub.f32 %v2372_v36, %v2456_v55  ;;  %v967_v14 = vmax.f32 %v839_v57, 0.0  ;;  %v510_v6 = vsub.f32 %v2372_v36, %v2460_v58  ;;  %v1031_v16 = vsub.f32 %v2380_v40, %v2398_v49 }
  0x55   : > { %1723 = vmatpush.bf16.msra.mxu2 %v1648_v56  ;;  %v1155_v7 = vand.u32 2147483647, %v1027_v59  ;;  %v1484_v17 = vmax.f32 %v1356_v63, 0.0  ;;  %v1488_v15 = vmax.f32 %v1360_v4, 0.0  ;;  %v349_v21 = vmul.f32 0.0625, %v2402_v50 }
  0x56   : > { %v634_v20 = vand.u32 2147483647, %v506_v5  ;;  %v638_v10 = vand.u32 2147483647, %v510_v6  ;;  %v1159_v11 = vand.u32 2147483647, %v1031_v16  ;;  %v507_v56 = vsub.f32 %v2374_v37, %v2456_v55 }
  0x57   : > { %v1283_v12 = vsub.f32 1.0, %v1155_v7  ;;  %v350_v22 = vmul.f32 0.0625, %v2406_v51  ;;  %v1612_v13 = vmul.f32 %v1484_v17, %v963_v62  ;;  %v1616_v23 = vmul.f32 %v1488_v15, %v967_v14 }
  0x58   : > { %v762_v26 = vsub.f32 1.0, %v634_v20  ;;  %v2472_v27 = vfloor.f32 %v349_v21  ;;  %v766_v30 = vsub.f32 1.0, %v638_v10  ;;  %v1287_v31 = vsub.f32 1.0, %v1159_v11 }
  0x59   : > { %v1411_v24 = vmax.f32 %v1283_v12, 0.0  ;;  %v2474_v25 = vfloor.f32 %v350_v22  ;;  %v1680_v28 = vpack.c.bf16 %v1616_v23, %v1612_v13  ;;  %v511_v63 = vsub.f32 %v2374_v37, %v2460_v58 }
  0x5a   : > { %3325 = vst [vmem:[#allocation11_spill] sm:$0xff] %v2472_v27  ;;  %v890_v29 = vmax.f32 %v762_v26, 0.0  ;;  %v413_v32 = vmul.f32 16.0, %v2472_v27  ;;  %v1091_v50 = vsub.f32 %v2380_v40, %v2472_v27  ;;  %v894_v33 = vmax.f32 %v766_v30, 0.0 }
  0x5b   : > { %3326 = vst [vmem:[#allocation12_spill] sm:$0xff] %v2474_v25  ;;  %v1415_v34 = vmax.f32 %v1287_v31, 0.0  ;;  %v414_v51 = vmul.f32 16.0, %v2474_v25  ;;  %v1095_v35 = vsub.f32 %v2380_v40, %v2474_v25  ;;  %1737 = vmatpush.bf16.msra.mxu3 %v1680_v28  ;;  %v635_v8 = vand.u32 2147483647, %v507_v56 }
  0x5c   : > { %v1539_v52 = vmul.f32 %v1411_v24, %v890_v29  ;;  %v2484_v53 = vsub.f32 %v253_v18, %v413_v32  ;;  %v1219_v54 = vand.u32 2147483647, %v1091_v50  ;;  %v1028_v18 = vsub.f32 %v2382_v41, %v2396_v48 }
  0x5d   : > { %v1543_v57 = vmul.f32 %v1415_v34, %v894_v33  ;;  %v2490_v59 = vsub.f32 %v254_v19, %v414_v51  ;;  %v1223_v62 = vand.u32 2147483647, %v1095_v35  ;;  %v639_v9 = vand.u32 2147483647, %v511_v63 }
  0x5e   : > { %v570_v4 = vsub.f32 %v2372_v36, %v2484_v53  ;;  %v1347_v5 = vsub.f32 1.0, %v1219_v54  ;;  %v763_v17 = vsub.f32 1.0, %v635_v8  ;;  %v1032_v15 = vsub.f32 %v2382_v41, %v2398_v49 }
  0x5f   : > { %3327 = vst [vmem:[#allocation13_spill] sm:$0xff] %v2490_v59  ;;  %v1643_v14 = vpack.c.bf16 %v1543_v57, %v1539_v52  ;;  %v574_v6 = vsub.f32 %v2372_v36, %v2490_v59  ;;  %v1351_v16 = vsub.f32 1.0, %v1223_v62  ;;  %v767_v10 = vsub.f32 1.0, %v639_v9 }
  0x60   : > { %v698_v19 = vand.u32 2147483647, %v570_v4  ;;  %v1475_v7 = vmax.f32 %v1347_v5, 0.0  ;;  %v1156_v11 = vand.u32 2147483647, %v1028_v18  ;;  %v891_v22 = vmax.f32 %v763_v17, 0.0 }
  0x61   : > { %1696 = vmatpush.bf16.msra.mxu0 %v1643_v14  ;;  %v702_v20 = vand.u32 2147483647, %v574_v6  ;;  %v1479_v21 = vmax.f32 %v1351_v16, 0.0  ;;  %v1160_v13 = vand.u32 2147483647, %v1032_v15  ;;  %v571_v23 = vsub.f32 %v2374_v37, %v2484_v53 }
  0x62   : > { %v826_v12 = vsub.f32 1.0, %v698_v19  ;;  %v895_v30 = vmax.f32 %v767_v10, 0.0  ;;  %v1284_v31 = vsub.f32 1.0, %v1156_v11  ;;  %v575_v24 = vsub.f32 %v2374_v37, %v2490_v59 }
  0x63   : > { %v830_v26 = vsub.f32 1.0, %v702_v20  ;;  %v1288_v29 = vsub.f32 1.0, %v1160_v13  ;;  %v699_v32 = vand.u32 2147483647, %v571_v23  ;;  %v1092_v50 = vsub.f32 %v2382_v41, %v2472_v27 }
  0x64   : > { %v954_v28 = vmax.f32 %v826_v12, 0.0  ;;  %v1412_v34 = vmax.f32 %v1284_v31, 0.0  ;;  %v703_v51 = vand.u32 2147483647, %v575_v24  ;;  %v1096_v35 = vsub.f32 %v2382_v41, %v2474_v25 }
  0x65   : > { %v958_v33 = vmax.f32 %v830_v26, 0.0  ;;  %v1416_v54 = vmax.f32 %v1288_v29, 0.0  ;;  %v827_v56 = vsub.f32 1.0, %v699_v32  ;;  %v1220_v57 = vand.u32 2147483647, %v1092_v50 }
  0x66   : > { %v1603_v52 = vmul.f32 %v1475_v7, %v954_v28  ;;  %v1540_v63 = vmul.f32 %v1412_v34, %v891_v22  ;;  %v831_v4 = vsub.f32 1.0, %v703_v51  ;;  %v1224_v5 = vand.u32 2147483647, %v1096_v35 }
  0x67   : > { %v1607_v62 = vmul.f32 %v1479_v21, %v958_v33  ;;  %v1544_v8 = vmul.f32 %v1416_v54, %v895_v30  ;;  %v955_v18 = vmax.f32 %v827_v56, 0.0  ;;  %v1348_v14 = vsub.f32 1.0, %v1220_v57 }
  0x68   : > { %v203_v6 = vadd.s32 80, %v2344_v1  ;;  %v959_v9 = vmax.f32 %v831_v4, 0.0  ;;  %v1352_v19 = vsub.f32 1.0, %v1224_v5  ;;  %v204_v17 = vadd.s32 88, %v2344_v1 }
  0x69   : > { %v1675_v16 = vpack.c.bf16 %v1607_v62, %v1603_v52  ;;  %v1644_v15 = vpack.c.bf16 %v1544_v8, %v1540_v63  ;;  %v1476_v20 = vmax.f32 %v1348_v14, 0.0  ;;  %v219_v10 = vadd.s32 208, %v2344_v1 }
  0x6a   : > { %v235_v7 = vcvt.s32.f32 %v203_v6  ;;  %v1480_v21 = vmax.f32 %v1352_v19, 0.0  ;;  %v236_v11 = vcvt.s32.f32 %v204_v17  ;;  %v220_v12 = vadd.s32 216, %v2344_v1 }
  0x6b   : > { %1710 = vmatpush.bf16.msra.mxu1 %v1675_v16  ;;  %v2515_v22 = vadd.s32 64, %v2344_v1  ;;  %1724 = vmatpush.bf16.msra.mxu2 %v1644_v15  ;;  %v1604_v13 = vmul.f32 %v1476_v20, %v955_v18  ;;  %v251_v26 = vcvt.s32.f32 %v219_v10  ;;  %v2518_v30 = vadd.s32 72, %v2344_v1 }
  0x6c   : > { %v299_v23 = vadd.f32 0.5, %v235_v7  ;;  %v1608_v31 = vmul.f32 %v1480_v21, %v959_v9  ;;  %v300_v24 = vadd.f32 0.5, %v236_v11  ;;  %v252_v28 = vcvt.s32.f32 %v220_v12 }
  0x6d   : > { %v3243_v29 = vcvt.s32.f32 %v2515_v22  ;;  %v315_v50 = vadd.f32 0.5, %v251_v26  ;;  %v3242_v33 = vcvt.s32.f32 %v2518_v30  ;;  %v2523_v34 = vadd.s32 192, %v2344_v1 }
  0x6e   : > { %v331_v32 = vmul.f32 0.0625, %v299_v23  ;;  %v1676_v51 = vpack.c.bf16 %v1608_v31, %v1604_v13  ;;  %v332_v35 = vmul.f32 0.0625, %v300_v24  ;;  %v316_v52 = vadd.f32 0.5, %v252_v28 }
  0x6f   : > { %v297_v54 = vadd.f32 0.5, %v3243_v29  ;;  %v347_v57 = vmul.f32 0.0625, %v315_v50  ;;  %v2531_v62 = vadd.f32 0.5, %v3242_v33  ;;  %v2534_v63 = vadd.s32 200, %v2344_v1 }
  0x70   : > { %v2527_v56 = vfloor.f32 %v331_v32  ;;  %1738 = vmatpush.bf16.msra.mxu3 %v1676_v51  ;;  %v2536_v4 = vfloor.f32 %v332_v35  ;;  %v348_v5 = vmul.f32 0.0625, %v316_v52 }
  0x71   : > { %v2538_v8 = vmul.f32 0.0625, %v297_v54  ;;  %v2544_v16 = vfloor.f32 %v347_v57 }
  0x72   : > { %3328 = vst [vmem:[#allocation14_spill] sm:$0xff] %v2527_v56  ;;  %v395_v14 = vmul.f32 16.0, %v2527_v56  ;;  %v1019_v6 = vsub.f32 %v2380_v40, %v2527_v56  ;;  %v1020_v9 = vsub.f32 %v2382_v41, %v2527_v56  ;;  %v396_v19 = vmul.f32 16.0, %v2536_v4 }
  0x73   : > { %3329 = vst [vmem:[#allocation15_spill] sm:$0xff] %v2536_v4  ;;  %v1023_v17 = vsub.f32 %v2380_v40, %v2536_v4  ;;  %v2551_v15 = vfloor.f32 %v348_v5  ;;  %v1024_v20 = vsub.f32 %v2382_v41, %v2536_v4  ;;  %v411_v12 = vmul.f32 16.0, %v2544_v16 }
  0x74   : > { %3330 = vst [vmem:[#allocation16_spill] sm:$0xff] %v2544_v16  ;;  %v2555_v10 = vsub.f32 %v235_v7, %v395_v14  ;;  %v1147_v21 = vand.u32 2147483647, %v1019_v6  ;;  %v1083_v13 = vsub.f32 %v2380_v40, %v2544_v16  ;;  %v2560_v23 = vsub.f32 %v236_v11, %v396_v19 }
  0x75   : > { %3331 = vst [vmem:[#allocation17_spill] sm:$0xff] %v2551_v15  ;;  %v1151_v31 = vand.u32 2147483647, %v1023_v17  ;;  %v412_v24 = vmul.f32 16.0, %v2551_v15  ;;  %v1087_v32 = vsub.f32 %v2380_v40, %v2551_v15  ;;  %v2567_v7 = vsub.f32 %v251_v26, %v411_v12 }
  0x76   : > { %3332 = vst [vmem:[#allocation18_spill] sm:$0xff] %v2555_v10  ;;  %v498_v50 = vsub.f32 %v2372_v36, %v2555_v10  ;;  %v1275_v51 = vsub.f32 1.0, %v1147_v21  ;;  %v1211_v35 = vand.u32 2147483647, %v1083_v13  ;;  %v502_v52 = vsub.f32 %v2372_v36, %v2560_v23 }
  0x77   : > { %3333 = vst [vmem:[#allocation19_spill] sm:$0xff] %v2560_v23  ;;  %v1279_v54 = vsub.f32 1.0, %v1151_v31  ;;  %v2571_v57 = vsub.f32 %v252_v28, %v412_v24  ;;  %v1215_v11 = vand.u32 2147483647, %v1087_v32  ;;  %v562_v6 = vsub.f32 %v2372_v36, %v2567_v7 }
  0x78   : > { %3334 = vst [vmem:[#allocation20_spill] sm:$0xff] %v2567_v7  ;;  %v626_v5 = vand.u32 2147483647, %v498_v50  ;;  %v1403_v14 = vmax.f32 %v1275_v51, 0.0  ;;  %v1339_v19 = vsub.f32 1.0, %v1211_v35  ;;  %v499_v28 = vsub.f32 %v2374_v37, %v2555_v10 }
  0x79   : > { %3335 = vst [vmem:[#allocation21_spill] sm:$0xff] %v2571_v57  ;;  %v630_v17 = vand.u32 2147483647, %v502_v52  ;;  %v1407_v0 = vmax.f32 %v1279_v54, 0.0  ;;  %v566_v26 = vsub.f32 %v2372_v36, %v2571_v57  ;;  %v1343_v21 = vsub.f32 1.0, %v1215_v11 }
  0x7a   : > { %v754_v12 = vsub.f32 1.0, %v626_v5  ;;  %v690_v13 = vand.u32 2147483647, %v562_v6  ;;  %v1467_v33 = vmax.f32 %v1339_v19, 0.0  ;;  %v503_v50 = vsub.f32 %v2374_v37, %v2560_v23 }
  0x7b   : > { %v758_v31 = vsub.f32 1.0, %v630_v17  ;;  %v694_v24 = vand.u32 2147483647, %v566_v26  ;;  %v1471_v32 = vmax.f32 %v1343_v21, 0.0  ;;  %v627_v52 = vand.u32 2147483647, %v499_v28 }
  0x7c   : > { %v882_v51 = vmax.f32 %v754_v12, 0.0  ;;  %v818_v35 = vsub.f32 1.0, %v690_v13  ;;  %v1148_v54 = vand.u32 2147483647, %v1020_v9  ;;  %v631_v4 = vand.u32 2147483647, %v503_v50 }
  0x7d   : > { %v886_v18 = vmax.f32 %v758_v31, 0.0  ;;  %v822_v29 = vsub.f32 1.0, %v694_v24  ;;  %v1152_v11 = vand.u32 2147483647, %v1024_v20  ;;  %v755_v19 = vsub.f32 1.0, %v627_v52 }
  0x7e   : > { %v1531_v5 = vmul.f32 %v1403_v14, %v882_v51  ;;  %v946_v6 = vmax.f32 %v818_v35, 0.0  ;;  %v1276_v56 = vsub.f32 1.0, %v1148_v54  ;;  %v759_v17 = vsub.f32 1.0, %v631_v4 }
  0x7f   : > { %v1535_v25 = vmul.f32 %v1407_v0, %v886_v18  ;;  %v950_v10 = vmax.f32 %v822_v29, 0.0  ;;  %v1280_v26 = vsub.f32 1.0, %v1152_v11  ;;  %v883_v27 = vmax.f32 %v755_v19, 0.0 }
  0x80   : > { %v1595_v21 = vmul.f32 %v1467_v33, %v946_v6  ;;  %v1404_v59 = vmax.f32 %v1276_v56, 0.0  ;;  %v563_v12 = vsub.f32 %v2374_v37, %v2567_v7  ;;  %v887_v28 = vmax.f32 %v759_v17, 0.0 }
  0x81   : > { %v1639_v13 = vpack.c.bf16 %v1535_v25, %v1531_v5  ;;  %v1599_v9 = vmul.f32 %v1471_v32, %v950_v10  ;;  %v1408_v31 = vmax.f32 %v1280_v26, 0.0  ;;  %v567_v20 = vsub.f32 %v2374_v37, %v2571_v57 }
  0x82   : > { %v1532_v24 = vmul.f32 %v1404_v59, %v883_v27  ;;  %v691_v14 = vand.u32 2147483647, %v563_v12  ;;  %v1084_v0 = vsub.f32 %v2382_v41, %v2544_v16  ;;  %v1088_v56 = vsub.f32 %v2382_v41, %v2551_v15 }
  0x83   : > { %1697 = vmatpush.bf16.msra.mxu0 %v1639_v13  ;;  %v1671_v29 = vpack.c.bf16 %v1599_v9, %v1595_v21  ;;  %v1536_v33 = vmul.f32 %v1408_v31, %v887_v28  ;;  %v330_v4 = vmul.f32 0.0625, %v2531_v62  ;;  %v695_v25 = vand.u32 2147483647, %v567_v20 }
  0x84   : > { %v819_v18 = vsub.f32 1.0, %v691_v14  ;;  %v1212_v10 = vand.u32 2147483647, %v1084_v0  ;;  %v2591_v27 = vfloor.f32 %v2538_v8  ;;  %v1216_v32 = vand.u32 2147483647, %v1088_v56 }
  0x85   : > { %1711 = vmatpush.bf16.msra.mxu1 %v1671_v29  ;;  %v1640_v59 = vpack.c.bf16 %v1536_v33, %v1532_v24  ;;  %v2593_v50 = vfloor.f32 %v330_v4  ;;  %v250_v51 = vcvt.s32.f32 %v2534_v63  ;;  %v823_v35 = vsub.f32 1.0, %v695_v25 }
  0x86   : > { %3336 = vst [vmem:[#allocation22_spill] sm:$0xff] %v2591_v27  ;;  %v947_v52 = vmax.f32 %v819_v18, 0.0  ;;  %v1340_v54 = vsub.f32 1.0, %v1212_v10  ;;  %v393_v11 = vmul.f32 16.0, %v2591_v27  ;;  %v1344_v62 = vsub.f32 1.0, %v1216_v32 }
  0x87   : > { %3337 = vst [vmem:[#allocation23_spill] sm:$0xff] %v2593_v50  ;;  %1725 = vmatpush.bf16.msra.mxu2 %v1640_v59  ;;  %v394_v5 = vmul.f32 16.0, %v2593_v50  ;;  %v1011_v8 = vsub.f32 %v2380_v40, %v2591_v27  ;;  %v1015_v6 = vsub.f32 %v2380_v40, %v2593_v50  ;;  %v951_v19 = vmax.f32 %v823_v35, 0.0 }
  0x88   : > { %v1468_v17 = vmax.f32 %v1340_v54, 0.0  ;;  %v3338_v26 = vcvt.s32.f32 %v2515_v22  ;;  %v3340_v21 = vcvt.s32.f32 %v2523_v34  ;;  %v1472_v13 = vmax.f32 %v1344_v62, 0.0 }
  0x89   : > { %v3341_v9 = vcvt.s32.f32 %v2518_v30  ;;  %v1139_v31 = vand.u32 2147483647, %v1011_v8  ;;  %v1143_v24 = vand.u32 2147483647, %v1015_v6  ;;  %v314_v0 = vadd.f32 0.5, %v250_v51 }
  0x8a   : > { %v2604_v63 = vsub.f32 %v3338_v26, %v393_v11  ;;  %v313_v12 = vadd.f32 0.5, %v3340_v21  ;;  %v1596_v20 = vmul.f32 %v1468_v17, %v947_v52  ;;  %v1600_v33 = vmul.f32 %v1472_v13, %v951_v19 }
  0x8b   : > { %v2610_v28 = vsub.f32 %v3341_v9, %v394_v5  ;;  %v1267_v56 = vsub.f32 1.0, %v1139_v31  ;;  %v1271_v4 = vsub.f32 1.0, %v1143_v24  ;;  %v346_v18 = vmul.f32 0.0625, %v314_v0 }
  0x8c   : > { %3339 = vst [vmem:[#allocation24_spill] sm:$0xff] %v2604_v63  ;;  %v490_v14 = vsub.f32 %v2372_v36, %v2604_v63  ;;  %v345_v29 = vmul.f32 0.0625, %v313_v12  ;;  %v491_v30 = vsub.f32 %v2374_v37, %v2604_v63  ;;  %v1672_v59 = vpack.c.bf16 %v1600_v33, %v1596_v20 }
  0x8d   : > { %3342 = vst [vmem:[#allocation25_spill] sm:$0xff] %v2610_v28  ;;  %v494_v22 = vsub.f32 %v2372_v36, %v2610_v28  ;;  %v1395_v35 = vmax.f32 %v1267_v56, 0.0  ;;  %v1399_v52 = vmax.f32 %v1271_v4, 0.0  ;;  %v2620_v11 = vfloor.f32 %v346_v18 }
  0x8e   : > { %v618_v25 = vand.u32 2147483647, %v490_v14  ;;  %v2616_v10 = vfloor.f32 %v345_v29  ;;  %1739 = vmatpush.bf16.msra.mxu3 %v1672_v59  ;;  %v495_v6 = vsub.f32 %v2374_v37, %v2610_v28  ;;  %v619_v19 = vand.u32 2147483647, %v491_v30 }
  0x8f   : > { %v622_v32 = vand.u32 2147483647, %v494_v22  ;;  %3344 = vst [vmem:[#allocation27_spill] sm:$0xff] %v2620_v11  ;;  %v1012_v17 = vsub.f32 %v2382_v41, %v2591_v27  ;;  %v410_v21 = vmul.f32 16.0, %v2620_v11  ;;  %v3345_v12 = vcvt.s32.f32 %v2523_v34 }
  0x90   : > { %3343 = vst [vmem:[#allocation26_spill] sm:$0xff] %v2616_v10  ;;  %v746_v54 = vsub.f32 1.0, %v618_v25  ;;  %v409_v62 = vmul.f32 16.0, %v2616_v10  ;;  %v1075_v5 = vsub.f32 %v2380_v40, %v2616_v10  ;;  %v1079_v9 = vsub.f32 %v2380_v40, %v2620_v11 }
  0x91   : > { %v750_v8 = vsub.f32 1.0, %v622_v32  ;;  %v623_v20 = vand.u32 2147483647, %v495_v6  ;;  %v747_v14 = vsub.f32 1.0, %v619_v19  ;;  %v2636_v29 = vsub.f32 %v250_v51, %v410_v21 }
  0x92   : > { %v874_v26 = vmax.f32 %v746_v54, 0.0  ;;  %v2632_v13 = vsub.f32 %v3345_v12, %v409_v62  ;;  %v1203_v24 = vand.u32 2147483647, %v1075_v5  ;;  %v1207_v22 = vand.u32 2147483647, %v1079_v9 }
  0x93   : > { %v878_v31 = vmax.f32 %v750_v8, 0.0  ;;  %3347 = vst [vmem:[#allocation29_spill] sm:$0xff] %v2636_v29  ;;  %v751_v25 = vsub.f32 1.0, %v623_v20  ;;  %v875_v34 = vmax.f32 %v747_v14, 0.0  ;;  %v558_v18 = vsub.f32 %v2372_v36, %v2636_v29 }
  0x94   : > { %3346 = vst [vmem:[#allocation28_spill] sm:$0xff] %v2632_v13  ;;  %v1523_v0 = vmul.f32 %v1395_v35, %v874_v26  ;;  %v554_v33 = vsub.f32 %v2372_v36, %v2632_v13  ;;  %v1331_v4 = vsub.f32 1.0, %v1203_v24  ;;  %v1335_v59 = vsub.f32 1.0, %v1207_v22 }
  0x95   : > { %v1527_v56 = vmul.f32 %v1399_v52, %v878_v31  ;;  %v1016_v32 = vsub.f32 %v2382_v41, %v2593_v50  ;;  %v879_v51 = vmax.f32 %v751_v25, 0.0  ;;  %v1140_v62 = vand.u32 2147483647, %v1012_v17 }
  0x96   : > { %v682_v30 = vand.u32 2147483647, %v554_v33  ;;  %v1459_v35 = vmax.f32 %v1331_v4, 0.0  ;;  %v686_v5 = vand.u32 2147483647, %v558_v18  ;;  %v1463_v6 = vmax.f32 %v1335_v59, 0.0 }
  0x97   : > { %v1635_v54 = vpack.c.bf16 %v1527_v56, %v1523_v0  ;;  %v1144_v19 = vand.u32 2147483647, %v1016_v32  ;;  %v1268_v52 = vsub.f32 1.0, %v1140_v62  ;;  %v555_v26 = vsub.f32 %v2374_v37, %v2632_v13 }
  0x98   : > { %v810_v8 = vsub.f32 1.0, %v682_v30  ;;  %v559_v21 = vsub.f32 %v2374_v37, %v2636_v29  ;;  %v1076_v12 = vsub.f32 %v2382_v41, %v2616_v10  ;;  %v814_v9 = vsub.f32 1.0, %v686_v5 }
  0x99   : > { %1698 = vmatpush.bf16.msra.mxu0 %v1635_v54  ;;  %v1272_v24 = vsub.f32 1.0, %v1144_v19  ;;  %v1080_v17 = vsub.f32 %v2382_v41, %v2620_v11  ;;  %v1396_v20 = vmax.f32 %v1268_v52, 0.0  ;;  %v683_v14 = vand.u32 2147483647, %v555_v26 }
  0x9a   : > { %v938_v31 = vmax.f32 %v810_v8, 0.0  ;;  %v687_v0 = vand.u32 2147483647, %v559_v21  ;;  %v199_v33 = vadd.s32 48, %v2344_v1  ;;  %v942_v22 = vmax.f32 %v814_v9, 0.0 }
  0x9b   : > { %v1400_v4 = vmax.f32 %v1272_v24, 0.0  ;;  %v1204_v25 = vand.u32 2147483647, %v1076_v12  ;;  %v1524_v18 = vmul.f32 %v1396_v20, %v875_v34  ;;  %v811_v30 = vsub.f32 1.0, %v683_v14 }
  0x9c   : > { %v1587_v56 = vmul.f32 %v1459_v35, %v938_v31  ;;  %v815_v59 = vsub.f32 1.0, %v687_v0  ;;  %v1208_v32 = vand.u32 2147483647, %v1080_v17  ;;  %v1591_v54 = vmul.f32 %v1463_v6, %v942_v22 }
  0x9d   : > { %v1528_v62 = vmul.f32 %v1400_v4, %v879_v51  ;;  %v1332_v5 = vsub.f32 1.0, %v1204_v25  ;;  %v200_v8 = vadd.s32 56, %v2344_v1  ;;  %v939_v19 = vmax.f32 %v811_v30, 0.0 }
  0x9e   : > { %v943_v11 = vmax.f32 %v815_v59, 0.0  ;;  %v1336_v52 = vsub.f32 1.0, %v1208_v32  ;;  %v231_v26 = vcvt.s32.f32 %v199_v33  ;;  %v1667_v21 = vpack.c.bf16 %v1591_v54, %v1587_v56 }
  0x9f   : > { %v1636_v10 = vpack.c.bf16 %v1528_v62, %v1524_v18  ;;  %v1460_v29 = vmax.f32 %v1332_v5, 0.0  ;;  %v232_v9 = vcvt.s32.f32 %v200_v8  ;;  %v215_v34 = vadd.s32 176, %v2344_v1 }
  0xa0   : > { %v1464_v35 = vmax.f32 %v1336_v52, 0.0  ;;  %v295_v31 = vadd.f32 0.5, %v231_v26  ;;  %v216_v12 = vadd.s32 184, %v2344_v1  ;;  %1712 = vmatpush.bf16.msra.mxu1 %v1667_v21  ;;  %v2657_v24 = vadd.s32 32, %v2344_v1 }
  0xa1   : > { %1726 = vmatpush.bf16.msra.mxu2 %v1636_v10  ;;  %v1588_v51 = vmul.f32 %v1460_v29, %v939_v19  ;;  %v296_v6 = vadd.f32 0.5, %v232_v9  ;;  %v2660_v17 = vadd.s32 40, %v2344_v1  ;;  %v247_v0 = vcvt.s32.f32 %v215_v34 }
  0xa2   : > { %v1592_v20 = vmul.f32 %v1464_v35, %v943_v11  ;;  %v327_v14 = vmul.f32 0.0625, %v295_v31  ;;  %v248_v33 = vcvt.s32.f32 %v216_v12  ;;  %v3263_v56 = vcvt.s32.f32 %v2657_v24 }
  0xa3   : > { %v328_v22 = vmul.f32 0.0625, %v296_v6  ;;  %v3262_v4 = vcvt.s32.f32 %v2660_v17  ;;  %v2665_v25 = vadd.s32 160, %v2344_v1  ;;  %v311_v18 = vadd.f32 0.5, %v247_v0 }
  0xa4   : > { %v1668_v10 = vpack.c.bf16 %v1592_v20, %v1588_v51  ;;  %v2667_v29 = vfloor.f32 %v327_v14  ;;  %v312_v30 = vadd.f32 0.5, %v248_v33  ;;  %v2673_v11 = vadd.f32 0.5, %v3263_v56 }
  0xa5   : > { %v2669_v59 = vfloor.f32 %v328_v22  ;;  %v2677_v32 = vadd.f32 0.5, %v3262_v4  ;;  %v2680_v54 = vadd.s32 168, %v2344_v1  ;;  %v343_v8 = vmul.f32 0.0625, %v311_v18 }
  0xa6   : > { %3348 = vst [vmem:[#allocation30_spill] sm:$0xff] %v2667_v29  ;;  %1740 = vmatpush.bf16.msra.mxu3 %v1668_v10  ;;  %v391_v62 = vmul.f32 16.0, %v2667_v29  ;;  %v1003_v5 = vsub.f32 %v2380_v40, %v2667_v29  ;;  %v344_v19 = vmul.f32 0.0625, %v312_v30  ;;  %v1004_v35 = vsub.f32 %v2382_v41, %v2667_v29 }
  0xa7   : > { %3349 = vst [vmem:[#allocation31_spill] sm:$0xff] %v2669_v59  ;;  %v392_v52 = vmul.f32 16.0, %v2669_v59  ;;  %v1007_v21 = vsub.f32 %v2380_v40, %v2669_v59  ;;  %v1008_v31 = vsub.f32 %v2382_v41, %v2669_v59  ;;  %v2694_v51 = vfloor.f32 %v343_v8 }
  0xa8   : > { %v2692_v34 = vsub.f32 %v231_v26, %v391_v62  ;;  %v1131_v12 = vand.u32 2147483647, %v1003_v5  ;;  %v2696_v6 = vfloor.f32 %v344_v19  ;;  %v1132_v22 = vand.u32 2147483647, %v1004_v35 }
  0xa9   : > { %3351 = vst [vmem:[#allocation33_spill] sm:$0xff] %v2694_v51  ;;  %v2698_v20 = vsub.f32 %v232_v9, %v392_v52  ;;  %v1135_v14 = vand.u32 2147483647, %v1007_v21  ;;  %v1136_v10 = vand.u32 2147483647, %v1008_v31  ;;  %v407_v4 = vmul.f32 16.0, %v2694_v51 }
  0xaa   : > { %3350 = vst [vmem:[#allocation32_spill] sm:$0xff] %v2692_v34  ;;  %v482_v18 = vsub.f32 %v2372_v36, %v2692_v34  ;;  %v1259_v30 = vsub.f32 1.0, %v1131_v12  ;;  %v408_v56 = vmul.f32 16.0, %v2696_v6  ;;  %v1067_v5 = vsub.f32 %v2380_v40, %v2694_v51 }
  0xab   : > { %3352 = vst [vmem:[#allocation34_spill] sm:$0xff] %v2696_v6  ;;  %v486_v26 = vsub.f32 %v2372_v36, %v2698_v20  ;;  %v1263_v62 = vsub.f32 1.0, %v1135_v14  ;;  %v1071_v9 = vsub.f32 %v2380_v40, %v2696_v6  ;;  %v2710_v52 = vsub.f32 %v247_v0, %v407_v4 }
  0xac   : > { %3353 = vst [vmem:[#allocation35_spill] sm:$0xff] %v2698_v20  ;;  %v610_v8 = vand.u32 2147483647, %v482_v18  ;;  %v1387_v19 = vmax.f32 %v1259_v30, 0.0  ;;  %v2712_v21 = vsub.f32 %v248_v33, %v408_v56  ;;  %v1195_v12 = vand.u32 2147483647, %v1067_v5 }
  0xad   : > { %v614_v35 = vand.u32 2147483647, %v486_v26  ;;  %v1391_v31 = vmax.f32 %v1263_v62, 0.0  ;;  %v483_v59 = vsub.f32 %v2374_v37, %v2692_v34  ;;  %v546_v14 = vsub.f32 %v2372_v36, %v2710_v52 }
  0xae   : > { %3354 = vst [vmem:[#allocation36_spill] sm:$0xff] %v2712_v21  ;;  %v738_v29 = vsub.f32 1.0, %v610_v8  ;;  %v550_v13 = vsub.f32 %v2372_v36, %v2712_v21  ;;  %v1199_v50 = vand.u32 2147483647, %v1071_v9  ;;  %v1323_v30 = vsub.f32 1.0, %v1195_v12 }
  0xaf   : > { %v742_v18 = vsub.f32 1.0, %v614_v35  ;;  %v487_v0 = vsub.f32 %v2374_v37, %v2698_v20  ;;  %v611_v33 = vand.u32 2147483647, %v483_v59  ;;  %v674_v4 = vand.u32 2147483647, %v546_v14 }
  0xb0   : > { %v866_v56 = vmax.f32 %v738_v29, 0.0  ;;  %v678_v26 = vand.u32 2147483647, %v550_v13  ;;  %v1327_v62 = vsub.f32 1.0, %v1199_v50  ;;  %v1451_v34 = vmax.f32 %v1323_v30, 0.0 }
  0xb1   : > { %v870_v5 = vmax.f32 %v742_v18, 0.0  ;;  %v615_v8 = vand.u32 2147483647, %v487_v0  ;;  %v739_v27 = vsub.f32 1.0, %v611_v33  ;;  %v802_v63 = vsub.f32 1.0, %v674_v4 }
  0xb2   : > { %v1515_v28 = vmul.f32 %v1387_v19, %v866_v56  ;;  %v806_v15 = vsub.f32 1.0, %v678_v26  ;;  %v1455_v16 = vmax.f32 %v1327_v62, 0.0  ;;  %v1260_v12 = vsub.f32 1.0, %v1132_v22 }
  0xb3   : > { %v1519_v57 = vmul.f32 %v1391_v31, %v870_v5  ;;  %v743_v9 = vsub.f32 1.0, %v615_v8  ;;  %v867_v35 = vmax.f32 %v739_v27, 0.0  ;;  %v930_v7 = vmax.f32 %v802_v63, 0.0 }
  0xb4   : > { %v934_v23 = vmax.f32 %v806_v15, 0.0  ;;  %v1264_v20 = vsub.f32 1.0, %v1136_v10  ;;  %v547_v29 = vsub.f32 %v2374_v37, %v2710_v52  ;;  %v1388_v59 = vmax.f32 %v1260_v12, 0.0 }
  0xb5   : > { %v1631_v13 = vpack.c.bf16 %v1519_v57, %v1515_v28  ;;  %v871_v50 = vmax.f32 %v743_v9, 0.0  ;;  %v551_v14 = vsub.f32 %v2374_v37, %v2712_v21  ;;  %v1579_v19 = vmul.f32 %v1451_v34, %v930_v7 }
  0xb6   : > { %v1583_v18 = vmul.f32 %v1455_v16, %v934_v23  ;;  %v1392_v30 = vmax.f32 %v1264_v20, 0.0  ;;  %v675_v0 = vand.u32 2147483647, %v547_v29  ;;  %v1516_v31 = vmul.f32 %v1388_v59, %v867_v35 }
  0xb7   : > { %1699 = vmatpush.bf16.msra.mxu0 %v1631_v13  ;;  %v679_v27 = vand.u32 2147483647, %v551_v14  ;;  %v1068_v15 = vsub.f32 %v2382_v41, %v2694_v51  ;;  %v1072_v63 = vsub.f32 %v2382_v41, %v2696_v6  ;;  %v325_v10 = vmul.f32 0.0625, %v2673_v11 }
  0xb8   : > { %v1663_v22 = vpack.c.bf16 %v1583_v18, %v1579_v19  ;;  %v1520_v57 = vmul.f32 %v1392_v30, %v871_v50  ;;  %v803_v28 = vsub.f32 1.0, %v675_v0  ;;  %v326_v16 = vmul.f32 0.0625, %v2677_v32 }
  0xb9   : > { %v807_v33 = vsub.f32 1.0, %v679_v27  ;;  %v1196_v56 = vand.u32 2147483647, %v1068_v15  ;;  %v1200_v7 = vand.u32 2147483647, %v1072_v63  ;;  %v2732_v20 = vfloor.f32 %v325_v10 }
  0xba   : > { %1713 = vmatpush.bf16.msra.mxu1 %v1663_v22  ;;  %v1632_v23 = vpack.c.bf16 %v1520_v57, %v1516_v31  ;;  %v931_v34 = vmax.f32 %v803_v28, 0.0  ;;  %v245_v4 = vcvt.s32.f32 %v2665_v25  ;;  %v2735_v8 = vfloor.f32 %v326_v16 }
  0xbb   : > { %3355 = vst [vmem:[#allocation37_spill] sm:$0xff] %v2732_v20  ;;  %v935_v26 = vmax.f32 %v807_v33, 0.0  ;;  %v1324_v62 = vsub.f32 1.0, %v1196_v56  ;;  %v1328_v5 = vsub.f32 1.0, %v1200_v7  ;;  %v389_v11 = vmul.f32 16.0, %v2732_v20 }
  0xbc   : > { %3356 = vst [vmem:[#allocation38_spill] sm:$0xff] %v2735_v8  ;;  %1727 = vmatpush.bf16.msra.mxu2 %v1632_v23  ;;  %v995_v9 = vsub.f32 %v2380_v40, %v2732_v20  ;;  %v246_v32 = vcvt.s32.f32 %v2680_v54  ;;  %v309_v35 = vadd.f32 0.5, %v245_v4  ;;  %v390_v13 = vmul.f32 16.0, %v2735_v8 }
  0xbd   : > { %v1452_v12 = vmax.f32 %v1324_v62, 0.0  ;;  %v1456_v29 = vmax.f32 %v1328_v5, 0.0  ;;  %v999_v25 = vsub.f32 %v2380_v40, %v2735_v8  ;;  %v3357_v50 = vcvt.s32.f32 %v2657_v24 }
  0xbe   : > { %v1123_v14 = vand.u32 2147483647, %v995_v9  ;;  %v310_v19 = vadd.f32 0.5, %v246_v32  ;;  %v341_v18 = vmul.f32 0.0625, %v309_v35  ;;  %v3359_v31 = vcvt.s32.f32 %v2660_v17 }
  0xbf   : > { %v2746_v59 = vsub.f32 %v3357_v50, %v389_v11  ;;  %v1580_v30 = vmul.f32 %v1452_v12, %v931_v34  ;;  %v1584_v0 = vmul.f32 %v1456_v29, %v935_v26  ;;  %v1127_v27 = vand.u32 2147483647, %v999_v25 }
  0xc0   : > { %v2750_v54 = vsub.f32 %v3359_v31, %v390_v13  ;;  %v1251_v63 = vsub.f32 1.0, %v1123_v14  ;;  %v342_v22 = vmul.f32 0.0625, %v310_v19  ;;  %v2754_v57 = vfloor.f32 %v341_v18 }
  0xc1   : > { %3358 = vst [vmem:[#allocation39_spill] sm:$0xff] %v2746_v59  ;;  %v474_v15 = vsub.f32 %v2372_v36, %v2746_v59  ;;  %v1664_v24 = vpack.c.bf16 %v1584_v0, %v1580_v30  ;;  %v1255_v10 = vsub.f32 1.0, %v1127_v27  ;;  %v475_v33 = vsub.f32 %v2374_v37, %v2746_v59 }
  0xc2   : > { %3360 = vst [vmem:[#allocation40_spill] sm:$0xff] %v2750_v54  ;;  %v478_v28 = vsub.f32 %v2372_v36, %v2750_v54  ;;  %v1379_v17 = vmax.f32 %v1251_v63, 0.0  ;;  %v2760_v7 = vfloor.f32 %v342_v22  ;;  %v405_v16 = vmul.f32 16.0, %v2754_v57 }
  0xc3   : > { %3361 = vst [vmem:[#allocation41_spill] sm:$0xff] %v2754_v57  ;;  %v602_v56 = vand.u32 2147483647, %v474_v15  ;;  %1741 = vmatpush.bf16.msra.mxu3 %v1664_v24  ;;  %v1383_v34 = vmax.f32 %v1255_v10, 0.0  ;;  %v1059_v26 = vsub.f32 %v2380_v40, %v2754_v57  ;;  %v479_v62 = vsub.f32 %v2374_v37, %v2750_v54 }
  0xc4   : > { %3362 = vst [vmem:[#allocation42_spill] sm:$0xff] %v2760_v7  ;;  %v606_v23 = vand.u32 2147483647, %v478_v28  ;;  %v406_v11 = vmul.f32 16.0, %v2760_v7  ;;  %v2768_v9 = vsub.f32 %v245_v4, %v405_v16  ;;  %v1063_v35 = vsub.f32 %v2380_v40, %v2760_v7 }
  0xc5   : > { %v730_v5 = vsub.f32 1.0, %v602_v56  ;;  %v1187_v29 = vand.u32 2147483647, %v1059_v26  ;;  %v603_v13 = vand.u32 2147483647, %v475_v33  ;;  %v996_v25 = vsub.f32 %v2382_v41, %v2732_v20 }
  0xc6   : > { %3363 = vst [vmem:[#allocation43_spill] sm:$0xff] %v2768_v9  ;;  %v734_v12 = vsub.f32 1.0, %v606_v23  ;;  %v2774_v14 = vsub.f32 %v246_v32, %v406_v11  ;;  %v538_v19 = vsub.f32 %v2372_v36, %v2768_v9  ;;  %v1191_v18 = vand.u32 2147483647, %v1063_v35 }
  0xc7   : > { %v858_v50 = vmax.f32 %v730_v5, 0.0  ;;  %v1315_v0 = vsub.f32 1.0, %v1187_v29  ;;  %v607_v4 = vand.u32 2147483647, %v479_v62  ;;  %v731_v31 = vsub.f32 1.0, %v603_v13 }
  0xc8   : > { %3364 = vst [vmem:[#allocation44_spill] sm:$0xff] %v2774_v14  ;;  %v862_v30 = vmax.f32 %v734_v12, 0.0  ;;  %v542_v15 = vsub.f32 %v2372_v36, %v2774_v14  ;;  %v666_v63 = vand.u32 2147483647, %v538_v19  ;;  %v1319_v22 = vsub.f32 1.0, %v1191_v18 }
  0xc9   : > { %v1507_v27 = vmul.f32 %v1379_v17, %v858_v50  ;;  %v1443_v28 = vmax.f32 %v1315_v0, 0.0  ;;  %v735_v10 = vsub.f32 1.0, %v607_v4  ;;  %v859_v33 = vmax.f32 %v731_v31, 0.0 }
  0xca   : > { %v1511_v24 = vmul.f32 %v1383_v34, %v862_v30  ;;  %v670_v32 = vand.u32 2147483647, %v542_v15  ;;  %v794_v56 = vsub.f32 1.0, %v666_v63  ;;  %v1447_v16 = vmax.f32 %v1319_v22, 0.0 }
  0xcb   : > { %v1000_v23 = vsub.f32 %v2382_v41, %v2735_v8  ;;  %v863_v5 = vmax.f32 %v735_v10, 0.0  ;;  %v1124_v62 = vand.u32 2147483647, %v996_v25  ;;  %v539_v17 = vsub.f32 %v2374_v37, %v2768_v9 }
  0xcc   : > { %v1627_v26 = vpack.c.bf16 %v1511_v24, %v1507_v27  ;;  %v798_v11 = vsub.f32 1.0, %v670_v32  ;;  %v922_v35 = vmax.f32 %v794_v56, 0.0  ;;  %v543_v34 = vsub.f32 %v2374_v37, %v2774_v14 }
  0xcd   : > { %v1128_v12 = vand.u32 2147483647, %v1000_v23  ;;  %v1252_v29 = vsub.f32 1.0, %v1124_v62  ;;  %v667_v13 = vand.u32 2147483647, %v539_v17  ;;  %v1060_v50 = vsub.f32 %v2382_v41, %v2754_v57 }
  0xce   : > { %1700 = vmatpush.bf16.msra.mxu0 %v1627_v26  ;;  %v1064_v19 = vsub.f32 %v2382_v41, %v2760_v7  ;;  %v926_v18 = vmax.f32 %v798_v11, 0.0  ;;  %v1571_v25 = vmul.f32 %v1443_v28, %v922_v35  ;;  %v671_v0 = vand.u32 2147483647, %v543_v34 }
  0xcf   : > { %v1256_v30 = vsub.f32 1.0, %v1128_v12  ;;  %v1380_v4 = vmax.f32 %v1252_v29, 0.0  ;;  %v795_v31 = vsub.f32 1.0, %v667_v13  ;;  %v1188_v27 = vand.u32 2147483647, %v1060_v50 }
  0xd0   : > { %v1192_v15 = vand.u32 2147483647, %v1064_v19  ;;  %v1575_v63 = vmul.f32 %v1447_v16, %v926_v18  ;;  %v799_v24 = vsub.f32 1.0, %v671_v0  ;;  %v195_v10 = vadd.s32 16, %v2344_v1 }
  0xd1   : > { %v1384_v22 = vmax.f32 %v1256_v30, 0.0  ;;  %v1508_v32 = vmul.f32 %v1380_v4, %v859_v33  ;;  %v923_v56 = vmax.f32 %v795_v31, 0.0  ;;  %v1316_v23 = vsub.f32 1.0, %v1188_v27 }
  0xd2   : > { %v1320_v26 = vsub.f32 1.0, %v1192_v15  ;;  %v1659_v62 = vpack.c.bf16 %v1575_v63, %v1571_v25  ;;  %v927_v7 = vmax.f32 %v799_v24, 0.0  ;;  %v196_v28 = vadd.s32 24, %v2344_v1 }
  0xd3   : > { %v1512_v17 = vmul.f32 %v1384_v22, %v863_v5  ;;  %v1444_v11 = vmax.f32 %v1316_v23, 0.0  ;;  %v227_v12 = vcvt.s32.f32 %v195_v10  ;;  %v211_v34 = vadd.s32 144, %v2344_v1 }
  0xd4   : > { %v1448_v35 = vmax.f32 %v1320_v26, 0.0  ;;  %1714 = vmatpush.bf16.msra.mxu1 %v1659_v62  ;;  %v228_v29 = vcvt.s32.f32 %v196_v28  ;;  %v212_v13 = vadd.s32 152, %v2344_v1  ;;  %v194_v33 = vadd.s32 8, %v2344_v1 }
  0xd5   : > { %v1628_v16 = vpack.c.bf16 %v1512_v17, %v1508_v32  ;;  %v1572_v50 = vmul.f32 %v1444_v11, %v923_v56  ;;  %v291_v18 = vadd.f32 0.5, %v227_v12  ;;  %v243_v25 = vcvt.s32.f32 %v211_v34 }
  0xd6   : > { %v1576_v19 = vmul.f32 %v1448_v35, %v927_v7  ;;  %v292_v5 = vadd.f32 0.5, %v228_v29  ;;  %v244_v30 = vcvt.s32.f32 %v212_v13  ;;  %v2796_v0 = vcvt.s32.f32 %v2344_v1 }
  0xd7   : > { %1728 = vmatpush.bf16.msra.mxu2 %v1628_v16  ;;  %v2798_v4 = vcvt.s32.f32 %v194_v33  ;;  %v323_v27 = vmul.f32 0.0625, %v291_v18  ;;  %v307_v15 = vadd.f32 0.5, %v243_v25  ;;  %v2801_v63 = vadd.s32 128, %v2344_v1 }
  0xd8   : > { %v1660_v31 = vpack.c.bf16 %v1576_v19, %v1572_v50  ;;  %v324_v22 = vmul.f32 0.0625, %v292_v5  ;;  %v308_v24 = vadd.f32 0.5, %v244_v30  ;;  %v289_v7 = vadd.f32 0.5, %v2796_v0 }
  0xd9   : > { %v290_v10 = vadd.f32 0.5, %v2798_v4  ;;  %v2805_v32 = vfloor.f32 %v323_v27  ;;  %v339_v56 = vmul.f32 0.0625, %v307_v15  ;;  %v2808_v23 = vadd.s32 136, %v2344_v1 }
  0xda   : > { %1742 = vmatpush.bf16.msra.mxu3 %v1660_v31  ;;  %v2811_v62 = vfloor.f32 %v324_v22  ;;  %v340_v17 = vmul.f32 0.0625, %v308_v24  ;;  %v2813_v28 = vmul.f32 0.0625, %v289_v7 }
  0xdb   : > { %3365 = vst [vmem:[#allocation45_spill] sm:$0xff] %v2805_v32  ;;  %v2815_v11 = vmul.f32 0.0625, %v290_v10  ;;  %v387_v35 = vmul.f32 16.0, %v2805_v32  ;;  %v987_v34 = vsub.f32 %v2380_v40, %v2805_v32  ;;  %v2820_v16 = vfloor.f32 %v339_v56 }
  0xdc   : > { %3366 = vst [vmem:[#allocation46_spill] sm:$0xff] %v2811_v62  ;;  %v988_v1 = vsub.f32 %v2382_v41, %v2805_v32  ;;  %v388_v13 = vmul.f32 16.0, %v2811_v62  ;;  %v991_v33 = vsub.f32 %v2380_v40, %v2811_v62  ;;  %v2827_v50 = vfloor.f32 %v340_v17 }
  0xdd   : > { %v992_v19 = vsub.f32 %v2382_v41, %v2811_v62  ;;  %v2831_v18 = vsub.f32 %v227_v12, %v387_v35  ;;  %v1115_v5 = vand.u32 2147483647, %v987_v34  ;;  %v403_v31 = vmul.f32 16.0, %v2820_v16 }
  0xde   : > { %v1051_v27 = vsub.f32 %v2380_v40, %v2820_v16  ;;  %v2836_v15 = vsub.f32 %v228_v29, %v388_v13  ;;  %v1119_v22 = vand.u32 2147483647, %v991_v33  ;;  %v404_v24 = vmul.f32 16.0, %v2827_v50 }
  0xdf   : > { %3367 = vst [vmem:[#allocation47_spill] sm:$0xff] %v2831_v18  ;;  %v1055_v7 = vsub.f32 %v2380_v40, %v2827_v50  ;;  %v466_v10 = vsub.f32 %v2372_v36, %v2831_v18  ;;  %v1243_v56 = vsub.f32 1.0, %v1115_v5  ;;  %v2843_v12 = vsub.f32 %v243_v25, %v403_v31 }
  0xe0   : > { %v1179_v17 = vand.u32 2147483647, %v1051_v27  ;;  %v470_v35 = vsub.f32 %v2372_v36, %v2836_v15  ;;  %v1247_v34 = vsub.f32 1.0, %v1119_v22  ;;  %v2847_v26 = vsub.f32 %v244_v30, %v404_v24 }
  0xe1   : > { %v1183_v29 = vand.u32 2147483647, %v1055_v7  ;;  %v594_v13 = vand.u32 2147483647, %v466_v10  ;;  %v1371_v33 = vmax.f32 %v1243_v56, 0.0  ;;  %v530_v62 = vsub.f32 %v2372_v36, %v2843_v12 }
  0xe2   : > { %v1307_v32 = vsub.f32 1.0, %v1179_v17  ;;  %v598_v57 = vand.u32 2147483647, %v470_v35  ;;  %v1375_v14 = vmax.f32 %v1247_v34, 0.0  ;;  %v534_v25 = vsub.f32 %v2372_v36, %v2847_v26 }
  0xe3   : > { %v1311_v5 = vsub.f32 1.0, %v1183_v29  ;;  %v722_v31 = vsub.f32 1.0, %v594_v13  ;;  %v658_v27 = vand.u32 2147483647, %v530_v62  ;;  %v467_v30 = vsub.f32 %v2374_v37, %v2831_v18 }
  0xe4   : > { %v1435_v9 = vmax.f32 %v1307_v32, 0.0  ;;  %v726_v22 = vsub.f32 1.0, %v598_v57  ;;  %v662_v24 = vand.u32 2147483647, %v534_v25  ;;  %v471_v10 = vsub.f32 %v2374_v37, %v2836_v15 }
  0xe5   : > { %v1439_v7 = vmax.f32 %v1311_v5, 0.0  ;;  %v850_v56 = vmax.f32 %v722_v31, 0.0  ;;  %v786_v17 = vsub.f32 1.0, %v658_v27  ;;  %v595_v35 = vand.u32 2147483647, %v467_v30 }
  0xe6   : > { %v1116_v34 = vand.u32 2147483647, %v988_v1  ;;  %v854_v8 = vmax.f32 %v726_v22, 0.0  ;;  %v790_v20 = vsub.f32 1.0, %v662_v24  ;;  %v599_v54 = vand.u32 2147483647, %v471_v10 }
  0xe7   : > { %v1120_v29 = vand.u32 2147483647, %v992_v19  ;;  %v1499_v13 = vmul.f32 %v1371_v33, %v850_v56  ;;  %v914_v62 = vmax.f32 %v786_v17, 0.0  ;;  %v723_v32 = vsub.f32 1.0, %v595_v35 }
  0xe8   : > { %v1244_v59 = vsub.f32 1.0, %v1116_v34  ;;  %v1503_v6 = vmul.f32 %v1375_v14, %v854_v8  ;;  %v918_v18 = vmax.f32 %v790_v20, 0.0  ;;  %v727_v57 = vsub.f32 1.0, %v599_v54 }
  0xe9   : > { %v1248_v25 = vsub.f32 1.0, %v1120_v29  ;;  %v1563_v5 = vmul.f32 %v1435_v9, %v914_v62  ;;  %v851_v51 = vmax.f32 %v723_v32, 0.0  ;;  %v531_v31 = vsub.f32 %v2374_v37, %v2843_v12 }
  0xea   : > { %v1372_v21 = vmax.f32 %v1244_v59, 0.0  ;;  %v1623_v27 = vpack.c.bf16 %v1503_v6, %v1499_v13  ;;  %v1567_v1 = vmul.f32 %v1439_v7, %v918_v18  ;;  %v855_v30 = vmax.f32 %v727_v57, 0.0 }
  0xeb   : > { %v1376_v22 = vmax.f32 %v1248_v25, 0.0  ;;  %v535_v19 = vsub.f32 %v2374_v37, %v2847_v26  ;;  %v659_v33 = vand.u32 2147483647, %v531_v31  ;;  %v1052_v20 = vsub.f32 %v2382_v41, %v2820_v16 }
  0xec   : > { %v1500_v24 = vmul.f32 %v1372_v21, %v851_v51  ;;  %1701 = vmatpush.bf16.msra.mxu0 %v1623_v27  ;;  %v1655_v8 = vpack.c.bf16 %v1567_v1, %v1563_v5  ;;  %v1056_v59 = vsub.f32 %v2382_v41, %v2827_v50  ;;  %v2866_v9 = vfloor.f32 %v2813_v28 }
  0xed   : > { %v1504_v54 = vmul.f32 %v1376_v22, %v855_v30  ;;  %v663_v6 = vand.u32 2147483647, %v535_v19  ;;  %v787_v14 = vsub.f32 1.0, %v659_v33  ;;  %v1180_v18 = vand.u32 2147483647, %v1052_v20 }
  0xee   : > { %v2869_v51 = vfloor.f32 %v2815_v11  ;;  %1715 = vmatpush.bf16.msra.mxu1 %v1655_v8  ;;  %v1184_v7 = vand.u32 2147483647, %v1056_v59  ;;  %v385_v10 = vmul.f32 16.0, %v2866_v9  ;;  %v979_v56 = vsub.f32 %v2380_v40, %v2866_v9 }
  0xef   : > { %v1624_v21 = vpack.c.bf16 %v1504_v54, %v1500_v24  ;;  %v791_v17 = vsub.f32 1.0, %v663_v6  ;;  %v915_v35 = vmax.f32 %v787_v14, 0.0  ;;  %v1308_v34 = vsub.f32 1.0, %v1180_v18 }
  0xf0   : > { %v386_v28 = vmul.f32 16.0, %v2869_v51  ;;  %v1312_v29 = vsub.f32 1.0, %v1184_v7  ;;  %v2876_v13 = vsub.f32 %v2796_v0, %v385_v10  ;;  %v983_v11 = vsub.f32 %v2380_v40, %v2869_v51 }
  0xf1   : > { %1729 = vmatpush.bf16.msra.mxu2 %v1624_v21  ;;  %v1107_v62 = vand.u32 2147483647, %v979_v56  ;;  %v919_v32 = vmax.f32 %v791_v17, 0.0  ;;  %v1436_v57 = vmax.f32 %v1308_v34, 0.0  ;;  %v242_v5 = vcvt.s32.f32 %v2808_v23 }
  0xf2   : > { %v2881_v25 = vsub.f32 %v2798_v4, %v386_v28  ;;  %v1440_v31 = vmax.f32 %v1312_v29, 0.0  ;;  %v458_v27 = vsub.f32 %v2372_v36, %v2876_v13  ;;  %v1111_v1 = vand.u32 2147483647, %v983_v11 }
  0xf3   : > { %v1235_v30 = vsub.f32 1.0, %v1107_v62  ;;  %v1564_v22 = vmul.f32 %v1436_v57, %v915_v35  ;;  %v3368_v19 = vcvt.s32.f32 %v2801_v63  ;;  %v306_v20 = vadd.f32 0.5, %v242_v5 }
  0xf4   : > { %v462_v24 = vsub.f32 %v2372_v36, %v2881_v25  ;;  %v1568_v8 = vmul.f32 %v1440_v31, %v919_v32  ;;  %v586_v54 = vand.u32 2147483647, %v458_v27  ;;  %v1239_v59 = vsub.f32 1.0, %v1111_v1 }
  0xf5   : > { %v305_v33 = vadd.f32 0.5, %v3368_v19  ;;  %v1363_v6 = vmax.f32 %v1235_v30, 0.0  ;;  %v338_v18 = vmul.f32 0.0625, %v306_v20  ;;  %v459_v21 = vsub.f32 %v2374_v37, %v2876_v13 }
  0xf6   : > { %v590_v14 = vand.u32 2147483647, %v462_v24  ;;  %v1656_v7 = vpack.c.bf16 %v1568_v8, %v1564_v22  ;;  %v714_v10 = vsub.f32 1.0, %v586_v54  ;;  %v1367_v56 = vmax.f32 %v1239_v59, 0.0 }
  0xf7   : > { %v337_v23 = vmul.f32 0.0625, %v305_v33  ;;  %v463_v17 = vsub.f32 %v2374_v37, %v2881_v25  ;;  %v2896_v28 = vfloor.f32 %v338_v18  ;;  %v587_v29 = vand.u32 2147483647, %v459_v21 }
  0xf8   : > { %v718_v35 = vsub.f32 1.0, %v590_v14  ;;  %1743 = vmatpush.bf16.msra.mxu3 %v1656_v7  ;;  %v842_v11 = vmax.f32 %v714_v10, 0.0  ;;  %v980_v32 = vsub.f32 %v2382_v41, %v2866_v9  ;;  %v984_v57 = vsub.f32 %v2382_v41, %v2869_v51 }
  0xf9   : > { %v2894_v34 = vfloor.f32 %v337_v23  ;;  %v591_v62 = vand.u32 2147483647, %v463_v17  ;;  %v402_v1 = vmul.f32 16.0, %v2896_v28  ;;  %v1047_v24 = vsub.f32 %v2380_v40, %v2896_v28 }
  0xfa   : > { %v846_v31 = vmax.f32 %v718_v35, 0.0  ;;  %v1491_v22 = vmul.f32 %v1363_v6, %v842_v11  ;;  %v715_v19 = vsub.f32 1.0, %v587_v29  ;;  %v3369_v8 = vcvt.s32.f32 %v2801_v63 }
  0xfb   : > { %v401_v27 = vmul.f32 16.0, %v2894_v34  ;;  %v1043_v30 = vsub.f32 %v2380_v40, %v2894_v34  ;;  %v719_v33 = vsub.f32 1.0, %v591_v62  ;;  %v2912_v59 = vsub.f32 %v242_v5, %v402_v1 }
  0xfc   : > { %v1495_v20 = vmul.f32 %v1367_v56, %v846_v31  ;;  %v1175_v23 = vand.u32 2147483647, %v1047_v24  ;;  %v843_v18 = vmax.f32 %v715_v19, 0.0  ;;  %v1108_v7 = vand.u32 2147483647, %v980_v32 }
  0xfd   : > { %v2910_v54 = vsub.f32 %v3369_v8, %v401_v27  ;;  %v1171_v14 = vand.u32 2147483647, %v1043_v30  ;;  %v847_v21 = vmax.f32 %v719_v33, 0.0  ;;  %v526_v40 = vsub.f32 %v2372_v36, %v2912_v59 }
  0xfe   : > { %v1619_v10 = vpack.c.bf16 %v1495_v20, %v1491_v22  ;;  %v1303_v56 = vsub.f32 1.0, %v1175_v23  ;;  %v1112_v35 = vand.u32 2147483647, %v984_v57  ;;  %v1236_v63 = vsub.f32 1.0, %v1108_v7 }
  0xff   : > { %v522_v6 = vsub.f32 %v2372_v36, %v2910_v54  ;;  %v1299_v17 = vsub.f32 1.0, %v1171_v14  ;;  %v523_v5 = vsub.f32 %v2374_v37, %v2910_v54  ;;  %v654_v11 = vand.u32 2147483647, %v526_v40 }
 0x100   : > { %1702 = vmatpush.bf16.msra.mxu0 %v1619_v10  ;;  %v527_v32 = vsub.f32 %v2374_v37, %v2912_v59  ;;  %v1431_v31 = vmax.f32 %v1303_v56, 0.0  ;;  %v1240_v27 = vsub.f32 1.0, %v1112_v35  ;;  %v1364_v1 = vmax.f32 %v1236_v63, 0.0 }
 0x101   : > { %v650_v29 = vand.u32 2147483647, %v522_v6  ;;  %v1427_v62 = vmax.f32 %v1299_v17, 0.0  ;;  %v651_v30 = vand.u32 2147483647, %v523_v5  ;;  %v782_v36 = vsub.f32 1.0, %v654_v11 }
 0x102   : > { %v655_v24 = vand.u32 2147483647, %v527_v32  ;;  %v1044_v57 = vsub.f32 %v2382_v41, %v2894_v34  ;;  %v1368_v19 = vmax.f32 %v1240_v27, 0.0  ;;  %v1492_v33 = vmul.f32 %v1364_v1, %v843_v18 }
 0x103   : > { %v778_v22 = vsub.f32 1.0, %v650_v29  ;;  %v779_v20 = vsub.f32 1.0, %v651_v30  ;;  %v1048_v8 = vsub.f32 %v2382_v41, %v2896_v28  ;;  %v910_v23 = vmax.f32 %v782_v36, 0.0 }
 0x104   : > { %v783_v7 = vsub.f32 1.0, %v655_v24  ;;  %v1172_v37 = vand.u32 2147483647, %v1044_v57  ;;  %v1496_v10 = vmul.f32 %v1368_v19, %v847_v21  ;;  %v516_v17 = vsub.f32 %v2376_v38, %v2420_v60 }
 0x105   : > { %v906_v14 = vmax.f32 %v778_v22, 0.0  ;;  %v907_v6 = vmax.f32 %v779_v20, 0.0  ;;  %v1176_v40 = vand.u32 2147483647, %v1048_v8  ;;  %v1559_v35 = vmul.f32 %v1431_v31, %v910_v23 }
 0x106   : > { %v911_v63 = vmax.f32 %v783_v7, 0.0  ;;  %v1300_v5 = vsub.f32 1.0, %v1172_v37  ;;  %v1620_v29 = vpack.c.bf16 %v1496_v10, %v1492_v33  ;;  %v520_v11 = vsub.f32 %v2376_v38, %v2422_v61 }
 0x107   : > { %v1555_v56 = vmul.f32 %v1427_v62, %v906_v14  ;;  %v1304_v18 = vsub.f32 1.0, %v1176_v40  ;;  %v644_v41 = vand.u32 2147483647, %v516_v17  ;;  %v1037_v21 = vsub.f32 %v2384_v42, %v2388_v44 }
 0x108   : > { %v1428_v27 = vmax.f32 %v1300_v5, 0.0  ;;  %v1041_v1 = vsub.f32 %v2384_v42, %v2390_v45  ;;  %1730 = vmatpush.bf16.msra.mxu2 %v1620_v29  ;;  %v648_v62 = vand.u32 2147483647, %v520_v11  ;;  %v580_v22 = vsub.f32 %v2376_v38, %v2424_v2 }
 0x109   : > { %v1651_v32 = vpack.c.bf16 %v1559_v35, %v1555_v56  ;;  %v1432_v30 = vmax.f32 %v1304_v18, 0.0  ;;  %v772_v31 = vsub.f32 1.0, %v644_v41  ;;  %v1165_v24 = vand.u32 2147483647, %v1037_v21 }
 0x10a   : > { %v1556_v36 = vmul.f32 %v1428_v27, %v907_v6  ;;  %v1169_v57 = vand.u32 2147483647, %v1041_v1  ;;  %v584_v19 = vsub.f32 %v2376_v38, %v2426_v3  ;;  %v776_v20 = vsub.f32 1.0, %v648_v62 }
 0x10b   : > { %1716 = vmatpush.bf16.msra.mxu1 %v1651_v32  ;;  %v1560_v33 = vmul.f32 %v1432_v30, %v911_v63  ;;  %v900_v8 = vmax.f32 %v772_v31, 0.0  ;;  %v708_v14 = vand.u32 2147483647, %v580_v22  ;;  %v1293_v23 = vsub.f32 1.0, %v1165_v24 }
 0x10c   : > { %v1297_v7 = vsub.f32 1.0, %v1169_v57  ;;  %v712_v37 = vand.u32 2147483647, %v584_v19  ;;  %v1101_v10 = vsub.f32 %v2384_v42, %v2392_v46  ;;  %v904_v17 = vmax.f32 %v776_v20, 0.0 }
 0x10d   : > { %v1652_v40 = vpack.c.bf16 %v1560_v33, %v1556_v36  ;;  %v836_v56 = vsub.f32 1.0, %v708_v14  ;;  %v1105_v6 = vsub.f32 %v2384_v42, %v2394_v47  ;;  %v1421_v35 = vmax.f32 %v1293_v23, 0.0  ;;  %v2016_v33 = vld [vmem:[#allocation2] sm:$0xf] }
 0x10e   : > { %v1425_v5 = vmax.f32 %v1297_v7, 0.0  ;;  %v840_v29 = vsub.f32 1.0, %v712_v37  ;;  %v1229_v18 = vand.u32 2147483647, %v1101_v10  ;;  %v517_v41 = vsub.f32 %v2378_v39, %v2420_v60  ;;  %v2028_v10 = vld [vmem:[#allocation2 + $0x4] sm:$0xf0] }
 0x10f   : > { %1744 = vmatpush.bf16.msra.mxu3 %v1652_v40  ;;  %v964_v63 = vmax.f32 %v836_v56, 0.0  ;;  %v1233_v11 = vand.u32 2147483647, %v1105_v6  ;;  %v521_v32 = vsub.f32 %v2378_v39, %v2422_v61  ;;  %v1549_v27 = vmul.f32 %v1421_v35, %v900_v8  ;;  %v2027_v6 = vld [vmem:[#allocation2 + $0x4] sm:$0xf] }
 0x110   : > { %v1553_v21 = vmul.f32 %v1425_v5, %v904_v17  ;;  %v968_v1 = vmax.f32 %v840_v29, 0.0  ;;  %v1357_v30 = vsub.f32 1.0, %v1229_v18  ;;  %v645_v31 = vand.u32 2147483647, %v517_v41  ;;  %v2018_v18 = vld [vmem:[#allocation2 + $0x8] sm:$0xf0] }
 0x111   : > { %v1361_v62 = vsub.f32 1.0, %v1233_v11  ;;  %v649_v22 = vand.u32 2147483647, %v521_v32  ;;  %v1038_v36 = vsub.f32 %v2386_v43, %v2388_v44  ;;  %v1042_v19 = vsub.f32 %v2386_v43, %v2390_v45 }
 0x112   : > { %v1649_v24 = vpack.c.bf16 %v1553_v21, %v1549_v27  ;;  %v1485_v57 = vmax.f32 %v1357_v30, 0.0  ;;  %v581_v60 = vsub.f32 %v2378_v39, %v2424_v2  ;;  %v773_v20 = vsub.f32 1.0, %v645_v31 }
 0x113   : > { %v1489_v61 = vmax.f32 %v1361_v62, 0.0  ;;  %v777_v8 = vsub.f32 1.0, %v649_v22  ;;  %v1166_v14 = vand.u32 2147483647, %v1038_v36  ;;  %v1170_v7 = vand.u32 2147483647, %v1042_v19 }
 0x114   : > { %1751 = vmatpush.bf16.msrb.mxu0 %v1649_v24  ;;  %v1613_v23 = vmul.f32 %v1485_v57, %v964_v63  ;;  %v585_v37 = vsub.f32 %v2378_v39, %v2426_v3  ;;  %v709_v44 = vand.u32 2147483647, %v581_v60  ;;  %v901_v17 = vmax.f32 %v773_v20, 0.0 }
 0x115   : > { %v1617_v40 = vmul.f32 %v1489_v61, %v968_v1  ;;  %v905_v56 = vmax.f32 %v777_v8, 0.0  ;;  %v1294_v45 = vsub.f32 1.0, %v1166_v14  ;;  %v1298_v35 = vsub.f32 1.0, %v1170_v7 }
 0x116   : > { %v713_v2 = vand.u32 2147483647, %v585_v37  ;;  %v837_v5 = vsub.f32 1.0, %v709_v44  ;;  %v1102_v29 = vsub.f32 %v2386_v43, %v2392_v46  ;;  %v1106_v41 = vsub.f32 %v2386_v43, %v2394_v47 }
 0x117   : > { %v1681_v11 = vpack.c.bf16 %v1617_v40, %v1613_v23  ;;  %v1422_v63 = vmax.f32 %v1294_v45, 0.0  ;;  %v2958_v3 = vor.u32 %v2028_v10, %v2016_v33  ;;  %v1426_v32 = vmax.f32 %v1298_v35, 0.0 }
 0x118   : > { %v841_v27 = vsub.f32 1.0, %v713_v2  ;;  %v965_v21 = vmax.f32 %v837_v5, 0.0  ;;  %v1230_v1 = vand.u32 2147483647, %v1102_v29  ;;  %v1234_v62 = vand.u32 2147483647, %v1106_v41 }
 0x119   : > { %1765 = vmatpush.bf16.msrb.mxu1 %v1681_v11  ;;  %v1550_v30 = vmul.f32 %v1422_v63, %v901_v17  ;;  %1731 = vmatmul.bf16.vlgmr.msra.gmra.mxu2 %v2958_v3  ;;  %v2961_v31 = vor.u32 %v2027_v6, %v2018_v18  ;;  %v508_v46 = vsub.f32 %v2376_v38, %v2456_v55  ;;  %v3370_v17 = vld [vmem:[#allocation13_spill] sm:$0xff]  ;;  %v3371_v63 = vld [vmem:[#allocation11_spill] sm:$0xff] }
 0x11a   : > { %v1554_v22 = vmul.f32 %v1426_v32, %v905_v56  ;;  %v969_v36 = vmax.f32 %v841_v27, 0.0  ;;  %v1358_v24 = vsub.f32 1.0, %v1230_v1  ;;  %v512_v47 = vsub.f32 %v2376_v38, %v2460_v58  ;;  %1703 = vmatmul.bf16.vlgmr.msra.gmra.mxu0 %v2958_v3 }
 0x11b   : > { %v1362_v57 = vsub.f32 1.0, %v1234_v62  ;;  %1745 = vmatmul.bf16.vlgmr.msra.gmra.mxu3 %v2961_v31  ;;  %v636_v19 = vand.u32 2147483647, %v508_v46  ;;  %v1029_v60 = vsub.f32 %v2384_v42, %v2396_v48  ;;  %v1033_v33 = vsub.f32 %v2384_v42, %v2398_v49  ;;  %1717 = vmatmul.bf16.vlgmr.msra.gmra.mxu1 %v2961_v31 }
 0x11c   : > { %v1650_v61 = vpack.c.bf16 %v1554_v22, %v1550_v30  ;;  %v1486_v20 = vmax.f32 %v1358_v24, 0.0  ;;  %v640_v8 = vand.u32 2147483647, %v512_v47  ;;  %v572_v14 = vsub.f32 %v2376_v38, %v2484_v53  ;;  %v3372_v30 = vld [vmem:[#allocation12_spill] sm:$0xff] }
 0x11d   : > { %v1490_v23 = vmax.f32 %v1362_v57, 0.0  ;;  %v764_v7 = vsub.f32 1.0, %v636_v19  ;;  %v1157_v37 = vand.u32 2147483647, %v1029_v60  ;;  %v1161_v44 = vand.u32 2147483647, %v1033_v33 }
 0x11e   : > { %1779 = vmatpush.bf16.msrb.mxu2 %v1650_v61  ;;  %v1614_v10 = vmul.f32 %v1486_v20, %v965_v21  ;;  %v768_v40 = vsub.f32 1.0, %v640_v8  ;;  %v576_v56 = vsub.f32 %v2376_v38, %v3370_v17  ;;  %v700_v45 = vand.u32 2147483647, %v572_v14 }
 0x11f   : > { %v1618_v6 = vmul.f32 %v1490_v23, %v969_v36  ;;  %v892_v35 = vmax.f32 %v764_v7, 0.0  ;;  %v1285_v2 = vsub.f32 1.0, %v1157_v37  ;;  %v1289_v5 = vsub.f32 1.0, %v1161_v44 }
 0x120   : > { %v896_v29 = vmax.f32 %v768_v40, 0.0  ;;  %v704_v18 = vand.u32 2147483647, %v576_v56  ;;  %v828_v11 = vsub.f32 1.0, %v700_v45  ;;  %v1093_v41 = vsub.f32 %v2384_v42, %v3371_v63 }
 0x121   : > { %v1682_v32 = vpack.c.bf16 %v1618_v6, %v1614_v10  ;;  %v1413_v27 = vmax.f32 %v1285_v2, 0.0  ;;  %v1417_v1 = vmax.f32 %v1289_v5, 0.0  ;;  %v1097_v21 = vsub.f32 %v2384_v42, %v3372_v30 }
 0x122   : > { %v832_v62 = vsub.f32 1.0, %v704_v18  ;;  %v956_v46 = vmax.f32 %v828_v11, 0.0  ;;  %v1221_v22 = vand.u32 2147483647, %v1093_v41  ;;  %v509_v36 = vsub.f32 %v2378_v39, %v2456_v55 }
 0x123   : > { %1793 = vmatpush.bf16.msrb.mxu3 %v1682_v32  ;;  %v1541_v24 = vmul.f32 %v1413_v27, %v892_v35  ;;  %v1545_v47 = vmul.f32 %v1417_v1, %v896_v29  ;;  %v1225_v57 = vand.u32 2147483647, %v1097_v21  ;;  %v513_v19 = vsub.f32 %v2378_v39, %v2460_v58 }
 0x124   : > { %v960_v60 = vmax.f32 %v832_v62, 0.0  ;;  %v1349_v33 = vsub.f32 1.0, %v1221_v22  ;;  %v637_v61 = vand.u32 2147483647, %v509_v36  ;;  %v1030_v20 = vsub.f32 %v2386_v43, %v2396_v48 }
 0x125   : > { %v1645_v8 = vpack.c.bf16 %v1545_v47, %v1541_v24  ;;  %v1353_v14 = vsub.f32 1.0, %v1225_v57  ;;  %v641_v23 = vand.u32 2147483647, %v513_v19  ;;  %v1034_v7 = vsub.f32 %v2386_v43, %v2398_v49  ;;  %v3374_v19 = vld [vmem:[#allocation19_spill] sm:$0xff] }
 0x126   : > { %v1477_v55 = vmax.f32 %v1349_v33, 0.0  ;;  %v765_v37 = vsub.f32 1.0, %v637_v61  ;;  %v1158_v44 = vand.u32 2147483647, %v1030_v20  ;;  %v573_v10 = vsub.f32 %v2378_v39, %v2484_v53 }
 0x127   : > { %1752 = vmatpush.bf16.msrb.mxu0 %v1645_v8  ;;  %v1481_v58 = vmax.f32 %v1353_v14, 0.0  ;;  %v769_v40 = vsub.f32 1.0, %v641_v23  ;;  %v1162_v56 = vand.u32 2147483647, %v1034_v7  ;;  %v577_v45 = vsub.f32 %v2378_v39, %v3370_v17  ;;  %v3373_v17 = vld [vmem:[#allocation18_spill] sm:$0xff]  ;;  %v3376_v8 = vld [vmem:[#allocation15_spill] sm:$0xff] }
 0x128   : > { %v1605_v48 = vmul.f32 %v1477_v55, %v956_v46  ;;  %v893_v6 = vmax.f32 %v765_v37, 0.0  ;;  %v1286_v35 = vsub.f32 1.0, %v1158_v44  ;;  %v701_v2 = vand.u32 2147483647, %v573_v10  ;;  %v3377_v37 = vld [vmem:[#allocation20_spill] sm:$0xff] }
 0x129   : > { %v1609_v5 = vmul.f32 %v1481_v58, %v960_v60  ;;  %v897_v29 = vmax.f32 %v769_v40, 0.0  ;;  %v1290_v49 = vsub.f32 1.0, %v1162_v56  ;;  %v705_v18 = vand.u32 2147483647, %v577_v45 }
 0x12a   : > { %v1414_v11 = vmax.f32 %v1286_v35, 0.0  ;;  %v829_v41 = vsub.f32 1.0, %v701_v2  ;;  %v1094_v53 = vsub.f32 %v2386_v43, %v3371_v63  ;;  %v1098_v32 = vsub.f32 %v2386_v43, %v3372_v30  ;;  %v3375_v30 = vld [vmem:[#allocation14_spill] sm:$0xff] }
 0x12b   : > { %v1677_v27 = vpack.c.bf16 %v1609_v5, %v1605_v48  ;;  %v1418_v1 = vmax.f32 %v1290_v49, 0.0  ;;  %v833_v21 = vsub.f32 1.0, %v705_v18  ;;  %v500_v62 = vsub.f32 %v2376_v38, %v3373_v17 }
 0x12c   : > { %v1542_v46 = vmul.f32 %v1414_v11, %v893_v6  ;;  %v957_v22 = vmax.f32 %v829_v41, 0.0  ;;  %v1222_v36 = vand.u32 2147483647, %v1094_v53  ;;  %v1226_v24 = vand.u32 2147483647, %v1098_v32  ;;  %v3378_v6 = vld [vmem:[#allocation21_spill] sm:$0xff] }
 0x12d   : > { %1766 = vmatpush.bf16.msrb.mxu1 %v1677_v27  ;;  %v1546_v47 = vmul.f32 %v1418_v1, %v897_v29  ;;  %v961_v57 = vmax.f32 %v833_v21, 0.0  ;;  %v504_v60 = vsub.f32 %v2376_v38, %v3374_v19  ;;  %v628_v63 = vand.u32 2147483647, %v500_v62  ;;  %v3379_v32 = vld [vmem:[#allocation16_spill] sm:$0xff] }
 0x12e   : > { %v1350_v33 = vsub.f32 1.0, %v1222_v36  ;;  %v1354_v61 = vsub.f32 1.0, %v1226_v24  ;;  %v1021_v20 = vsub.f32 %v2384_v42, %v3375_v30  ;;  %v1025_v14 = vsub.f32 %v2384_v42, %v3376_v8 }
 0x12f   : > { %v1646_v23 = vpack.c.bf16 %v1546_v47, %v1542_v46  ;;  %v632_v7 = vand.u32 2147483647, %v504_v60  ;;  %v756_v55 = vsub.f32 1.0, %v628_v63  ;;  %v564_v44 = vsub.f32 %v2376_v38, %v3377_v37  ;;  %v3380_v46 = vld [vmem:[#allocation17_spill] sm:$0xff] }
 0x130   : > { %v1478_v10 = vmax.f32 %v1350_v33, 0.0  ;;  %v1482_v58 = vmax.f32 %v1354_v61, 0.0  ;;  %v1149_v40 = vand.u32 2147483647, %v1021_v20  ;;  %v1153_v56 = vand.u32 2147483647, %v1025_v14 }
 0x131   : > { %1780 = vmatpush.bf16.msrb.mxu2 %v1646_v23  ;;  %v760_v45 = vsub.f32 1.0, %v632_v7  ;;  %v884_v48 = vmax.f32 %v756_v55, 0.0  ;;  %v568_v35 = vsub.f32 %v2376_v38, %v3378_v6  ;;  %v692_v2 = vand.u32 2147483647, %v564_v44 }
 0x132   : > { %v1606_v5 = vmul.f32 %v1478_v10, %v957_v22  ;;  %v1610_v29 = vmul.f32 %v1482_v58, %v961_v57  ;;  %v1277_v49 = vsub.f32 1.0, %v1149_v40  ;;  %v1281_v18 = vsub.f32 1.0, %v1153_v56 }
 0x133   : > { %v888_v11 = vmax.f32 %v760_v45, 0.0  ;;  %v696_v41 = vand.u32 2147483647, %v568_v35  ;;  %v820_v53 = vsub.f32 1.0, %v692_v2  ;;  %v1085_v27 = vsub.f32 %v2384_v42, %v3379_v32 }
 0x134   : > { %v1678_v1 = vpack.c.bf16 %v1610_v29, %v1606_v5  ;;  %v1405_v21 = vmax.f32 %v1277_v49, 0.0  ;;  %v1409_v62 = vmax.f32 %v1281_v18, 0.0  ;;  %v1089_v36 = vsub.f32 %v2384_v42, %v3380_v46 }
 0x135   : > { %v824_v24 = vsub.f32 1.0, %v696_v41  ;;  %v948_v47 = vmax.f32 %v820_v53, 0.0  ;;  %v1213_v60 = vand.u32 2147483647, %v1085_v27  ;;  %v501_v22 = vsub.f32 %v2378_v39, %v3373_v17 }
 0x136   : > { %1794 = vmatpush.bf16.msrb.mxu3 %v1678_v1  ;;  %v1533_v57 = vmul.f32 %v1405_v21, %v884_v48  ;;  %v1537_v63 = vmul.f32 %v1409_v62, %v888_v11  ;;  %v1217_v33 = vand.u32 2147483647, %v1089_v36  ;;  %v505_v61 = vsub.f32 %v2378_v39, %v3374_v19 }
 0x137   : > { %v952_v20 = vmax.f32 %v824_v24, 0.0  ;;  %v1341_v14 = vsub.f32 1.0, %v1213_v60  ;;  %v629_v23 = vand.u32 2147483647, %v501_v22  ;;  %v1022_v7 = vsub.f32 %v2386_v43, %v3375_v30 }
 0x138   : > { %v1641_v55 = vpack.c.bf16 %v1537_v63, %v1533_v57  ;;  %v1345_v44 = vsub.f32 1.0, %v1217_v33  ;;  %v633_v10 = vand.u32 2147483647, %v505_v61  ;;  %v1026_v58 = vsub.f32 %v2386_v43, %v3376_v8  ;;  %v3382_v61 = vld [vmem:[#allocation25_spill] sm:$0xff] }
 0x139   : > { %v1469_v17 = vmax.f32 %v1341_v14, 0.0  ;;  %v757_v40 = vsub.f32 1.0, %v629_v23  ;;  %v1150_v56 = vand.u32 2147483647, %v1022_v7  ;;  %v565_v45 = vsub.f32 %v2378_v39, %v3377_v37 }
 0x13a   : > { %1753 = vmatpush.bf16.msrb.mxu0 %v1641_v55  ;;  %v1473_v19 = vmax.f32 %v1345_v44, 0.0  ;;  %v761_v48 = vsub.f32 1.0, %v633_v10  ;;  %v1154_v35 = vand.u32 2147483647, %v1026_v58  ;;  %v569_v2 = vsub.f32 %v2378_v39, %v3378_v6  ;;  %v3381_v6 = vld [vmem:[#allocation24_spill] sm:$0xff]  ;;  %v3384_v55 = vld [vmem:[#allocation23_spill] sm:$0xff] }
 0x13b   : > { %v1597_v30 = vmul.f32 %v1469_v17, %v948_v47  ;;  %v885_v5 = vmax.f32 %v757_v40, 0.0  ;;  %v1278_v29 = vsub.f32 1.0, %v1150_v56  ;;  %v693_v49 = vand.u32 2147483647, %v565_v45  ;;  %v3385_v40 = vld [vmem:[#allocation28_spill] sm:$0xff] }
 0x13c   : > { %v1601_v18 = vmul.f32 %v1473_v19, %v952_v20  ;;  %v889_v11 = vmax.f32 %v761_v48, 0.0  ;;  %v1282_v8 = vsub.f32 1.0, %v1154_v35  ;;  %v697_v41 = vand.u32 2147483647, %v569_v2 }
 0x13d   : > { %v1406_v53 = vmax.f32 %v1278_v29, 0.0  ;;  %v821_v27 = vsub.f32 1.0, %v693_v49  ;;  %v1086_v37 = vsub.f32 %v2386_v43, %v3379_v32  ;;  %v1090_v1 = vsub.f32 %v2386_v43, %v3380_v46  ;;  %v3383_v46 = vld [vmem:[#allocation22_spill] sm:$0xff] }
 0x13e   : > { %v1673_v21 = vpack.c.bf16 %v1601_v18, %v1597_v30  ;;  %v1410_v62 = vmax.f32 %v1282_v8, 0.0  ;;  %v825_v36 = vsub.f32 1.0, %v697_v41  ;;  %v492_v24 = vsub.f32 %v2376_v38, %v3381_v6 }
 0x13f   : > { %v1534_v47 = vmul.f32 %v1406_v53, %v885_v5  ;;  %v949_v60 = vmax.f32 %v821_v27, 0.0  ;;  %v1214_v22 = vand.u32 2147483647, %v1086_v37  ;;  %v1218_v57 = vand.u32 2147483647, %v1090_v1  ;;  %v3386_v5 = vld [vmem:[#allocation29_spill] sm:$0xff] }
 0x140   : > { %1767 = vmatpush.bf16.msrb.mxu1 %v1673_v21  ;;  %v1538_v63 = vmul.f32 %v1410_v62, %v889_v11  ;;  %v953_v33 = vmax.f32 %v825_v36, 0.0  ;;  %v496_v20 = vsub.f32 %v2376_v38, %v3382_v61  ;;  %v620_v32 = vand.u32 2147483647, %v492_v24  ;;  %v3387_v1 = vld [vmem:[#allocation26_spill] sm:$0xff] }
 0x141   : > { %v1342_v14 = vsub.f32 1.0, %v1214_v22  ;;  %v1346_v23 = vsub.f32 1.0, %v1218_v57  ;;  %v1013_v7 = vsub.f32 %v2384_v42, %v3383_v46  ;;  %v1017_v44 = vsub.f32 %v2384_v42, %v3384_v55 }
 0x142   : > { %v1642_v10 = vpack.c.bf16 %v1538_v63, %v1534_v47  ;;  %v624_v58 = vand.u32 2147483647, %v496_v20  ;;  %v748_v17 = vsub.f32 1.0, %v620_v32  ;;  %v556_v56 = vsub.f32 %v2376_v38, %v3385_v40  ;;  %v3388_v47 = vld [vmem:[#allocation27_spill] sm:$0xff] }
 0x143   : > { %v1470_v45 = vmax.f32 %v1342_v14, 0.0  ;;  %v1474_v19 = vmax.f32 %v1346_v23, 0.0  ;;  %v1141_v48 = vand.u32 2147483647, %v1013_v7  ;;  %v1145_v35 = vand.u32 2147483647, %v1017_v44 }
 0x144   : > { %1781 = vmatpush.bf16.msrb.mxu2 %v1642_v10  ;;  %v752_v2 = vsub.f32 1.0, %v624_v58  ;;  %v876_v30 = vmax.f32 %v748_v17, 0.0  ;;  %v560_v29 = vsub.f32 %v2376_v38, %v3386_v5  ;;  %v684_v49 = vand.u32 2147483647, %v556_v56 }
 0x145   : > { %v1598_v18 = vmul.f32 %v1470_v45, %v949_v60  ;;  %v1602_v11 = vmul.f32 %v1474_v19, %v953_v33  ;;  %v1269_v8 = vsub.f32 1.0, %v1141_v48  ;;  %v1273_v41 = vsub.f32 1.0, %v1145_v35 }
 0x146   : > { %v880_v53 = vmax.f32 %v752_v2, 0.0  ;;  %v688_v27 = vand.u32 2147483647, %v560_v29  ;;  %v812_v37 = vsub.f32 1.0, %v684_v49  ;;  %v1077_v21 = vsub.f32 %v2384_v42, %v3387_v1 }
 0x147   : > { %v1674_v62 = vpack.c.bf16 %v1602_v11, %v1598_v18  ;;  %v1397_v36 = vmax.f32 %v1269_v8, 0.0  ;;  %v1401_v24 = vmax.f32 %v1273_v41, 0.0  ;;  %v1081_v22 = vsub.f32 %v2384_v42, %v3388_v47 }
 0x148   : > { %v816_v57 = vsub.f32 1.0, %v688_v27  ;;  %v940_v63 = vmax.f32 %v812_v37, 0.0  ;;  %v1205_v20 = vand.u32 2147483647, %v1077_v21  ;;  %v493_v60 = vsub.f32 %v2378_v39, %v3381_v6 }
 0x149   : > { %1795 = vmatpush.bf16.msrb.mxu3 %v1674_v62  ;;  %v1525_v33 = vmul.f32 %v1397_v36, %v876_v30  ;;  %v1529_v32 = vmul.f32 %v1401_v24, %v880_v53  ;;  %v1209_v14 = vand.u32 2147483647, %v1081_v22  ;;  %v497_v23 = vsub.f32 %v2378_v39, %v3382_v61 }
 0x14a   : > { %v944_v7 = vmax.f32 %v816_v57, 0.0  ;;  %v1333_v44 = vsub.f32 1.0, %v1205_v20  ;;  %v621_v10 = vand.u32 2147483647, %v493_v60  ;;  %v1014_v58 = vsub.f32 %v2386_v43, %v3383_v46 }
 0x14b   : > { %v1637_v17 = vpack.c.bf16 %v1529_v32, %v1525_v33  ;;  %v1337_v56 = vsub.f32 1.0, %v1209_v14  ;;  %v625_v45 = vand.u32 2147483647, %v497_v23  ;;  %v1018_v19 = vsub.f32 %v2386_v43, %v3384_v55  ;;  %v3390_v23 = vld [vmem:[#allocation35_spill] sm:$0xff] }
 0x14c   : > { %v1461_v6 = vmax.f32 %v1333_v44, 0.0  ;;  %v749_v48 = vsub.f32 1.0, %v621_v10  ;;  %v1142_v35 = vand.u32 2147483647, %v1014_v58  ;;  %v557_v2 = vsub.f32 %v2378_v39, %v3385_v40 }
 0x14d   : > { %1754 = vmatpush.bf16.msrb.mxu0 %v1637_v17  ;;  %v1465_v61 = vmax.f32 %v1337_v56, 0.0  ;;  %v753_v30 = vsub.f32 1.0, %v625_v45  ;;  %v1146_v29 = vand.u32 2147483647, %v1018_v19  ;;  %v561_v49 = vsub.f32 %v2378_v39, %v3386_v5  ;;  %v3389_v5 = vld [vmem:[#allocation32_spill] sm:$0xff]  ;;  %v3392_v17 = vld [vmem:[#allocation31_spill] sm:$0xff] }
 0x14e   : > { %v1589_v46 = vmul.f32 %v1461_v6, %v940_v63  ;;  %v877_v18 = vmax.f32 %v749_v48, 0.0  ;;  %v1270_v11 = vsub.f32 1.0, %v1142_v35  ;;  %v685_v8 = vand.u32 2147483647, %v557_v2 }
 0x14f   : > { %v1593_v41 = vmul.f32 %v1465_v61, %v944_v7  ;;  %v881_v53 = vmax.f32 %v753_v30, 0.0  ;;  %v1274_v55 = vsub.f32 1.0, %v1146_v29  ;;  %v689_v27 = vand.u32 2147483647, %v561_v49 }
 0x150   : > { %v1398_v37 = vmax.f32 %v1270_v11, 0.0  ;;  %v813_v21 = vsub.f32 1.0, %v685_v8  ;;  %v1078_v40 = vsub.f32 %v2386_v43, %v3387_v1  ;;  %v1082_v62 = vsub.f32 %v2386_v43, %v3388_v47  ;;  %v3391_v47 = vld [vmem:[#allocation30_spill] sm:$0xff] }
 0x151   : > { %v1669_v36 = vpack.c.bf16 %v1593_v41, %v1589_v46  ;;  %v1402_v24 = vmax.f32 %v1274_v55, 0.0  ;;  %v817_v22 = vsub.f32 1.0, %v689_v27  ;;  %v484_v57 = vsub.f32 %v2376_v38, %v3389_v5  ;;  %v3393_v46 = vld [vmem:[#allocation36_spill] sm:$0xff] }
 0x152   : > { %v1526_v63 = vmul.f32 %v1398_v37, %v877_v18  ;;  %v941_v20 = vmax.f32 %v813_v21, 0.0  ;;  %v1206_v60 = vand.u32 2147483647, %v1078_v40  ;;  %v1210_v33 = vand.u32 2147483647, %v1082_v62  ;;  %v3394_v40 = vld [vmem:[#allocation33_spill] sm:$0xff] }
 0x153   : > { %1768 = vmatpush.bf16.msrb.mxu1 %v1669_v36  ;;  %v1530_v32 = vmul.f32 %v1402_v24, %v881_v53  ;;  %v945_v14 = vmax.f32 %v817_v22, 0.0  ;;  %v488_v7 = vsub.f32 %v2376_v38, %v3390_v23  ;;  %v612_v1 = vand.u32 2147483647, %v484_v57  ;;  %v3395_v57 = vld [vmem:[#allocation34_spill] sm:$0xff] }
 0x154   : > { %v1334_v44 = vsub.f32 1.0, %v1206_v60  ;;  %v1338_v10 = vsub.f32 1.0, %v1210_v33  ;;  %v1005_v58 = vsub.f32 %v2384_v42, %v3391_v47  ;;  %v1009_v56 = vsub.f32 %v2384_v42, %v3392_v17 }
 0x155   : > { %v1638_v45 = vpack.c.bf16 %v1530_v32, %v1526_v63  ;;  %v616_v19 = vand.u32 2147483647, %v488_v7  ;;  %v740_v6 = vsub.f32 1.0, %v612_v1  ;;  %v548_v48 = vsub.f32 %v2376_v38, %v2710_v52 }
 0x156   : > { %v1462_v35 = vmax.f32 %v1334_v44, 0.0  ;;  %v1466_v2 = vmax.f32 %v1338_v10, 0.0  ;;  %v1133_v61 = vand.u32 2147483647, %v1005_v58  ;;  %v1137_v30 = vand.u32 2147483647, %v1009_v56 }
 0x157   : > { %1782 = vmatpush.bf16.msrb.mxu2 %v1638_v45  ;;  %v744_v29 = vsub.f32 1.0, %v616_v19  ;;  %v868_v49 = vmax.f32 %v740_v6, 0.0  ;;  %v552_v18 = vsub.f32 %v2376_v38, %v3393_v46  ;;  %v676_v11 = vand.u32 2147483647, %v548_v48 }
 0x158   : > { %v1590_v8 = vmul.f32 %v1462_v35, %v941_v20  ;;  %v1594_v41 = vmul.f32 %v1466_v2, %v945_v14  ;;  %v1261_v53 = vsub.f32 1.0, %v1133_v61  ;;  %v1265_v55 = vsub.f32 1.0, %v1137_v30 }
 0x159   : > { %v872_v27 = vmax.f32 %v744_v29, 0.0  ;;  %v680_v37 = vand.u32 2147483647, %v552_v18  ;;  %v804_v21 = vsub.f32 1.0, %v676_v11  ;;  %v1069_v62 = vsub.f32 %v2384_v42, %v3394_v40 }
 0x15a   : > { %v1670_v36 = vpack.c.bf16 %v1594_v41, %v1590_v8  ;;  %v1389_v24 = vmax.f32 %v1261_v53, 0.0  ;;  %v1393_v22 = vmax.f32 %v1265_v55, 0.0  ;;  %v1073_v63 = vsub.f32 %v2384_v42, %v3395_v57 }
 0x15b   : > { %v808_v60 = vsub.f32 1.0, %v680_v37  ;;  %v932_v33 = vmax.f32 %v804_v21, 0.0  ;;  %v1197_v32 = vand.u32 2147483647, %v1069_v62  ;;  %v485_v20 = vsub.f32 %v2378_v39, %v3389_v5 }
 0x15c   : > { %1796 = vmatpush.bf16.msrb.mxu3 %v1670_v36  ;;  %v1517_v14 = vmul.f32 %v1389_v24, %v868_v49  ;;  %v1521_v7 = vmul.f32 %v1393_v22, %v872_v27  ;;  %v1201_v1 = vand.u32 2147483647, %v1073_v63  ;;  %v489_v44 = vsub.f32 %v2378_v39, %v3390_v23 }
 0x15d   : > { %v936_v10 = vmax.f32 %v808_v60, 0.0  ;;  %v1325_v58 = vsub.f32 1.0, %v1197_v32  ;;  %v613_v56 = vand.u32 2147483647, %v485_v20  ;;  %v1006_v45 = vsub.f32 %v2386_v43, %v3391_v47 }
 0x15e   : > { %v1633_v19 = vpack.c.bf16 %v1521_v7, %v1517_v14  ;;  %v1329_v6 = vsub.f32 1.0, %v1201_v1  ;;  %v617_v48 = vand.u32 2147483647, %v489_v44  ;;  %v1010_v35 = vsub.f32 %v2386_v43, %v3392_v17  ;;  %v3397_v1 = vld [vmem:[#allocation40_spill] sm:$0xff] }
 0x15f   : > { %v1453_v5 = vmax.f32 %v1325_v58, 0.0  ;;  %v741_v2 = vsub.f32 1.0, %v613_v56  ;;  %v1134_v61 = vand.u32 2147483647, %v1006_v45  ;;  %v549_v30 = vsub.f32 %v2378_v39, %v2710_v52  ;;  %v3399_v45 = vld [vmem:[#allocation38_spill] sm:$0xff] }
 0x160   : > { %1755 = vmatpush.bf16.msrb.mxu0 %v1633_v19  ;;  %v1457_v23 = vmax.f32 %v1329_v6, 0.0  ;;  %v745_v29 = vsub.f32 1.0, %v617_v48  ;;  %v1138_v49 = vand.u32 2147483647, %v1010_v35  ;;  %v553_v18 = vsub.f32 %v2378_v39, %v3393_v46  ;;  %v3396_v46 = vld [vmem:[#allocation39_spill] sm:$0xff] }
 0x161   : > { %v1581_v47 = vmul.f32 %v1453_v5, %v932_v33  ;;  %v869_v11 = vmax.f32 %v741_v2, 0.0  ;;  %v1262_v8 = vsub.f32 1.0, %v1134_v61  ;;  %v677_v41 = vand.u32 2147483647, %v549_v30  ;;  %v3400_v5 = vld [vmem:[#allocation43_spill] sm:$0xff] }
 0x162   : > { %v1585_v53 = vmul.f32 %v1457_v23, %v936_v10  ;;  %v873_v55 = vmax.f32 %v745_v29, 0.0  ;;  %v1266_v17 = vsub.f32 1.0, %v1138_v49  ;;  %v681_v27 = vand.u32 2147483647, %v553_v18 }
 0x163   : > { %v1390_v37 = vmax.f32 %v1262_v8, 0.0  ;;  %v805_v21 = vsub.f32 1.0, %v677_v41  ;;  %v1070_v52 = vsub.f32 %v2386_v43, %v3394_v40  ;;  %v1074_v62 = vsub.f32 %v2386_v43, %v3395_v57  ;;  %v3398_v57 = vld [vmem:[#allocation37_spill] sm:$0xff] }
 0x164   : > { %v1665_v36 = vpack.c.bf16 %v1585_v53, %v1581_v47  ;;  %v1394_v24 = vmax.f32 %v1266_v17, 0.0  ;;  %v809_v22 = vsub.f32 1.0, %v681_v27  ;;  %v476_v63 = vsub.f32 %v2376_v38, %v3396_v46  ;;  %v3401_v47 = vld [vmem:[#allocation44_spill] sm:$0xff] }
 0x165   : > { %v1518_v60 = vmul.f32 %v1390_v37, %v869_v11  ;;  %v933_v33 = vmax.f32 %v805_v21, 0.0  ;;  %v1198_v32 = vand.u32 2147483647, %v1070_v52  ;;  %v1202_v20 = vand.u32 2147483647, %v1074_v62  ;;  %v3402_v52 = vld [vmem:[#allocation41_spill] sm:$0xff] }
 0x166   : > { %1769 = vmatpush.bf16.msrb.mxu1 %v1665_v36  ;;  %v1522_v14 = vmul.f32 %v1394_v24, %v873_v55  ;;  %v937_v7 = vmax.f32 %v809_v22, 0.0  ;;  %v480_v44 = vsub.f32 %v2376_v38, %v3397_v1  ;;  %v604_v40 = vand.u32 2147483647, %v476_v63  ;;  %v3403_v63 = vld [vmem:[#allocation42_spill] sm:$0xff] }
 0x167   : > { %v1326_v10 = vsub.f32 1.0, %v1198_v32  ;;  %v1330_v58 = vsub.f32 1.0, %v1202_v20  ;;  %v997_v56 = vsub.f32 %v2384_v42, %v3398_v57  ;;  %v1001_v19 = vsub.f32 %v2384_v42, %v3399_v45 }
 0x168   : > { %v1634_v6 = vpack.c.bf16 %v1522_v14, %v1518_v60  ;;  %v608_v48 = vand.u32 2147483647, %v480_v44  ;;  %v732_v35 = vsub.f32 1.0, %v604_v40  ;;  %v540_v2 = vsub.f32 %v2376_v38, %v3400_v5 }
 0x169   : > { %v1454_v61 = vmax.f32 %v1326_v10, 0.0  ;;  %v1458_v30 = vmax.f32 %v1330_v58, 0.0  ;;  %v1125_v23 = vand.u32 2147483647, %v997_v56  ;;  %v1129_v29 = vand.u32 2147483647, %v1001_v19 }
 0x16a   : > { %1783 = vmatpush.bf16.msrb.mxu2 %v1634_v6  ;;  %v736_v49 = vsub.f32 1.0, %v608_v48  ;;  %v860_v18 = vmax.f32 %v732_v35, 0.0  ;;  %v544_v11 = vsub.f32 %v2376_v38, %v3401_v47  ;;  %v668_v8 = vand.u32 2147483647, %v540_v2 }
 0x16b   : > { %v1582_v41 = vmul.f32 %v1454_v61, %v933_v33  ;;  %v1586_v53 = vmul.f32 %v1458_v30, %v937_v7  ;;  %v1253_v55 = vsub.f32 1.0, %v1125_v23  ;;  %v1257_v17 = vsub.f32 1.0, %v1129_v29 }
 0x16c   : > { %v864_v27 = vmax.f32 %v736_v49, 0.0  ;;  %v672_v37 = vand.u32 2147483647, %v544_v11  ;;  %v796_v21 = vsub.f32 1.0, %v668_v8  ;;  %v1061_v62 = vsub.f32 %v2384_v42, %v3402_v52 }
 0x16d   : > { %v1666_v36 = vpack.c.bf16 %v1586_v53, %v1582_v41  ;;  %v1381_v24 = vmax.f32 %v1253_v55, 0.0  ;;  %v1385_v22 = vmax.f32 %v1257_v17, 0.0  ;;  %v1065_v60 = vsub.f32 %v2384_v42, %v3403_v63 }
 0x16e   : > { %v800_v32 = vsub.f32 1.0, %v672_v37  ;;  %v924_v20 = vmax.f32 %v796_v21, 0.0  ;;  %v1189_v14 = vand.u32 2147483647, %v1061_v62  ;;  %v477_v33 = vsub.f32 %v2378_v39, %v3396_v46 }
 0x16f   : > { %1797 = vmatpush.bf16.msrb.mxu3 %v1666_v36  ;;  %v1509_v7 = vmul.f32 %v1381_v24, %v860_v18  ;;  %v1513_v44 = vmul.f32 %v1385_v22, %v864_v27  ;;  %v1193_v40 = vand.u32 2147483647, %v1065_v60  ;;  %v481_v10 = vsub.f32 %v2378_v39, %v3397_v1 }
 0x170   : > { %v928_v58 = vmax.f32 %v800_v32, 0.0  ;;  %v1317_v56 = vsub.f32 1.0, %v1189_v14  ;;  %v605_v19 = vand.u32 2147483647, %v477_v33  ;;  %v998_v6 = vsub.f32 %v2386_v43, %v3398_v57 }
 0x171   : > { %v1629_v48 = vpack.c.bf16 %v1513_v44, %v1509_v7  ;;  %v1321_v35 = vsub.f32 1.0, %v1193_v40  ;;  %v609_v2 = vand.u32 2147483647, %v481_v10  ;;  %v1002_v61 = vsub.f32 %v2386_v43, %v3399_v45 }
 0x172   : > { %v1445_v46 = vmax.f32 %v1317_v56, 0.0  ;;  %v733_v30 = vsub.f32 1.0, %v605_v19  ;;  %v1126_v23 = vand.u32 2147483647, %v998_v6  ;;  %v541_v29 = vsub.f32 %v2378_v39, %v3400_v5  ;;  %v3406_v19 = vld [vmem:[#allocation46_spill] sm:$0xff] }
 0x173   : > { %1756 = vmatpush.bf16.msrb.mxu0 %v1629_v48  ;;  %v1449_v1 = vmax.f32 %v1321_v35, 0.0  ;;  %v737_v49 = vsub.f32 1.0, %v609_v2  ;;  %v1130_v18 = vand.u32 2147483647, %v1002_v61  ;;  %v545_v11 = vsub.f32 %v2378_v39, %v3401_v47  ;;  %v3404_v47 = vld [vmem:[#allocation47_spill] sm:$0xff] }
 0x174   : > { %v1573_v57 = vmul.f32 %v1445_v46, %v924_v20  ;;  %v861_v8 = vmax.f32 %v733_v30, 0.0  ;;  %v1254_v41 = vsub.f32 1.0, %v1126_v23  ;;  %v669_v53 = vand.u32 2147483647, %v541_v29 }
 0x175   : > { %v1577_v55 = vmul.f32 %v1449_v1, %v928_v58  ;;  %v865_v17 = vmax.f32 %v737_v49, 0.0  ;;  %v1258_v45 = vsub.f32 1.0, %v1130_v18  ;;  %v673_v27 = vand.u32 2147483647, %v545_v11 }
 0x176   : > { %v1382_v37 = vmax.f32 %v1254_v41, 0.0  ;;  %v797_v21 = vsub.f32 1.0, %v669_v53  ;;  %v1062_v5 = vsub.f32 %v2386_v43, %v3402_v52  ;;  %v1066_v62 = vsub.f32 %v2386_v43, %v3403_v63  ;;  %v3405_v63 = vld [vmem:[#allocation45_spill] sm:$0xff] }
 0x177   : > { %v1661_v36 = vpack.c.bf16 %v1577_v55, %v1573_v57  ;;  %v1386_v24 = vmax.f32 %v1258_v45, 0.0  ;;  %v801_v22 = vsub.f32 1.0, %v673_v27  ;;  %v468_v60 = vsub.f32 %v2376_v38, %v3404_v47 }
 0x178   : > { %v1510_v32 = vmul.f32 %v1382_v37, %v861_v8  ;;  %v925_v20 = vmax.f32 %v797_v21, 0.0  ;;  %v1190_v14 = vand.u32 2147483647, %v1062_v5  ;;  %v1194_v33 = vand.u32 2147483647, %v1066_v62 }
 0x179   : > { %1770 = vmatpush.bf16.msrb.mxu1 %v1661_v36  ;;  %v1514_v7 = vmul.f32 %v1386_v24, %v865_v17  ;;  %v929_v44 = vmax.f32 %v801_v22, 0.0  ;;  %v472_v40 = vsub.f32 %v2376_v38, %v2836_v15  ;;  %v596_v52 = vand.u32 2147483647, %v468_v60 }
 0x17a   : > { %v1318_v10 = vsub.f32 1.0, %v1190_v14  ;;  %v1322_v58 = vsub.f32 1.0, %v1194_v33  ;;  %v989_v56 = vsub.f32 %v2384_v42, %v3405_v63  ;;  %v993_v6 = vsub.f32 %v2384_v42, %v3406_v19 }
 0x17b   : > { %v1630_v48 = vpack.c.bf16 %v1514_v7, %v1510_v32  ;;  %v600_v35 = vand.u32 2147483647, %v472_v40  ;;  %v724_v2 = vsub.f32 1.0, %v596_v52  ;;  %v532_v61 = vsub.f32 %v2376_v38, %v2843_v12 }
 0x17c   : > { %v1446_v46 = vmax.f32 %v1318_v10, 0.0  ;;  %v1450_v30 = vmax.f32 %v1322_v58, 0.0  ;;  %v1117_v23 = vand.u32 2147483647, %v989_v56  ;;  %v1121_v29 = vand.u32 2147483647, %v993_v6 }
 0x17d   : > { %1784 = vmatpush.bf16.msrb.mxu2 %v1630_v48  ;;  %v728_v1 = vsub.f32 1.0, %v600_v35  ;;  %v852_v49 = vmax.f32 %v724_v2, 0.0  ;;  %v536_v18 = vsub.f32 %v2376_v38, %v2847_v26  ;;  %v660_v11 = vand.u32 2147483647, %v532_v61 }
 0x17e   : > { %v1574_v57 = vmul.f32 %v1446_v46, %v925_v20  ;;  %v1578_v8 = vmul.f32 %v1450_v30, %v929_v44  ;;  %v1245_v41 = vsub.f32 1.0, %v1117_v23  ;;  %v1249_v53 = vsub.f32 1.0, %v1121_v29 }
 0x17f   : > { %v856_v55 = vmax.f32 %v728_v1, 0.0  ;;  %v664_v17 = vand.u32 2147483647, %v536_v18  ;;  %v788_v45 = vsub.f32 1.0, %v660_v11  ;;  %v1053_v27 = vsub.f32 %v2384_v42, %v2820_v16 }
 0x180   : > { %v1662_v37 = vpack.c.bf16 %v1578_v8, %v1574_v57  ;;  %v1373_v21 = vmax.f32 %v1245_v41, 0.0  ;;  %v1377_v5 = vmax.f32 %v1249_v53, 0.0  ;;  %v1057_v62 = vsub.f32 %v2384_v42, %v2827_v50 }
 0x181   : > { %v792_v36 = vsub.f32 1.0, %v664_v17  ;;  %v916_v24 = vmax.f32 %v788_v45, 0.0  ;;  %v1181_v22 = vand.u32 2147483647, %v1053_v27  ;;  %v469_v60 = vsub.f32 %v2378_v39, %v3404_v47 }
 0x182   : > { %1798 = vmatpush.bf16.msrb.mxu3 %v1662_v37  ;;  %v1501_v32 = vmul.f32 %v1373_v21, %v852_v49  ;;  %v1505_v20 = vmul.f32 %v1377_v5, %v856_v55  ;;  %v1185_v14 = vand.u32 2147483647, %v1057_v62  ;;  %v473_v33 = vsub.f32 %v2378_v39, %v2836_v15 }
 0x183   : > { %v920_v7 = vmax.f32 %v792_v36, 0.0  ;;  %v1309_v44 = vsub.f32 1.0, %v1181_v22  ;;  %v597_v40 = vand.u32 2147483647, %v469_v60  ;;  %v990_v52 = vsub.f32 %v2386_v43, %v3405_v63 }
 0x184   : > { %v1625_v10 = vpack.c.bf16 %v1505_v20, %v1501_v32  ;;  %v1313_v58 = vsub.f32 1.0, %v1185_v14  ;;  %v601_v56 = vand.u32 2147483647, %v473_v33  ;;  %v994_v6 = vsub.f32 %v2386_v43, %v3406_v19 }
 0x185   : > { %v1437_v47 = vmax.f32 %v1309_v44, 0.0  ;;  %v725_v48 = vsub.f32 1.0, %v597_v40  ;;  %v1118_v35 = vand.u32 2147483647, %v990_v52  ;;  %v533_v2 = vsub.f32 %v2378_v39, %v2843_v12 }
 0x186   : > { %1757 = vmatpush.bf16.msrb.mxu0 %v1625_v10  ;;  %v1441_v15 = vmax.f32 %v1313_v58, 0.0  ;;  %v729_v61 = vsub.f32 1.0, %v601_v56  ;;  %v1122_v46 = vand.u32 2147483647, %v994_v6  ;;  %v537_v30 = vsub.f32 %v2378_v39, %v2847_v26 }
 0x187   : > { %v1565_v63 = vmul.f32 %v1437_v47, %v916_v24  ;;  %v853_v23 = vmax.f32 %v725_v48, 0.0  ;;  %v1246_v29 = vsub.f32 1.0, %v1118_v35  ;;  %v661_v1 = vand.u32 2147483647, %v533_v2 }
 0x188   : > { %v1569_v49 = vmul.f32 %v1441_v15, %v920_v7  ;;  %v857_v18 = vmax.f32 %v729_v61, 0.0  ;;  %v1250_v19 = vsub.f32 1.0, %v1122_v46  ;;  %v665_v11 = vand.u32 2147483647, %v537_v30 }
 0x189   : > { %v1374_v57 = vmax.f32 %v1246_v29, 0.0  ;;  %v789_v8 = vsub.f32 1.0, %v661_v1  ;;  %v1054_v12 = vsub.f32 %v2386_v43, %v2820_v16  ;;  %v1058_v41 = vsub.f32 %v2386_v43, %v2827_v50 }
 0x18a   : > { %v1657_v53 = vpack.c.bf16 %v1569_v49, %v1565_v63  ;;  %v1378_v55 = vmax.f32 %v1250_v19, 0.0  ;;  %v793_v17 = vsub.f32 1.0, %v665_v11  ;;  %v460_v26 = vsub.f32 %v2376_v38, %v2876_v13 }
 0x18b   : > { %v1502_v45 = vmul.f32 %v1374_v57, %v853_v23  ;;  %v917_v27 = vmax.f32 %v789_v8, 0.0  ;;  %v1182_v37 = vand.u32 2147483647, %v1054_v12  ;;  %v1186_v21 = vand.u32 2147483647, %v1058_v41 }
 0x18c   : > { %1771 = vmatpush.bf16.msrb.mxu1 %v1657_v53  ;;  %v1506_v5 = vmul.f32 %v1378_v55, %v857_v18  ;;  %v921_v62 = vmax.f32 %v793_v17, 0.0  ;;  %v464_v36 = vsub.f32 %v2376_v38, %v2881_v25  ;;  %v588_v16 = vand.u32 2147483647, %v460_v26 }
 0x18d   : > { %v1310_v24 = vsub.f32 1.0, %v1182_v37  ;;  %v1314_v22 = vsub.f32 1.0, %v1186_v21  ;;  %v981_v50 = vsub.f32 %v2384_v42, %v2866_v9  ;;  %v985_v60 = vsub.f32 %v2384_v42, %v2869_v51 }
 0x18e   : > { %v1626_v32 = vpack.c.bf16 %v1506_v5, %v1502_v45  ;;  %v592_v20 = vand.u32 2147483647, %v464_v36  ;;  %v716_v14 = vsub.f32 1.0, %v588_v16  ;;  %v524_v33 = vsub.f32 %v2376_v38, %v2910_v54 }
 0x18f   : > { %v1438_v7 = vmax.f32 %v1310_v24, 0.0  ;;  %v1442_v44 = vmax.f32 %v1314_v22, 0.0  ;;  %v1109_v40 = vand.u32 2147483647, %v981_v50  ;;  %v1113_v52 = vand.u32 2147483647, %v985_v60 }
 0x190   : > { %1785 = vmatpush.bf16.msrb.mxu2 %v1626_v32  ;;  %v720_v10 = vsub.f32 1.0, %v592_v20  ;;  %v844_v58 = vmax.f32 %v716_v14, 0.0  ;;  %v528_v56 = vsub.f32 %v2376_v38, %v2912_v59  ;;  %v652_v6 = vand.u32 2147483647, %v524_v33 }
 0x191   : > { %v1566_v47 = vmul.f32 %v1438_v7, %v917_v27  ;;  %v1570_v48 = vmul.f32 %v1442_v44, %v921_v62  ;;  %v1237_v35 = vsub.f32 1.0, %v1109_v40  ;;  %v1241_v2 = vsub.f32 1.0, %v1113_v52 }
 0x192   : > { %v848_v15 = vmax.f32 %v720_v10, 0.0  ;;  %v656_v61 = vand.u32 2147483647, %v528_v56  ;;  %v780_v46 = vsub.f32 1.0, %v652_v6  ;;  %v1045_v30 = vsub.f32 %v2384_v42, %v2894_v34 }
 0x193   : > { %v1658_v63 = vpack.c.bf16 %v1570_v48, %v1566_v47  ;;  %v1365_v23 = vmax.f32 %v1237_v35, 0.0  ;;  %v1369_v29 = vmax.f32 %v1241_v2, 0.0  ;;  %v1049_v1 = vsub.f32 %v2384_v42, %v2896_v28 }
 0x194   : > { %v784_v49 = vsub.f32 1.0, %v656_v61  ;;  %v908_v18 = vmax.f32 %v780_v46, 0.0  ;;  %v1173_v38 = vand.u32 2147483647, %v1045_v30  ;;  %v461_v19 = vsub.f32 %v2378_v39, %v2876_v13 }
 0x195   : > { %1799 = vmatpush.bf16.msrb.mxu3 %v1658_v63  ;;  %v1493_v11 = vmul.f32 %v1365_v23, %v844_v58  ;;  %v1497_v57 = vmul.f32 %v1369_v29, %v848_v15  ;;  %v1177_v8 = vand.u32 2147483647, %v1049_v1  ;;  %v465_v12 = vsub.f32 %v2378_v39, %v2881_v25  ;;  %v2013_v61 = vld [vmem:[%s2337_s6 + $0x2] ss:$4 sm:$0xf] }
 0x196   : > { %v912_v41 = vmax.f32 %v784_v49, 0.0  ;;  %v1301_v53 = vsub.f32 1.0, %v1173_v38  ;;  %v589_v55 = vand.u32 2147483647, %v461_v19  ;;  %v982_v17 = vsub.f32 %v2386_v43, %v2866_v9 }
 0x197   : > { %v1621_v42 = vpack.c.bf16 %v1497_v57, %v1493_v11  ;;  %v1305_v26 = vsub.f32 1.0, %v1177_v8  ;;  %v593_v45 = vand.u32 2147483647, %v465_v12  ;;  %v986_v27 = vsub.f32 %v2386_v43, %v2869_v51  ;;  %v1704_v46 = vpop.f32.mrf.mxu0 }
 0x198   : > { %v1429_v13 = vmax.f32 %v1301_v53, 0.0  ;;  %v717_v37 = vsub.f32 1.0, %v589_v55  ;;  %v1110_v21 = vand.u32 2147483647, %v982_v17  ;;  %v525_v5 = vsub.f32 %v2378_v39, %v2910_v54  ;;  %v1718_v63 = vpop.f32.mrf.mxu1 }
 0x199   : > { %1758 = vmatpush.bf16.msrb.mxu0 %v1621_v42  ;;  %v1433_v25 = vmax.f32 %v1305_v26, 0.0  ;;  %v721_v62 = vsub.f32 1.0, %v593_v45  ;;  %v1114_v36 = vand.u32 2147483647, %v986_v27  ;;  %v529_v16 = vsub.f32 %v2378_v39, %v2912_v59 }
 0x19a   : > { %v1557_v9 = vmul.f32 %v1429_v13, %v908_v18  ;;  %v845_v24 = vmax.f32 %v717_v37, 0.0  ;;  %v1238_v22 = vsub.f32 1.0, %v1110_v21  ;;  %v653_v50 = vand.u32 2147483647, %v525_v5 }
 0x19b   : > { %v1561_v60 = vmul.f32 %v1433_v25, %v912_v41  ;;  %v849_v32 = vmax.f32 %v721_v62, 0.0  ;;  %v1242_v51 = vsub.f32 1.0, %v1114_v36  ;;  %v657_v20 = vand.u32 2147483647, %v529_v16 }
 0x19c   : > { %v1366_v14 = vmax.f32 %v1238_v22, 0.0  ;;  %v781_v33 = vsub.f32 1.0, %v653_v50  ;;  %v1046_v54 = vsub.f32 %v2386_v43, %v2894_v34  ;;  %v1050_v7 = vsub.f32 %v2386_v43, %v2896_v28  ;;  %1759 = vmatmul.bf16.vlgmr.msrb.gmra.mxu0 %v2958_v3  ;;  %v1732_v49 = vpop.f32.mrf.mxu2 }
 0x19d   : > { %v1653_v44 = vpack.c.bf16 %v1561_v60, %v1557_v9  ;;  %v1370_v39 = vmax.f32 %v1242_v51, 0.0  ;;  %v785_v59 = vsub.f32 1.0, %v657_v20  ;;  %v190_v30 = vadd.f32 1.0, %v2013_v61 }
 0x19e   : > { %v1494_v40 = vmul.f32 %v1366_v14, %v845_v24  ;;  %v1174_v52 = vand.u32 2147483647, %v1046_v54  ;;  %v1178_v10 = vand.u32 2147483647, %v1050_v7  ;;  %v909_v56 = vmax.f32 %v781_v33, 0.0  ;;  %v1746_v18 = vpop.f32.mrf.mxu3 }
 0x19f   : > { %1772 = vmatpush.bf16.msrb.mxu1 %v1653_v44  ;;  %v1498_v58 = vmul.f32 %v1370_v39, %v849_v32  ;;  %v913_v6 = vmax.f32 %v785_v59, 0.0  ;;  %v191_v23 = vmul.f32 3.5, %v190_v30  ;;  %v1706_v1 = vpop.f32.mrf.mxu0  ;;  %v1747_v62 = vadd.f32 %v1746_v18, %v1732_v49 }
 0x1a0   : > { %v1302_v47 = vsub.f32 1.0, %v1174_v52  ;;  %v1306_v48 = vsub.f32 1.0, %v1178_v10  ;;  %v1720_v19 = vpop.f32.mrf.mxu1  ;;  %v1719_v20 = vadd.f32 %v1718_v63, %v1704_v46 }
 0x1a1   : > { %v1622_v35 = vpack.c.bf16 %v1498_v58, %v1494_v40  ;;  %v1809_v29 = vperm.slane %v191_v23, 1  ;;  %v1810_v57 = vperm.slane %v191_v23, 2  ;;  %v1808_v8 = vperm.slane %v191_v23, 0 }
 0x1a2   : > { %v1430_v34 = vmax.f32 %v1302_v47, 0.0  ;;  %v1434_v2 = vmax.f32 %v1306_v48, 0.0  ;;  %1773 = vmatmul.bf16.vlgmr.msrb.gmra.mxu1 %v2961_v31  ;;  %v1811_v32 = vperm.slane %v191_v23, 3  ;;  %v1721_v40 = vadd.f32 %v1720_v19, %v1706_v1 }
 0x1a3   : > { %1786 = vmatpush.bf16.msrb.mxu2 %v1622_v35  ;;  %v1817_v38 = vsub.f32 %v1809_v29, %v2796_v0  ;;  %v1821_v11 = vsub.f32 %v1809_v29, %v2798_v4  ;;  %v1818_v53 = vsub.f32 %v1810_v57, %v2796_v0  ;;  %v1816_v55 = vsub.f32 %v1808_v8, %v2796_v0 }
 0x1a4   : > { %v1558_v43 = vmul.f32 %v1430_v34, %v909_v56  ;;  %v1562_v28 = vmul.f32 %v1434_v2, %v913_v6  ;;  %v1820_v17 = vsub.f32 %v1808_v8, %v2798_v4  ;;  %v1734_v5 = vpop.f32.mrf.mxu2  ;;  %v1819_v58 = vsub.f32 %v1811_v32, %v2796_v0 }
 0x1a5   : > { %v1825_v12 = vand.u32 2147483647, %v1817_v38  ;;  %v1826_v13 = vand.u32 2147483647, %v1818_v53  ;;  %v1824_v37 = vand.u32 2147483647, %v1816_v55  ;;  %v1823_v56 = vsub.f32 %v1811_v32, %v2798_v4 }
 0x1a6   : > { %v1654_v15 = vpack.c.bf16 %v1562_v28, %v1558_v43  ;;  %1787 = vmatmul.bf16.vlgmr.msrb.gmra.mxu2 %v2958_v3  ;;  %v1822_v3 = vsub.f32 %v1810_v57, %v2798_v4  ;;  %v1828_v21 = vand.u32 2147483647, %v1820_v17  ;;  %v1748_v25 = vpop.f32.mrf.mxu3  ;;  %v1827_v43 = vand.u32 2147483647, %v1819_v58 }
 0x1a7   : > { %v1833_v26 = vsub.f32 1.0, %v1825_v12  ;;  %v1749_v9 = vadd.f32 %v1748_v25, %v1734_v5  ;;  %v1834_v22 = vsub.f32 1.0, %v1826_v13  ;;  %v1832_v50 = vsub.f32 1.0, %v1824_v37 }
 0x1a8   : > { %1800 = vmatpush.bf16.msrb.mxu3 %v1654_v15  ;;  %v1830_v42 = vand.u32 2147483647, %v1822_v3  ;;  %v1836_v60 = vsub.f32 1.0, %v1828_v21  ;;  %v1831_v15 = vand.u32 2147483647, %v1823_v56  ;;  %v1835_v63 = vsub.f32 1.0, %v1827_v43 }
 0x1a9   : > { %v1841_v16 = vmax.f32 %v1833_v26, 0.0  ;;  %v1842_v44 = vmax.f32 %v1834_v22, 0.0  ;;  %v1840_v59 = vmax.f32 %v1832_v50, 0.0  ;;  %v3407_v32 = vlaneseq }
 0x1aa   : > { %v1838_v36 = vsub.f32 1.0, %v1830_v42  ;;  %v1844_v52 = vmax.f32 %v1836_v60, 0.0  ;;  %v1839_v29 = vsub.f32 1.0, %v1831_v15  ;;  %v1843_v4 = vmax.f32 %v1835_v63, 0.0 }
 0x1ab   : > { %1801 = vmatmul.bf16.vlgmr.msrb.gmra.mxu3 %v2961_v31  ;;  %v1829_v31 = vand.u32 2147483647, %v1821_v11  ;;  %v1849_v33 = vmul.f32 %v1841_v16, %v1747_v62  ;;  %v1848_v34 = vmul.f32 %v1840_v59, %v1719_v20  ;;  %vm1900_vm3 = vcmp.lt.s32.totalorder %v3407_v32, 512 }
 0x1ac   : > { %v1846_v14 = vmax.f32 %v1838_v36, 0.0  ;;  %v1852_v2 = vmul.f32 %v1844_v52, %v1721_v40  ;;  %v1847_v19 = vmax.f32 %v1839_v29, 0.0 }
 0x1ad   : > { %v1837_v45 = vsub.f32 1.0, %v1829_v31 }
 0x1ae   : > { %v1856_v30 = vadd.f32 %v1852_v2, %v1848_v34 }
 0x1af   : > { %v1845_v24 = vmax.f32 %v1837_v45, 0.0 }
 0x1b0   : > { %v1857_v49 = vrot.slane %v1856_v30, 4 }
 0x1b1   : > { %v1853_v54 = vmul.f32 %v1845_v24, %v1749_v9 }
 0x1b2   : > { %v1858_v3 = vadd.f32 %v1857_v49, %v1856_v30 }
 0x1b3   : > { %v1863_v48 = vadd.f32 %v1853_v54, %v1849_v33 }
 0x1b4   : > { %v1859_v17 = vrot.slane %v1858_v3, 2 }
 0x1b5   : > { %v1864_v46 = vrot.slane %v1863_v48, 4 }
 0x1b6   : > { %v1860_v13 = vadd.f32 %v1859_v17, %v1858_v3 }
 0x1b7   : > { %v1865_v1 = vadd.f32 %v1864_v46, %v1863_v48 }
 0x1b8   : > { %v1861_v62 = vrot.slane %v1860_v13, 1 }
 0x1b9   : > { %v1866_v57 = vrot.slane %v1865_v1, 2 }
 0x1ba   : > { %v1862_v22 = vadd.f32 %v1861_v62, %v1860_v13 }
 0x1bb   : > { %v1867_v53 = vadd.f32 %v1866_v57, %v1865_v1 }
 0x1bd   : > { %v1868_v45 = vrot.slane %v1867_v53, 1 }
 0x1bf   : > { %v1869_v5 = vadd.f32 %v1868_v45, %v1867_v53 }
 0x1c1   : > { %v1888_v9 = vrot.slane %v1869_v5, 7 }
 0x219   : > { %v1760_v41 = vpop.f32.mrf.mxu0 }
 0x21f   : > { %v1774_v27 = vpop.f32.mrf.mxu1 }
 0x220   : > { %v1775_v7 = vadd.f32 %v1774_v27, %v1760_v41 }
 0x221   : > { %v1762_v51 = vpop.f32.mrf.mxu0 }
 0x222   : > { %v1850_v35 = vmul.f32 %v1842_v44, %v1775_v7 }
 0x227   : > { %v1776_v39 = vpop.f32.mrf.mxu1 }
 0x228   : > { %v1777_v10 = vadd.f32 %v1776_v39, %v1762_v51  ;;  %v1892_v51 = vsel %vm1891_vm0, %v1862_v22, %v1888_v9 }
 0x229   : > { %v1788_v6 = vpop.f32.mrf.mxu2 }
 0x22a   : > { %v1854_v47 = vmul.f32 %v1846_v14, %v1777_v10 }
 0x22c   : > { %v1870_v28 = vadd.f32 %v1854_v47, %v1850_v35 }
 0x22e   : > { %v1802_v61 = vpop.f32.mrf.mxu3  ;;  %v1871_v23 = vrot.slane %v1870_v28, 4 }
 0x22f   : > { %v1803_v18 = vadd.f32 %v1802_v61, %v1788_v6 }
 0x230   : > { %v1872_v38 = vadd.f32 %v1871_v23, %v1870_v28 }
 0x231   : > { %v1790_v0 = vpop.f32.mrf.mxu2  ;;  %v1851_v12 = vmul.f32 %v1843_v4, %v1803_v18 }
 0x232   : > { %v1873_v31 = vrot.slane %v1872_v38, 2 }
 0x234   : > { %v1874_v42 = vadd.f32 %v1873_v31, %v1872_v38 }
 0x236   : > { %v1804_v11 = vpop.f32.mrf.mxu3  ;;  %v1875_v37 = vrot.slane %v1874_v42, 1 }
 0x237   : > { %v1805_v8 = vadd.f32 %v1804_v11, %v1790_v0 }
 0x238   : > { %v1876_v36 = vadd.f32 %v1875_v37, %v1874_v42 }
 0x239   : > { %v1855_v41 = vmul.f32 %v1847_v19, %v1805_v8 }
 0x23a   : > { %v1889_v50 = vrot.slane %v1876_v36, 6 }
 0x23b   : > { %v1877_v55 = vadd.f32 %v1855_v41, %v1851_v12 }
 0x23d   : > { %v1878_v26 = vrot.slane %v1877_v55, 4 }
 0x23f   : > { %v1879_v27 = vadd.f32 %v1878_v26, %v1877_v55 }
 0x241   : > { %v1880_v21 = vrot.slane %v1879_v27, 2 }
 0x243   : > { %v1881_v25 = vadd.f32 %v1880_v21, %v1879_v27 }
 0x245   : > { %v1882_v16 = vrot.slane %v1881_v25, 1 }
 0x247   : > { %v1883_v24 = vadd.f32 %v1882_v16, %v1881_v25 }
 0x249   : > { %v1890_v60 = vrot.slane %v1883_v24, 5 }
 0x24b   : > { %v1894_v20 = vsel %vm1893_vm1, %v1889_v50, %v1890_v60 }
 0x24c   : > { %v1896_v14 = vsel %vm1895_vm2, %v1892_v51, %v1894_v20 }
 0x24d   : > { %1902 = vst.msk [vmem:[%s178_s14] sm:$0xf] %vm1900_vm3, %v1896_v14 }
 0x24e   : > { %2175 = shalt.err (!%p2172_p9)
}
 0x24f   : > { %2035 = dma.vmem_to_hbm [thread:$0]  (%p2298_p13), %s1917_s15, 64, %s1919_s18, %s1904_s16  }
 0x250 PF: > { %s1930_s29 = sand.u32 1, %s2206_s9   ;;  %p3408_p10 = scmp.ge.s32.totalorder %s2218_s12, 2 }
 0x251   : > { %s1931_s4 = scalar_lea.sflag [#allocation4], %s1930_s29 }
 0x252   : > { %p2046_p11 = pnand %p3408_p10, %p2303_p4 }
 0x254   : > { %p2047_p0 = pneg %p2046_p11 }
 0x256   : > { %2201 = dma.done.wait (%p2047_p0), %s1931_s4, 64  }
 0x257   : > { %2203 = vsyncadd (%p2047_p0), %s1931_s4, 4294967232  ;;  %p16_p2 = scmp.ge.s32.totalorder %s2278_s23, 4   ;;  %s3409_s9 = smov %s2210_s10 }
 0x258   : > { %s3410_s10 = smov %s2214_s11  ;;  %s3411_s11 = smov %s2290_s26 }
 0x259   : > { %s3412_s12 = smov %s2278_s23  ;;  %18 = sbr.rel (!%p16_p2) target bundleno = 6 (0x6), region = 80 }
 0x25e   :  { %1937 = vsyncpa [#allocation3], 1 }
 0x25f   :  { %1939 = vsyncpa [#allocation3 + $0x1], 1 }
 0x260   :  { %1940 = vsyncpa [#allocation6], 1 }
 0x261   :  { %1942 = vsyncpa [#allocation6 + $0x1], 1 }
 0x262   :  { %1943 = vsyncpa [#allocation4], 1 }
 0x263   :  { %1945 = vsyncpa [#allocation4 + $0x1], 1 }

// kernel: tpu_custom_call.1
= control target key start
LH: loop header
LB: loop body
LE: loop exit
PB: predicated region body
PF: predicated region fallthrough
CT: control target
= control target key end

     0   :  { %7 = vsyncpa [#allocation3], 0  ;;  %s3238_s0 = inlined_call_operand.hbm [shape: bf16[16,256], index: 0, kind: input, shape index: {}]   ;;  %s3239_s1 = inlined_call_operand.hbm [shape: f32[3,1024], index: 1, kind: input, shape index: {}]   ;;  %s3240_s2 = inlined_call_operand.hbm [shape: f32[1,1024], index: 2, kind: output, shape index: {}]  }
   0x1   :  { %8 = vsyncpa [#allocation6], 0 }
   0x2   :  { %10 = vsyncpa [#allocation6 + $0x1], 0 }
   0x3   :  { %11 = vsyncpa [#allocation4], 0 }
   0x4   :  { %13 = vsyncpa [#allocation4 + $0x1], 0  ;;  %s2238_s9 = smov 0   ;;  %s2240_s10 = smov 0  }
   0x5   :  { %s2242_s11 = smov 0   ;;  %s2244_s12 = smov 0  }
   0x6 LB: > { %s108_s15 = sshll.u32 %s3238_s0, 4  ;;  %s2262_s16 = sadd.s32 4294967295, %s2218_s12   ;;  %s2218_s12 = sphi %s2244_s12, %s3412_s12   ;;  %s2214_s11 = sphi %s2242_s11, %s3411_s11   ;;  %s2210_s10 = sphi %s2240_s10, %s3410_s10   ;;  %s2206_s9 = sphi %s2238_s9, %s3409_s9   ;;  %s109_s15 = int_to_ptr.hbm [resolvable:$true] %s108_s15 }
   0x7   : > { %p2002_p0 = scmp.ge.s32.totalorder %s2218_s12, 1  ;;  %p61_p1 = scmp.eq.s32.totalorder %s2262_s16, 0 }
   0x8   : > { %p97_p2 = scmp.lt.s32.totalorder %s2218_s12, 3  ;;  %s2220_s18 = smov [#allocation2]  }
   0x9   : > { %s110_s19 = sshll.u32 %s2220_s18, 4  ;;  %s2221_s20 = smov 128   ;;  %s111_s19 = int_to_ptr.vmem [resolvable:$true] %s110_s19 }
   0xa   : > { %p2267_p3 = pnand %p2002_p0, %p97_p2  ;;  %s2222_s21 = smov 8  }
   0xb   : > { %s2001_s22 = sadd.s32 4294967294, %s2218_s12   ;;  %s2278_s23 = sadd.s32 1, %s2218_s12  }
   0xc   : > { %p2037_p4 = pneg %p2267_p3  ;;  %s47_s24 = sadd.s32 1, %s2214_s11 }
   0xd   : > { %s44_s25 = ssub.s32 %s2218_s12, %s2278_s23  ;;  %p54_p7 = scmp.ne.s32.totalorder %s2214_s11, %s2210_s10 }
   0xe   : > { %p2038_p6 = pnand %p2037_p4, %p61_p1  ;;  %p45_p8 = scmp.eq.s32.totalorder %s44_s25, 0 }
   0xf   : > { %p55_p9 = scmp.eq.s32.totalorder %s2218_s12, 0  ;;  %p60_p10 = scmp.ne.s32.totalorder %s2210_s10, %s2206_s9 }
  0x10   : > { %2040 = dma.hbm_to_vmem [thread:$0]  (!%p2038_p6), %s109_s15, 256, %s111_s19, [#allocation3], %s2221_s20, %s2221_s20, %s2222_s21  }
  0x11   : > { %p84_p11 = scmp.eq.s32.totalorder %s2262_s16, 1  ;;  %p2294_p12 = por %p61_p1, %p60_p10 }
  0x12   : > { %s2290_s26 = scalar_select %p45_p8, %s2214_s11, %s47_s24  }
  0x13   : > { %p2298_p13 = por %p84_p11, %p54_p7  ;;  %p90_p0 = scmp.eq.s32.totalorder %s2001_s22, 1 }
  0x14   : > { %p56_p2 = por %p55_p9, %p54_p7  ;;  %s124_s29 = sand.u32 1, %s2214_s11  }
  0x15   : > { %p2303_p4 = por %p90_p0, %p60_p10  ;;  %p2050_p6 = scmp.lt.s32.totalorder %s2218_s12, 2 }
  0x16   : > { %s2005_s3 = sshll.u32 %s124_s29, 4  ;;  %s2026_s4 = sshll.u32 %s2218_s12, 4 }
  0x17   : > { %s133_s7 = scalar_lea.hbm %s3239_s1, %s2026_s4  ;;  %s128_s13 = scalar_lea.vmem [#allocation5], %s2005_s3 }
  0x18   : > { %s135_s8 = sshll.u32 %s133_s7, 4  ;;  %s137_s14 = sshll.u32 %s128_s13, 4  ;;  %s136_s8 = int_to_ptr.hbm [resolvable:$true] %s135_s8  ;;  %s138_s14 = int_to_ptr.vmem [resolvable:$true] %s137_s14 }
  0x19   : > { %p2312_p8 = pnand %p2050_p6, %p56_p2  ;;  %s125_s18 = scalar_lea.sflag [#allocation6], %s124_s29 }
  0x1a   : > { %s2118_s19 = sshra.s32 %s136_s8, 4  ;;  %s2125_s24 = scalar_lea.hbm %s3239_s1, 32  ;;  %s2119_s19 = int_to_ptr.hbm [resolvable:$true] %s2118_s19 }
  0x1b   : > { %s2120_s20 = scalar_lea.hbm %s2119_s19, 16  ;;  %p2122_p9 = pneg %p2312_p8 }
  0x1c   : > { %p2121_p7 = scmp.ne.s32.totalorder %s2119_s19, %s2120_s20  ;;  %p2126_p0 = scmp.lt.s32.totalorder %s2119_s19, %s3239_s1 }
  0x1d   : > { %p2127_p2 = scmp.lt.s32.totalorder %s2125_s24, %s2120_s20 }
  0x1e   : > { %p2123_p10 = pnand %p2122_p9, %p2121_p7 }
  0x1f   : > { %p2128_p6 = por %p2127_p2, %p2126_p0 }
  0x20   : > { %p2124_p11 = pneg %p2123_p10 }
  0x22   : > { %p2129_p5 = pnand %p2128_p6, %p2124_p11 }
  0x24   : > { %2132 = shalt.err (!%p2129_p5)
}
  0x25   : > { %2044 = dma.hbm_to_vmem [thread:$0]  (!%p2312_p8), %s136_s8, 256, %s138_s14, %s125_s18  }
  0x26   : > { %146 = sbr.rel (%p2267_p3) target bundleno = 592 (0x250), region = 28 }
  0x2b   : > { %2193 = dma.done.wait (%p61_p1), [#allocation3], 256  }
  0x2c   : > { %2195 = vsyncadd (%p61_p1), [#allocation3], 4294967040  ;;  %s2333_s29 = sand.u32 1, %s2210_s10  }
  0x2d   : > { %s2010_s4 = sshll.u32 %s2333_s29, 4  ;;  %s154_s5 = scalar_lea.sflag [#allocation6], %s2333_s29 }
  0x2e   : > { %s2337_s6 = scalar_lea.vmem [#allocation5], %s2010_s4 }
  0x2f   : > { %2197 = dma.done.wait (%p2294_p12), %s154_s5, 256  }
  0x30   : > { %2199 = vsyncadd (%p2294_p12), %s154_s5, 4294967040  ;;  %v3241_v0 = vlaneseq  ;;  %v181_v14 = vld [vmem:[%s2337_s6] ss:$4 sm:$0xf]  ;;  %s2011_s17 = sshll.u32 %s2333_s29, 2  ;;  %s2023_s27 = sshll.u32 %s2262_s16, 2 }
  0x31   : > { %v2012_v15 = vld [vmem:[%s2337_s6 + $0x1] ss:$4 sm:$0xf]  ;;  %v182_v20 = vadd.f32 1.0, %v181_v14  ;;  %s1914_s13 = scalar_lea.hbm %s3240_s2, %s2023_s27  ;;  %vm1891_vm0 = vcmask 1040384   ;;  %vm1893_vm1 = vcmask 1042434  }
  0x32   : > { %v2344_v1 = vshrl.u32 %v3241_v0, 7  ;;  %v186_v21 = vadd.f32 1.0, %v2012_v15  ;;  %s178_s14 = scalar_lea.vmem [#allocation7], %s2011_s17  ;;  %s1918_s18 = sshll.u32 %s1914_s13, 4  ;;  %vm1895_vm2 = vcmask 1041408   ;;  %s1919_s18 = int_to_ptr.hbm [resolvable:$true] %s1918_s18 }
  0x33   : > { %v183_v28 = vmul.f32 7.5, %v182_v20  ;;  %s1916_s15 = sshll.u32 %s178_s14, 4  ;;  %s1904_s16 = scalar_lea.sflag [#allocation4], %s2333_s29  ;;  %s1917_s15 = int_to_ptr.vmem [resolvable:$true] %s1916_s15 }
  0x34   : > { %v207_v2 = vadd.s32 112, %v2344_v1  ;;  %v208_v3 = vadd.s32 120, %v2344_v1  ;;  %v223_v4 = vadd.s32 240, %v2344_v1  ;;  %v224_v5 = vadd.s32 248, %v2344_v1  ;;  %s2162_s19 = sshra.s32 %s1919_s18, 4  ;;  %s2168_s24 = scalar_lea.hbm %s3240_s2, 8  ;;  %s2163_s19 = int_to_ptr.hbm [resolvable:$true] %s2162_s19 }
  0x35   : > { %v2351_v6 = vadd.s32 96, %v2344_v1  ;;  %v2354_v7 = vadd.s32 104, %v2344_v1  ;;  %v2357_v8 = vadd.s32 224, %v2344_v1  ;;  %v2360_v9 = vadd.s32 232, %v2344_v1  ;;  %s2164_s20 = scalar_lea.hbm %s2163_s19, 4  ;;  %p2169_p12 = scmp.lt.s32.totalorder %s2163_s19, %s3240_s2 }
  0x36   : > { %v239_v10 = vcvt.s32.f32 %v207_v2  ;;  %v240_v11 = vcvt.s32.f32 %v208_v3  ;;  %v255_v12 = vcvt.s32.f32 %v223_v4  ;;  %v256_v13 = vcvt.s32.f32 %v224_v5  ;;  %p2165_p1 = scmp.ne.s32.totalorder %s2163_s19, %s2164_s20  ;;  %p2170_p8 = scmp.lt.s32.totalorder %s2168_s24, %s2164_s20 }
  0x37   : > { %v237_v16 = vcvt.s32.f32 %v2351_v6  ;;  %v238_v17 = vcvt.s32.f32 %v2354_v7  ;;  %v253_v18 = vcvt.s32.f32 %v2357_v8  ;;  %v254_v19 = vcvt.s32.f32 %v2360_v9 }
  0x38   : > { %v303_v22 = vadd.f32 0.5, %v239_v10  ;;  %v304_v23 = vadd.f32 0.5, %v240_v11  ;;  %v319_v24 = vadd.f32 0.5, %v255_v12  ;;  %v320_v25 = vadd.f32 0.5, %v256_v13  ;;  %p2166_p3 = pnand %p2165_p1, %p2298_p13  ;;  %p2171_p7 = por %p2170_p8, %p2169_p12 }
  0x39   : > { %v301_v26 = vadd.f32 0.5, %v237_v16  ;;  %v302_v27 = vadd.f32 0.5, %v238_v17  ;;  %v187_v29 = vmul.f32 5.5, %v186_v21  ;;  %v2372_v36 = vperm.slane %v183_v28, 0 }
  0x3a   : > { %v335_v30 = vmul.f32 0.0625, %v303_v22  ;;  %v336_v31 = vmul.f32 0.0625, %v304_v23  ;;  %v351_v32 = vmul.f32 0.0625, %v319_v24  ;;  %v352_v33 = vmul.f32 0.0625, %v320_v25  ;;  %p2167_p5 = pneg %p2166_p3 }
  0x3b   : > { %v333_v34 = vmul.f32 0.0625, %v301_v26  ;;  %v334_v35 = vmul.f32 0.0625, %v302_v27  ;;  %v2374_v37 = vperm.slane %v183_v28, 1  ;;  %v2376_v38 = vperm.slane %v183_v28, 2 }
  0x3c   : > { %v2378_v39 = vperm.slane %v183_v28, 3  ;;  %v2380_v40 = vperm.slane %v187_v29, 0  ;;  %v2382_v41 = vperm.slane %v187_v29, 1  ;;  %v2384_v42 = vperm.slane %v187_v29, 2  ;;  %p2172_p9 = pnand %p2171_p7, %p2167_p5 }
  0x3d   : > { %v2386_v43 = vperm.slane %v187_v29, 3  ;;  %v2388_v44 = vfloor.f32 %v335_v30  ;;  %v2390_v45 = vfloor.f32 %v336_v31  ;;  %v2392_v46 = vfloor.f32 %v351_v32 }
  0x3e   : > { %v2394_v47 = vfloor.f32 %v352_v33  ;;  %v2396_v48 = vfloor.f32 %v333_v34  ;;  %v2398_v49 = vfloor.f32 %v334_v35  ;;  %v2402_v50 = vadd.f32 0.5, %v253_v18 }
  0x3f   : > { %v2406_v51 = vadd.f32 0.5, %v254_v19  ;;  %v399_v52 = vmul.f32 16.0, %v2388_v44  ;;  %v400_v53 = vmul.f32 16.0, %v2390_v45  ;;  %v1035_v54 = vsub.f32 %v2380_v40, %v2388_v44 }
  0x40   : > { %v1039_v55 = vsub.f32 %v2380_v40, %v2390_v45  ;;  %v415_v56 = vmul.f32 16.0, %v2392_v46  ;;  %v416_v57 = vmul.f32 16.0, %v2394_v47  ;;  %v1099_v58 = vsub.f32 %v2380_v40, %v2392_v46 }
  0x41   : > { %v1103_v59 = vsub.f32 %v2380_v40, %v2394_v47  ;;  %v2420_v60 = vsub.f32 %v239_v10, %v399_v52  ;;  %v2422_v61 = vsub.f32 %v240_v11, %v400_v53  ;;  %v1163_v62 = vand.u32 2147483647, %v1035_v54 }
  0x42   : > { %v1167_v63 = vand.u32 2147483647, %v1039_v55  ;;  %v2424_v2 = vsub.f32 %v255_v12, %v415_v56  ;;  %v2426_v3 = vsub.f32 %v256_v13, %v416_v57  ;;  %v1227_v4 = vand.u32 2147483647, %v1099_v58 }
  0x43   : > { %v1231_v5 = vand.u32 2147483647, %v1103_v59  ;;  %v514_v14 = vsub.f32 %v2372_v36, %v2420_v60  ;;  %v518_v15 = vsub.f32 %v2372_v36, %v2422_v61  ;;  %v1291_v20 = vsub.f32 1.0, %v1163_v62 }
  0x44   : > { %v1295_v21 = vsub.f32 1.0, %v1167_v63  ;;  %v578_v10 = vsub.f32 %v2372_v36, %v2424_v2  ;;  %v582_v11 = vsub.f32 %v2372_v36, %v2426_v3  ;;  %v1355_v12 = vsub.f32 1.0, %v1227_v4 }
  0x45   : > { %v1359_v22 = vsub.f32 1.0, %v1231_v5  ;;  %v642_v13 = vand.u32 2147483647, %v514_v14  ;;  %v646_v23 = vand.u32 2147483647, %v518_v15  ;;  %v1419_v24 = vmax.f32 %v1291_v20, 0.0 }
  0x46   : > { %v1423_v25 = vmax.f32 %v1295_v21, 0.0  ;;  %v706_v26 = vand.u32 2147483647, %v578_v10  ;;  %v710_v27 = vand.u32 2147483647, %v582_v11  ;;  %v1483_v28 = vmax.f32 %v1355_v12, 0.0 }
  0x47   : > { %v1487_v29 = vmax.f32 %v1359_v22, 0.0  ;;  %v770_v30 = vsub.f32 1.0, %v642_v13  ;;  %v774_v31 = vsub.f32 1.0, %v646_v23  ;;  %v515_v32 = vsub.f32 %v2374_v37, %v2420_v60 }
  0x48   : > { %v519_v33 = vsub.f32 %v2374_v37, %v2422_v61  ;;  %v834_v34 = vsub.f32 1.0, %v706_v26  ;;  %v838_v35 = vsub.f32 1.0, %v710_v27  ;;  %v1036_v52 = vsub.f32 %v2382_v41, %v2388_v44 }
  0x49   : > { %v1040_v53 = vsub.f32 %v2382_v41, %v2390_v45  ;;  %v898_v54 = vmax.f32 %v770_v30, 0.0  ;;  %v902_v55 = vmax.f32 %v774_v31, 0.0  ;;  %v643_v56 = vand.u32 2147483647, %v515_v32 }
  0x4a   : > { %v647_v57 = vand.u32 2147483647, %v519_v33  ;;  %v962_v58 = vmax.f32 %v834_v34, 0.0  ;;  %v966_v59 = vmax.f32 %v838_v35, 0.0  ;;  %v1164_v62 = vand.u32 2147483647, %v1036_v52 }
  0x4b   : > { %v1168_v63 = vand.u32 2147483647, %v1040_v53  ;;  %v1547_v4 = vmul.f32 %v1419_v24, %v898_v54  ;;  %v1551_v5 = vmul.f32 %v1423_v25, %v902_v55  ;;  %v771_v14 = vsub.f32 1.0, %v643_v56 }
  0x4c   : > { %v775_v15 = vsub.f32 1.0, %v647_v57  ;;  %v1611_v20 = vmul.f32 %v1483_v28, %v962_v58  ;;  %v1615_v21 = vmul.f32 %v1487_v29, %v966_v59  ;;  %v1292_v10 = vsub.f32 1.0, %v1164_v62 }
  0x4d   : > { %v1296_v11 = vsub.f32 1.0, %v1168_v63  ;;  %v1647_v12 = vpack.c.bf16 %v1551_v5, %v1547_v4  ;;  %v899_v22 = vmax.f32 %v771_v14, 0.0  ;;  %v579_v23 = vsub.f32 %v2374_v37, %v2424_v2 }
  0x4e   : > { %v903_v13 = vmax.f32 %v775_v15, 0.0  ;;  %v1679_v26 = vpack.c.bf16 %v1615_v21, %v1611_v20  ;;  %v1420_v27 = vmax.f32 %v1292_v10, 0.0  ;;  %v583_v31 = vsub.f32 %v2374_v37, %v2426_v3 }
  0x4f   : > { %v1424_v30 = vmax.f32 %v1296_v11, 0.0  ;;  %1695 = vmatpush.bf16.msra.mxu0 %v1647_v12  ;;  %v707_v24 = vand.u32 2147483647, %v579_v23  ;;  %v1100_v25 = vsub.f32 %v2382_v41, %v2392_v46  ;;  %v1104_v28 = vsub.f32 %v2382_v41, %v2394_v47 }
  0x50   : > { %v397_v29 = vmul.f32 16.0, %v2396_v48  ;;  %1709 = vmatpush.bf16.msra.mxu1 %v1679_v26  ;;  %v1548_v32 = vmul.f32 %v1420_v27, %v899_v22  ;;  %v711_v34 = vand.u32 2147483647, %v583_v31  ;;  %v398_v35 = vmul.f32 16.0, %v2398_v49 }
  0x51   : > { %v1552_v33 = vmul.f32 %v1424_v30, %v903_v13  ;;  %v835_v52 = vsub.f32 1.0, %v707_v24  ;;  %v1228_v53 = vand.u32 2147483647, %v1100_v25  ;;  %v1232_v54 = vand.u32 2147483647, %v1104_v28 }
  0x52   : > { %v2456_v55 = vsub.f32 %v237_v16, %v397_v29  ;;  %v839_v57 = vsub.f32 1.0, %v711_v34  ;;  %v2460_v58 = vsub.f32 %v238_v17, %v398_v35  ;;  %v1027_v59 = vsub.f32 %v2380_v40, %v2396_v48 }
  0x53   : > { %v1648_v56 = vpack.c.bf16 %v1552_v33, %v1548_v32  ;;  %v963_v62 = vmax.f32 %v835_v52, 0.0  ;;  %v1356_v63 = vsub.f32 1.0, %v1228_v53  ;;  %v1360_v4 = vsub.f32 1.0, %v1232_v54 }
  0x54   : > { %v506_v5 = vsub.f32 %v2372_v36, %v2456_v55  ;;  %v967_v14 = vmax.f32 %v839_v57, 0.0  ;;  %v510_v6 = vsub.f32 %v2372_v36, %v2460_v58  ;;  %v1031_v16 = vsub.f32 %v2380_v40, %v2398_v49 }
  0x55   : > { %1723 = vmatpush.bf16.msra.mxu2 %v1648_v56  ;;  %v1155_v7 = vand.u32 2147483647, %v1027_v59  ;;  %v1484_v17 = vmax.f32 %v1356_v63, 0.0  ;;  %v1488_v15 = vmax.f32 %v1360_v4, 0.0  ;;  %v349_v21 = vmul.f32 0.0625, %v2402_v50 }
  0x56   : > { %v634_v20 = vand.u32 2147483647, %v506_v5  ;;  %v638_v10 = vand.u32 2147483647, %v510_v6  ;;  %v1159_v11 = vand.u32 2147483647, %v1031_v16  ;;  %v507_v56 = vsub.f32 %v2374_v37, %v2456_v55 }
  0x57   : > { %v1283_v12 = vsub.f32 1.0, %v1155_v7  ;;  %v350_v22 = vmul.f32 0.0625, %v2406_v51  ;;  %v1612_v13 = vmul.f32 %v1484_v17, %v963_v62  ;;  %v1616_v23 = vmul.f32 %v1488_v15, %v967_v14 }
  0x58   : > { %v762_v26 = vsub.f32 1.0, %v634_v20  ;;  %v2472_v27 = vfloor.f32 %v349_v21  ;;  %v766_v30 = vsub.f32 1.0, %v638_v10  ;;  %v1287_v31 = vsub.f32 1.0, %v1159_v11 }
  0x59   : > { %v1411_v24 = vmax.f32 %v1283_v12, 0.0  ;;  %v2474_v25 = vfloor.f32 %v350_v22  ;;  %v1680_v28 = vpack.c.bf16 %v1616_v23, %v1612_v13  ;;  %v511_v63 = vsub.f32 %v2374_v37, %v2460_v58 }
  0x5a   : > { %3325 = vst [vmem:[#allocation11_spill] sm:$0xff] %v2472_v27  ;;  %v890_v29 = vmax.f32 %v762_v26, 0.0  ;;  %v413_v32 = vmul.f32 16.0, %v2472_v27  ;;  %v1091_v50 = vsub.f32 %v2380_v40, %v2472_v27  ;;  %v894_v33 = vmax.f32 %v766_v30, 0.0 }
  0x5b   : > { %3326 = vst [vmem:[#allocation12_spill] sm:$0xff] %v2474_v25  ;;  %v1415_v34 = vmax.f32 %v1287_v31, 0.0  ;;  %v414_v51 = vmul.f32 16.0, %v2474_v25  ;;  %v1095_v35 = vsub.f32 %v2380_v40, %v2474_v25  ;;  %1737 = vmatpush.bf16.msra.mxu3 %v1680_v28  ;;  %v635_v8 = vand.u32 2147483647, %v507_v56 }
  0x5c   : > { %v1539_v52 = vmul.f32 %v1411_v24, %v890_v29  ;;  %v2484_v53 = vsub.f32 %v253_v18, %v413_v32  ;;  %v1219_v54 = vand.u32 2147483647, %v1091_v50  ;;  %v1028_v18 = vsub.f32 %v2382_v41, %v2396_v48 }
  0x5d   : > { %v1543_v57 = vmul.f32 %v1415_v34, %v894_v33  ;;  %v2490_v59 = vsub.f32 %v254_v19, %v414_v51  ;;  %v1223_v62 = vand.u32 2147483647, %v1095_v35  ;;  %v639_v9 = vand.u32 2147483647, %v511_v63 }
  0x5e   : > { %v570_v4 = vsub.f32 %v2372_v36, %v2484_v53  ;;  %v1347_v5 = vsub.f32 1.0, %v1219_v54  ;;  %v763_v17 = vsub.f32 1.0, %v635_v8  ;;  %v1032_v15 = vsub.f32 %v2382_v41, %v2398_v49 }
  0x5f   : > { %3327 = vst [vmem:[#allocation13_spill] sm:$0xff] %v2490_v59  ;;  %v1643_v14 = vpack.c.bf16 %v1543_v57, %v1539_v52  ;;  %v574_v6 = vsub.f32 %v2372_v36, %v2490_v59  ;;  %v1351_v16 = vsub.f32 1.0, %v1223_v62  ;;  %v767_v10 = vsub.f32 1.0, %v639_v9 }
  0x60   : > { %v698_v19 = vand.u32 2147483647, %v570_v4  ;;  %v1475_v7 = vmax.f32 %v1347_v5, 0.0  ;;  %v1156_v11 = vand.u32 2147483647, %v1028_v18  ;;  %v891_v22 = vmax.f32 %v763_v17, 0.0 }
  0x61   : > { %1696 = vmatpush.bf16.msra.mxu0 %v1643_v14  ;;  %v702_v20 = vand.u32 2147483647, %v574_v6  ;;  %v1479_v21 = vmax.f32 %v1351_v16, 0.0  ;;  %v1160_v13 = vand.u32 2147483647, %v1032_v15  ;;  %v571_v23 = vsub.f32 %v2374_v37, %v2484_v53 }
  0x62   : > { %v826_v12 = vsub.f32 1.0, %v698_v19  ;;  %v895_v30 = vmax.f32 %v767_v10, 0.0  ;;  %v1284_v31 = vsub.f32 1.0, %v1156_v11  ;;  %v575_v24 = vsub.f32 %v2374_v37, %v2490_v59 }
  0x63   : > { %v830_v26 = vsub.f32 1.0, %v702_v20  ;;  %v1288_v29 = vsub.f32 1.0, %v1160_v13  ;;  %v699_v32 = vand.u32 2147483647, %v571_v23  ;;  %v1092_v50 = vsub.f32 %v2382_v41, %v2472_v27 }
  0x64   : > { %v954_v28 = vmax.f32 %v826_v12, 0.0  ;;  %v1412_v34 = vmax.f32 %v1284_v31, 0.0  ;;  %v703_v51 = vand.u32 2147483647, %v575_v24  ;;  %v1096_v35 = vsub.f32 %v2382_v41, %v2474_v25 }
  0x65   : > { %v958_v33 = vmax.f32 %v830_v26, 0.0  ;;  %v1416_v54 = vmax.f32 %v1288_v29, 0.0  ;;  %v827_v56 = vsub.f32 1.0, %v699_v32  ;;  %v1220_v57 = vand.u32 2147483647, %v1092_v50 }
  0x66   : > { %v1603_v52 = vmul.f32 %v1475_v7, %v954_v28  ;;  %v1540_v63 = vmul.f32 %v1412_v34, %v891_v22  ;;  %v831_v4 = vsub.f32 1.0, %v703_v51  ;;  %v1224_v5 = vand.u32 2147483647, %v1096_v35 }
  0x67   : > { %v1607_v62 = vmul.f32 %v1479_v21, %v958_v33  ;;  %v1544_v8 = vmul.f32 %v1416_v54, %v895_v30  ;;  %v955_v18 = vmax.f32 %v827_v56, 0.0  ;;  %v1348_v14 = vsub.f32 1.0, %v1220_v57 }
  0x68   : > { %v203_v6 = vadd.s32 80, %v2344_v1  ;;  %v959_v9 = vmax.f32 %v831_v4, 0.0  ;;  %v1352_v19 = vsub.f32 1.0, %v1224_v5  ;;  %v204_v17 = vadd.s32 88, %v2344_v1 }
  0x69   : > { %v1675_v16 = vpack.c.bf16 %v1607_v62, %v1603_v52  ;;  %v1644_v15 = vpack.c.bf16 %v1544_v8, %v1540_v63  ;;  %v1476_v20 = vmax.f32 %v1348_v14, 0.0  ;;  %v219_v10 = vadd.s32 208, %v2344_v1 }
  0x6a   : > { %v235_v7 = vcvt.s32.f32 %v203_v6  ;;  %v1480_v21 = vmax.f32 %v1352_v19, 0.0  ;;  %v236_v11 = vcvt.s32.f32 %v204_v17  ;;  %v220_v12 = vadd.s32 216, %v2344_v1 }
  0x6b   : > { %1710 = vmatpush.bf16.msra.mxu1 %v1675_v16  ;;  %v2515_v22 = vadd.s32 64, %v2344_v1  ;;  %1724 = vmatpush.bf16.msra.mxu2 %v1644_v15  ;;  %v1604_v13 = vmul.f32 %v1476_v20, %v955_v18  ;;  %v251_v26 = vcvt.s32.f32 %v219_v10  ;;  %v2518_v30 = vadd.s32 72, %v2344_v1 }
  0x6c   : > { %v299_v23 = vadd.f32 0.5, %v235_v7  ;;  %v1608_v31 = vmul.f32 %v1480_v21, %v959_v9  ;;  %v300_v24 = vadd.f32 0.5, %v236_v11  ;;  %v252_v28 = vcvt.s32.f32 %v220_v12 }
  0x6d   : > { %v3243_v29 = vcvt.s32.f32 %v2515_v22  ;;  %v315_v50 = vadd.f32 0.5, %v251_v26  ;;  %v3242_v33 = vcvt.s32.f32 %v2518_v30  ;;  %v2523_v34 = vadd.s32 192, %v2344_v1 }
  0x6e   : > { %v331_v32 = vmul.f32 0.0625, %v299_v23  ;;  %v1676_v51 = vpack.c.bf16 %v1608_v31, %v1604_v13  ;;  %v332_v35 = vmul.f32 0.0625, %v300_v24  ;;  %v316_v52 = vadd.f32 0.5, %v252_v28 }
  0x6f   : > { %v297_v54 = vadd.f32 0.5, %v3243_v29  ;;  %v347_v57 = vmul.f32 0.0625, %v315_v50  ;;  %v2531_v62 = vadd.f32 0.5, %v3242_v33  ;;  %v2534_v63 = vadd.s32 200, %v2344_v1 }
  0x70   : > { %v2527_v56 = vfloor.f32 %v331_v32  ;;  %1738 = vmatpush.bf16.msra.mxu3 %v1676_v51  ;;  %v2536_v4 = vfloor.f32 %v332_v35  ;;  %v348_v5 = vmul.f32 0.0625, %v316_v52 }
  0x71   : > { %v2538_v8 = vmul.f32 0.0625, %v297_v54  ;;  %v2544_v16 = vfloor.f32 %v347_v57 }
  0x72   : > { %3328 = vst [vmem:[#allocation14_spill] sm:$0xff] %v2527_v56  ;;  %v395_v14 = vmul.f32 16.0, %v2527_v56  ;;  %v1019_v6 = vsub.f32 %v2380_v40, %v2527_v56  ;;  %v1020_v9 = vsub.f32 %v2382_v41, %v2527_v56  ;;  %v396_v19 = vmul.f32 16.0, %v2536_v4 }
  0x73   : > { %3329 = vst [vmem:[#allocation15_spill] sm:$0xff] %v2536_v4  ;;  %v1023_v17 = vsub.f32 %v2380_v40, %v2536_v4  ;;  %v2551_v15 = vfloor.f32 %v348_v5  ;;  %v1024_v20 = vsub.f32 %v2382_v41, %v2536_v4  ;;  %v411_v12 = vmul.f32 16.0, %v2544_v16 }
  0x74   : > { %3330 = vst [vmem:[#allocation16_spill] sm:$0xff] %v2544_v16  ;;  %v2555_v10 = vsub.f32 %v235_v7, %v395_v14  ;;  %v1147_v21 = vand.u32 2147483647, %v1019_v6  ;;  %v1083_v13 = vsub.f32 %v2380_v40, %v2544_v16  ;;  %v2560_v23 = vsub.f32 %v236_v11, %v396_v19 }
  0x75   : > { %3331 = vst [vmem:[#allocation17_spill] sm:$0xff] %v2551_v15  ;;  %v1151_v31 = vand.u32 2147483647, %v1023_v17  ;;  %v412_v24 = vmul.f32 16.0, %v2551_v15  ;;  %v1087_v32 = vsub.f32 %v2380_v40, %v2551_v15  ;;  %v2567_v7 = vsub.f32 %v251_v26, %v411_v12 }
  0x76   : > { %3332 = vst [vmem:[#allocation18_spill] sm:$0xff] %v2555_v10  ;;  %v498_v50 = vsub.f32 %v2372_v36, %v2555_v10  ;;  %v1275_v51 = vsub.f32 1.0, %v1147_v21  ;;  %v1211_v35 = vand.u32 2147483647, %v1083_v13  ;;  %v502_v52 = vsub.f32 %v2372_v36, %v2560_v23 }
  0x77   : > { %3333 = vst [vmem:[#allocation19_spill] sm:$0xff] %v2560_v23  ;;  %v1279_v54 = vsub.f32 1.0, %v1151_v31  ;;  %v2571_v57 = vsub.f32 %v252_v28, %v412_v24  ;;  %v1215_v11 = vand.u32 2147483647, %v1087_v32  ;;  %v562_v6 = vsub.f32 %v2372_v36, %v2567_v7 }
  0x78   : > { %3334 = vst [vmem:[#allocation20_spill] sm:$0xff] %v2567_v7  ;;  %v626_v5 = vand.u32 2147483647, %v498_v50  ;;  %v1403_v14 = vmax.f32 %v1275_v51, 0.0  ;;  %v1339_v19 = vsub.f32 1.0, %v1211_v35  ;;  %v499_v28 = vsub.f32 %v2374_v37, %v2555_v10 }
  0x79   : > { %3335 = vst [vmem:[#allocation21_spill] sm:$0xff] %v2571_v57  ;;  %v630_v17 = vand.u32 2147483647, %v502_v52  ;;  %v1407_v0 = vmax.f32 %v1279_v54, 0.0  ;;  %v566_v26 = vsub.f32 %v2372_v36, %v2571_v57  ;;  %v1343_v21 = vsub.f32 1.0, %v1215_v11 }
  0x7a   : > { %v754_v12 = vsub.f32 1.0, %v626_v5  ;;  %v690_v13 = vand.u32 2147483647, %v562_v6  ;;  %v1467_v33 = vmax.f32 %v1339_v19, 0.0  ;;  %v503_v50 = vsub.f32 %v2374_v37, %v2560_v23 }
  0x7b   : > { %v758_v31 = vsub.f32 1.0, %v630_v17  ;;  %v694_v24 = vand.u32 2147483647, %v566_v26  ;;  %v1471_v32 = vmax.f32 %v1343_v21, 0.0  ;;  %v627_v52 = vand.u32 2147483647, %v499_v28 }
  0x7c   : > { %v882_v51 = vmax.f32 %v754_v12, 0.0  ;;  %v818_v35 = vsub.f32 1.0, %v690_v13  ;;  %v1148_v54 = vand.u32 2147483647, %v1020_v9  ;;  %v631_v4 = vand.u32 2147483647, %v503_v50 }
  0x7d   : > { %v886_v18 = vmax.f32 %v758_v31, 0.0  ;;  %v822_v29 = vsub.f32 1.0, %v694_v24  ;;  %v1152_v11 = vand.u32 2147483647, %v1024_v20  ;;  %v755_v19 = vsub.f32 1.0, %v627_v52 }
  0x7e   : > { %v1531_v5 = vmul.f32 %v1403_v14, %v882_v51  ;;  %v946_v6 = vmax.f32 %v818_v35, 0.0  ;;  %v1276_v56 = vsub.f32 1.0, %v1148_v54  ;;  %v759_v17 = vsub.f32 1.0, %v631_v4 }
  0x7f   : > { %v1535_v25 = vmul.f32 %v1407_v0, %v886_v18  ;;  %v950_v10 = vmax.f32 %v822_v29, 0.0  ;;  %v1280_v26 = vsub.f32 1.0, %v1152_v11  ;;  %v883_v27 = vmax.f32 %v755_v19, 0.0 }
  0x80   : > { %v1595_v21 = vmul.f32 %v1467_v33, %v946_v6  ;;  %v1404_v59 = vmax.f32 %v1276_v56, 0.0  ;;  %v563_v12 = vsub.f32 %v2374_v37, %v2567_v7  ;;  %v887_v28 = vmax.f32 %v759_v17, 0.0 }
  0x81   : > { %v1639_v13 = vpack.c.bf16 %v1535_v25, %v1531_v5  ;;  %v1599_v9 = vmul.f32 %v1471_v32, %v950_v10  ;;  %v1408_v31 = vmax.f32 %v1280_v26, 0.0  ;;  %v567_v20 = vsub.f32 %v2374_v37, %v2571_v57 }
  0x82   : > { %v1532_v24 = vmul.f32 %v1404_v59, %v883_v27  ;;  %v691_v14 = vand.u32 2147483647, %v563_v12  ;;  %v1084_v0 = vsub.f32 %v2382_v41, %v2544_v16  ;;  %v1088_v56 = vsub.f32 %v2382_v41, %v2551_v15 }
  0x83   : > { %1697 = vmatpush.bf16.msra.mxu0 %v1639_v13  ;;  %v1671_v29 = vpack.c.bf16 %v1599_v9, %v1595_v21  ;;  %v1536_v33 = vmul.f32 %v1408_v31, %v887_v28  ;;  %v330_v4 = vmul.f32 0.0625, %v2531_v62  ;;  %v695_v25 = vand.u32 2147483647, %v567_v20 }
  0x84   : > { %v819_v18 = vsub.f32 1.0, %v691_v14  ;;  %v1212_v10 = vand.u32 2147483647, %v1084_v0  ;;  %v2591_v27 = vfloor.f32 %v2538_v8  ;;  %v1216_v32 = vand.u32 2147483647, %v1088_v56 }
  0x85   : > { %1711 = vmatpush.bf16.msra.mxu1 %v1671_v29  ;;  %v1640_v59 = vpack.c.bf16 %v1536_v33, %v1532_v24  ;;  %v2593_v50 = vfloor.f32 %v330_v4  ;;  %v250_v51 = vcvt.s32.f32 %v2534_v63  ;;  %v823_v35 = vsub.f32 1.0, %v695_v25 }
  0x86   : > { %3336 = vst [vmem:[#allocation22_spill] sm:$0xff] %v2591_v27  ;;  %v947_v52 = vmax.f32 %v819_v18, 0.0  ;;  %v1340_v54 = vsub.f32 1.0, %v1212_v10  ;;  %v393_v11 = vmul.f32 16.0, %v2591_v27  ;;  %v1344_v62 = vsub.f32 1.0, %v1216_v32 }
  0x87   : > { %3337 = vst [vmem:[#allocation23_spill] sm:$0xff] %v2593_v50  ;;  %1725 = vmatpush.bf16.msra.mxu2 %v1640_v59  ;;  %v394_v5 = vmul.f32 16.0, %v2593_v50  ;;  %v1011_v8 = vsub.f32 %v2380_v40, %v2591_v27  ;;  %v1015_v6 = vsub.f32 %v2380_v40, %v2593_v50  ;;  %v951_v19 = vmax.f32 %v823_v35, 0.0 }
  0x88   : > { %v1468_v17 = vmax.f32 %v1340_v54, 0.0  ;;  %v3338_v26 = vcvt.s32.f32 %v2515_v22  ;;  %v3340_v21 = vcvt.s32.f32 %v2523_v34  ;;  %v1472_v13 = vmax.f32 %v1344_v62, 0.0 }
  0x89   : > { %v3341_v9 = vcvt.s32.f32 %v2518_v30  ;;  %v1139_v31 = vand.u32 2147483647, %v1011_v8  ;;  %v1143_v24 = vand.u32 2147483647, %v1015_v6  ;;  %v314_v0 = vadd.f32 0.5, %v250_v51 }
  0x8a   : > { %v2604_v63 = vsub.f32 %v3338_v26, %v393_v11  ;;  %v313_v12 = vadd.f32 0.5, %v3340_v21  ;;  %v1596_v20 = vmul.f32 %v1468_v17, %v947_v52  ;;  %v1600_v33 = vmul.f32 %v1472_v13, %v951_v19 }
  0x8b   : > { %v2610_v28 = vsub.f32 %v3341_v9, %v394_v5  ;;  %v1267_v56 = vsub.f32 1.0, %v1139_v31  ;;  %v1271_v4 = vsub.f32 1.0, %v1143_v24  ;;  %v346_v18 = vmul.f32 0.0625, %v314_v0 }
  0x8c   : > { %3339 = vst [vmem:[#allocation24_spill] sm:$0xff] %v2604_v63  ;;  %v490_v14 = vsub.f32 %v2372_v36, %v2604_v63  ;;  %v345_v29 = vmul.f32 0.0625, %v313_v12  ;;  %v491_v30 = vsub.f32 %v2374_v37, %v2604_v63  ;;  %v1672_v59 = vpack.c.bf16 %v1600_v33, %v1596_v20 }
  0x8d   : > { %3342 = vst [vmem:[#allocation25_spill] sm:$0xff] %v2610_v28  ;;  %v494_v22 = vsub.f32 %v2372_v36, %v2610_v28  ;;  %v1395_v35 = vmax.f32 %v1267_v56, 0.0  ;;  %v1399_v52 = vmax.f32 %v1271_v4, 0.0  ;;  %v2620_v11 = vfloor.f32 %v346_v18 }
  0x8e   : > { %v618_v25 = vand.u32 2147483647, %v490_v14  ;;  %v2616_v10 = vfloor.f32 %v345_v29  ;;  %1739 = vmatpush.bf16.msra.mxu3 %v1672_v59  ;;  %v495_v6 = vsub.f32 %v2374_v37, %v2610_v28  ;;  %v619_v19 = vand.u32 2147483647, %v491_v30 }
  0x8f   : > { %v622_v32 = vand.u32 2147483647, %v494_v22  ;;  %3344 = vst [vmem:[#allocation27_spill] sm:$0xff] %v2620_v11  ;;  %v1012_v17 = vsub.f32 %v2382_v41, %v2591_v27  ;;  %v410_v21 = vmul.f32 16.0, %v2620_v11  ;;  %v3345_v12 = vcvt.s32.f32 %v2523_v34 }
  0x90   : > { %3343 = vst [vmem:[#allocation26_spill] sm:$0xff] %v2616_v10  ;;  %v746_v54 = vsub.f32 1.0, %v618_v25  ;;  %v409_v62 = vmul.f32 16.0, %v2616_v10  ;;  %v1075_v5 = vsub.f32 %v2380_v40, %v2616_v10  ;;  %v1079_v9 = vsub.f32 %v2380_v40, %v2620_v11 }
  0x91   : > { %v750_v8 = vsub.f32 1.0, %v622_v32  ;;  %v623_v20 = vand.u32 2147483647, %v495_v6  ;;  %v747_v14 = vsub.f32 1.0, %v619_v19  ;;  %v2636_v29 = vsub.f32 %v250_v51, %v410_v21 }
  0x92   : > { %v874_v26 = vmax.f32 %v746_v54, 0.0  ;;  %v2632_v13 = vsub.f32 %v3345_v12, %v409_v62  ;;  %v1203_v24 = vand.u32 2147483647, %v1075_v5  ;;  %v1207_v22 = vand.u32 2147483647, %v1079_v9 }
  0x93   : > { %v878_v31 = vmax.f32 %v750_v8, 0.0  ;;  %3347 = vst [vmem:[#allocation29_spill] sm:$0xff] %v2636_v29  ;;  %v751_v25 = vsub.f32 1.0, %v623_v20  ;;  %v875_v34 = vmax.f32 %v747_v14, 0.0  ;;  %v558_v18 = vsub.f32 %v2372_v36, %v2636_v29 }
  0x94   : > { %3346 = vst [vmem:[#allocation28_spill] sm:$0xff] %v2632_v13  ;;  %v1523_v0 = vmul.f32 %v1395_v35, %v874_v26  ;;  %v554_v33 = vsub.f32 %v2372_v36, %v2632_v13  ;;  %v1331_v4 = vsub.f32 1.0, %v1203_v24  ;;  %v1335_v59 = vsub.f32 1.0, %v1207_v22 }
  0x95   : > { %v1527_v56 = vmul.f32 %v1399_v52, %v878_v31  ;;  %v1016_v32 = vsub.f32 %v2382_v41, %v2593_v50  ;;  %v879_v51 = vmax.f32 %v751_v25, 0.0  ;;  %v1140_v62 = vand.u32 2147483647, %v1012_v17 }
  0x96   : > { %v682_v30 = vand.u32 2147483647, %v554_v33  ;;  %v1459_v35 = vmax.f32 %v1331_v4, 0.0  ;;  %v686_v5 = vand.u32 2147483647, %v558_v18  ;;  %v1463_v6 = vmax.f32 %v1335_v59, 0.0 }
  0x97   : > { %v1635_v54 = vpack.c.bf16 %v1527_v56, %v1523_v0  ;;  %v1144_v19 = vand.u32 2147483647, %v1016_v32  ;;  %v1268_v52 = vsub.f32 1.0, %v1140_v62  ;;  %v555_v26 = vsub.f32 %v2374_v37, %v2632_v13 }
  0x98   : > { %v810_v8 = vsub.f32 1.0, %v682_v30  ;;  %v559_v21 = vsub.f32 %v2374_v37, %v2636_v29  ;;  %v1076_v12 = vsub.f32 %v2382_v41, %v2616_v10  ;;  %v814_v9 = vsub.f32 1.0, %v686_v5 }
  0x99   : > { %1698 = vmatpush.bf16.msra.mxu0 %v1635_v54  ;;  %v1272_v24 = vsub.f32 1.0, %v1144_v19  ;;  %v1080_v17 = vsub.f32 %v2382_v41, %v2620_v11  ;;  %v1396_v20 = vmax.f32 %v1268_v52, 0.0  ;;  %v683_v14 = vand.u32 2147483647, %v555_v26 }
  0x9a   : > { %v938_v31 = vmax.f32 %v810_v8, 0.0  ;;  %v687_v0 = vand.u32 2147483647, %v559_v21  ;;  %v199_v33 = vadd.s32 48, %v2344_v1  ;;  %v942_v22 = vmax.f32 %v814_v9, 0.0 }
  0x9b   : > { %v1400_v4 = vmax.f32 %v1272_v24, 0.0  ;;  %v1204_v25 = vand.u32 2147483647, %v1076_v12  ;;  %v1524_v18 = vmul.f32 %v1396_v20, %v875_v34  ;;  %v811_v30 = vsub.f32 1.0, %v683_v14 }
  0x9c   : > { %v1587_v56 = vmul.f32 %v1459_v35, %v938_v31  ;;  %v815_v59 = vsub.f32 1.0, %v687_v0  ;;  %v1208_v32 = vand.u32 2147483647, %v1080_v17  ;;  %v1591_v54 = vmul.f32 %v1463_v6, %v942_v22 }
  0x9d   : > { %v1528_v62 = vmul.f32 %v1400_v4, %v879_v51  ;;  %v1332_v5 = vsub.f32 1.0, %v1204_v25  ;;  %v200_v8 = vadd.s32 56, %v2344_v1  ;;  %v939_v19 = vmax.f32 %v811_v30, 0.0 }
  0x9e   : > { %v943_v11 = vmax.f32 %v815_v59, 0.0  ;;  %v1336_v52 = vsub.f32 1.0, %v1208_v32  ;;  %v231_v26 = vcvt.s32.f32 %v199_v33  ;;  %v1667_v21 = vpack.c.bf16 %v1591_v54, %v1587_v56 }
  0x9f   : > { %v1636_v10 = vpack.c.bf16 %v1528_v62, %v1524_v18  ;;  %v1460_v29 = vmax.f32 %v1332_v5, 0.0  ;;  %v232_v9 = vcvt.s32.f32 %v200_v8  ;;  %v215_v34 = vadd.s32 176, %v2344_v1 }
  0xa0   : > { %v1464_v35 = vmax.f32 %v1336_v52, 0.0  ;;  %v295_v31 = vadd.f32 0.5, %v231_v26  ;;  %v216_v12 = vadd.s32 184, %v2344_v1  ;;  %1712 = vmatpush.bf16.msra.mxu1 %v1667_v21  ;;  %v2657_v24 = vadd.s32 32, %v2344_v1 }
  0xa1   : > { %1726 = vmatpush.bf16.msra.mxu2 %v1636_v10  ;;  %v1588_v51 = vmul.f32 %v1460_v29, %v939_v19  ;;  %v296_v6 = vadd.f32 0.5, %v232_v9  ;;  %v2660_v17 = vadd.s32 40, %v2344_v1  ;;  %v247_v0 = vcvt.s32.f32 %v215_v34 }
  0xa2   : > { %v1592_v20 = vmul.f32 %v1464_v35, %v943_v11  ;;  %v327_v14 = vmul.f32 0.0625, %v295_v31  ;;  %v248_v33 = vcvt.s32.f32 %v216_v12  ;;  %v3263_v56 = vcvt.s32.f32 %v2657_v24 }
  0xa3   : > { %v328_v22 = vmul.f32 0.0625, %v296_v6  ;;  %v3262_v4 = vcvt.s32.f32 %v2660_v17  ;;  %v2665_v25 = vadd.s32 160, %v2344_v1  ;;  %v311_v18 = vadd.f32 0.5, %v247_v0 }
  0xa4   : > { %v1668_v10 = vpack.c.bf16 %v1592_v20, %v1588_v51  ;;  %v2667_v29 = vfloor.f32 %v327_v14  ;;  %v312_v30 = vadd.f32 0.5, %v248_v33  ;;  %v2673_v11 = vadd.f32 0.5, %v3263_v56 }
  0xa5   : > { %v2669_v59 = vfloor.f32 %v328_v22  ;;  %v2677_v32 = vadd.f32 0.5, %v3262_v4  ;;  %v2680_v54 = vadd.s32 168, %v2344_v1  ;;  %v343_v8 = vmul.f32 0.0625, %v311_v18 }
  0xa6   : > { %3348 = vst [vmem:[#allocation30_spill] sm:$0xff] %v2667_v29  ;;  %1740 = vmatpush.bf16.msra.mxu3 %v1668_v10  ;;  %v391_v62 = vmul.f32 16.0, %v2667_v29  ;;  %v1003_v5 = vsub.f32 %v2380_v40, %v2667_v29  ;;  %v344_v19 = vmul.f32 0.0625, %v312_v30  ;;  %v1004_v35 = vsub.f32 %v2382_v41, %v2667_v29 }
  0xa7   : > { %3349 = vst [vmem:[#allocation31_spill] sm:$0xff] %v2669_v59  ;;  %v392_v52 = vmul.f32 16.0, %v2669_v59  ;;  %v1007_v21 = vsub.f32 %v2380_v40, %v2669_v59  ;;  %v1008_v31 = vsub.f32 %v2382_v41, %v2669_v59  ;;  %v2694_v51 = vfloor.f32 %v343_v8 }
  0xa8   : > { %v2692_v34 = vsub.f32 %v231_v26, %v391_v62  ;;  %v1131_v12 = vand.u32 2147483647, %v1003_v5  ;;  %v2696_v6 = vfloor.f32 %v344_v19  ;;  %v1132_v22 = vand.u32 2147483647, %v1004_v35 }
  0xa9   : > { %3351 = vst [vmem:[#allocation33_spill] sm:$0xff] %v2694_v51  ;;  %v2698_v20 = vsub.f32 %v232_v9, %v392_v52  ;;  %v1135_v14 = vand.u32 2147483647, %v1007_v21  ;;  %v1136_v10 = vand.u32 2147483647, %v1008_v31  ;;  %v407_v4 = vmul.f32 16.0, %v2694_v51 }
  0xaa   : > { %3350 = vst [vmem:[#allocation32_spill] sm:$0xff] %v2692_v34  ;;  %v482_v18 = vsub.f32 %v2372_v36, %v2692_v34  ;;  %v1259_v30 = vsub.f32 1.0, %v1131_v12  ;;  %v408_v56 = vmul.f32 16.0, %v2696_v6  ;;  %v1067_v5 = vsub.f32 %v2380_v40, %v2694_v51 }
  0xab   : > { %3352 = vst [vmem:[#allocation34_spill] sm:$0xff] %v2696_v6  ;;  %v486_v26 = vsub.f32 %v2372_v36, %v2698_v20  ;;  %v1263_v62 = vsub.f32 1.0, %v1135_v14  ;;  %v1071_v9 = vsub.f32 %v2380_v40, %v2696_v6  ;;  %v2710_v52 = vsub.f32 %v247_v0, %v407_v4 }
  0xac   : > { %3353 = vst [vmem:[#allocation35_spill] sm:$0xff] %v2698_v20  ;;  %v610_v8 = vand.u32 2147483647, %v482_v18  ;;  %v1387_v19 = vmax.f32 %v1259_v30, 0.0  ;;  %v2712_v21 = vsub.f32 %v248_v33, %v408_v56  ;;  %v1195_v12 = vand.u32 2147483647, %v1067_v5 }
  0xad   : > { %v614_v35 = vand.u32 2147483647, %v486_v26  ;;  %v1391_v31 = vmax.f32 %v1263_v62, 0.0  ;;  %v483_v59 = vsub.f32 %v2374_v37, %v2692_v34  ;;  %v546_v14 = vsub.f32 %v2372_v36, %v2710_v52 }
  0xae   : > { %3354 = vst [vmem:[#allocation36_spill] sm:$0xff] %v2712_v21  ;;  %v738_v29 = vsub.f32 1.0, %v610_v8  ;;  %v550_v13 = vsub.f32 %v2372_v36, %v2712_v21  ;;  %v1199_v50 = vand.u32 2147483647, %v1071_v9  ;;  %v1323_v30 = vsub.f32 1.0, %v1195_v12 }
  0xaf   : > { %v742_v18 = vsub.f32 1.0, %v614_v35  ;;  %v487_v0 = vsub.f32 %v2374_v37, %v2698_v20  ;;  %v611_v33 = vand.u32 2147483647, %v483_v59  ;;  %v674_v4 = vand.u32 2147483647, %v546_v14 }
  0xb0   : > { %v866_v56 = vmax.f32 %v738_v29, 0.0  ;;  %v678_v26 = vand.u32 2147483647, %v550_v13  ;;  %v1327_v62 = vsub.f32 1.0, %v1199_v50  ;;  %v1451_v34 = vmax.f32 %v1323_v30, 0.0 }
  0xb1   : > { %v870_v5 = vmax.f32 %v742_v18, 0.0  ;;  %v615_v8 = vand.u32 2147483647, %v487_v0  ;;  %v739_v27 = vsub.f32 1.0, %v611_v33  ;;  %v802_v63 = vsub.f32 1.0, %v674_v4 }
  0xb2   : > { %v1515_v28 = vmul.f32 %v1387_v19, %v866_v56  ;;  %v806_v15 = vsub.f32 1.0, %v678_v26  ;;  %v1455_v16 = vmax.f32 %v1327_v62, 0.0  ;;  %v1260_v12 = vsub.f32 1.0, %v1132_v22 }
  0xb3   : > { %v1519_v57 = vmul.f32 %v1391_v31, %v870_v5  ;;  %v743_v9 = vsub.f32 1.0, %v615_v8  ;;  %v867_v35 = vmax.f32 %v739_v27, 0.0  ;;  %v930_v7 = vmax.f32 %v802_v63, 0.0 }
  0xb4   : > { %v934_v23 = vmax.f32 %v806_v15, 0.0  ;;  %v1264_v20 = vsub.f32 1.0, %v1136_v10  ;;  %v547_v29 = vsub.f32 %v2374_v37, %v2710_v52  ;;  %v1388_v59 = vmax.f32 %v1260_v12, 0.0 }
  0xb5   : > { %v1631_v13 = vpack.c.bf16 %v1519_v57, %v1515_v28  ;;  %v871_v50 = vmax.f32 %v743_v9, 0.0  ;;  %v551_v14 = vsub.f32 %v2374_v37, %v2712_v21  ;;  %v1579_v19 = vmul.f32 %v1451_v34, %v930_v7 }
  0xb6   : > { %v1583_v18 = vmul.f32 %v1455_v16, %v934_v23  ;;  %v1392_v30 = vmax.f32 %v1264_v20, 0.0  ;;  %v675_v0 = vand.u32 2147483647, %v547_v29  ;;  %v1516_v31 = vmul.f32 %v1388_v59, %v867_v35 }
  0xb7   : > { %1699 = vmatpush.bf16.msra.mxu0 %v1631_v13  ;;  %v679_v27 = vand.u32 2147483647, %v551_v14  ;;  %v1068_v15 = vsub.f32 %v2382_v41, %v2694_v51  ;;  %v1072_v63 = vsub.f32 %v2382_v41, %v2696_v6  ;;  %v325_v10 = vmul.f32 0.0625, %v2673_v11 }
  0xb8   : > { %v1663_v22 = vpack.c.bf16 %v1583_v18, %v1579_v19  ;;  %v1520_v57 = vmul.f32 %v1392_v30, %v871_v50  ;;  %v803_v28 = vsub.f32 1.0, %v675_v0  ;;  %v326_v16 = vmul.f32 0.0625, %v2677_v32 }
  0xb9   : > { %v807_v33 = vsub.f32 1.0, %v679_v27  ;;  %v1196_v56 = vand.u32 2147483647, %v1068_v15  ;;  %v1200_v7 = vand.u32 2147483647, %v1072_v63  ;;  %v2732_v20 = vfloor.f32 %v325_v10 }
  0xba   : > { %1713 = vmatpush.bf16.msra.mxu1 %v1663_v22  ;;  %v1632_v23 = vpack.c.bf16 %v1520_v57, %v1516_v31  ;;  %v931_v34 = vmax.f32 %v803_v28, 0.0  ;;  %v245_v4 = vcvt.s32.f32 %v2665_v25  ;;  %v2735_v8 = vfloor.f32 %v326_v16 }
  0xbb   : > { %3355 = vst [vmem:[#allocation37_spill] sm:$0xff] %v2732_v20  ;;  %v935_v26 = vmax.f32 %v807_v33, 0.0  ;;  %v1324_v62 = vsub.f32 1.0, %v1196_v56  ;;  %v1328_v5 = vsub.f32 1.0, %v1200_v7  ;;  %v389_v11 = vmul.f32 16.0, %v2732_v20 }
  0xbc   : > { %3356 = vst [vmem:[#allocation38_spill] sm:$0xff] %v2735_v8  ;;  %1727 = vmatpush.bf16.msra.mxu2 %v1632_v23  ;;  %v995_v9 = vsub.f32 %v2380_v40, %v2732_v20  ;;  %v246_v32 = vcvt.s32.f32 %v2680_v54  ;;  %v309_v35 = vadd.f32 0.5, %v245_v4  ;;  %v390_v13 = vmul.f32 16.0, %v2735_v8 }
  0xbd   : > { %v1452_v12 = vmax.f32 %v1324_v62, 0.0  ;;  %v1456_v29 = vmax.f32 %v1328_v5, 0.0  ;;  %v999_v25 = vsub.f32 %v2380_v40, %v2735_v8  ;;  %v3357_v50 = vcvt.s32.f32 %v2657_v24 }
  0xbe   : > { %v1123_v14 = vand.u32 2147483647, %v995_v9  ;;  %v310_v19 = vadd.f32 0.5, %v246_v32  ;;  %v341_v18 = vmul.f32 0.0625, %v309_v35  ;;  %v3359_v31 = vcvt.s32.f32 %v2660_v17 }
  0xbf   : > { %v2746_v59 = vsub.f32 %v3357_v50, %v389_v11  ;;  %v1580_v30 = vmul.f32 %v1452_v12, %v931_v34  ;;  %v1584_v0 = vmul.f32 %v1456_v29, %v935_v26  ;;  %v1127_v27 = vand.u32 2147483647, %v999_v25 }
  0xc0   : > { %v2750_v54 = vsub.f32 %v3359_v31, %v390_v13  ;;  %v1251_v63 = vsub.f32 1.0, %v1123_v14  ;;  %v342_v22 = vmul.f32 0.0625, %v310_v19  ;;  %v2754_v57 = vfloor.f32 %v341_v18 }
  0xc1   : > { %3358 = vst [vmem:[#allocation39_spill] sm:$0xff] %v2746_v59  ;;  %v474_v15 = vsub.f32 %v2372_v36, %v2746_v59  ;;  %v1664_v24 = vpack.c.bf16 %v1584_v0, %v1580_v30  ;;  %v1255_v10 = vsub.f32 1.0, %v1127_v27  ;;  %v475_v33 = vsub.f32 %v2374_v37, %v2746_v59 }
  0xc2   : > { %3360 = vst [vmem:[#allocation40_spill] sm:$0xff] %v2750_v54  ;;  %v478_v28 = vsub.f32 %v2372_v36, %v2750_v54  ;;  %v1379_v17 = vmax.f32 %v1251_v63, 0.0  ;;  %v2760_v7 = vfloor.f32 %v342_v22  ;;  %v405_v16 = vmul.f32 16.0, %v2754_v57 }
  0xc3   : > { %3361 = vst [vmem:[#allocation41_spill] sm:$0xff] %v2754_v57  ;;  %v602_v56 = vand.u32 2147483647, %v474_v15  ;;  %1741 = vmatpush.bf16.msra.mxu3 %v1664_v24  ;;  %v1383_v34 = vmax.f32 %v1255_v10, 0.0  ;;  %v1059_v26 = vsub.f32 %v2380_v40, %v2754_v57  ;;  %v479_v62 = vsub.f32 %v2374_v37, %v2750_v54 }
  0xc4   : > { %3362 = vst [vmem:[#allocation42_spill] sm:$0xff] %v2760_v7  ;;  %v606_v23 = vand.u32 2147483647, %v478_v28  ;;  %v406_v11 = vmul.f32 16.0, %v2760_v7  ;;  %v2768_v9 = vsub.f32 %v245_v4, %v405_v16  ;;  %v1063_v35 = vsub.f32 %v2380_v40, %v2760_v7 }
  0xc5   : > { %v730_v5 = vsub.f32 1.0, %v602_v56  ;;  %v1187_v29 = vand.u32 2147483647, %v1059_v26  ;;  %v603_v13 = vand.u32 2147483647, %v475_v33  ;;  %v996_v25 = vsub.f32 %v2382_v41, %v2732_v20 }
  0xc6   : > { %3363 = vst [vmem:[#allocation43_spill] sm:$0xff] %v2768_v9  ;;  %v734_v12 = vsub.f32 1.0, %v606_v23  ;;  %v2774_v14 = vsub.f32 %v246_v32, %v406_v11  ;;  %v538_v19 = vsub.f32 %v2372_v36, %v2768_v9  ;;  %v1191_v18 = vand.u32 2147483647, %v1063_v35 }
  0xc7   : > { %v858_v50 = vmax.f32 %v730_v5, 0.0  ;;  %v1315_v0 = vsub.f32 1.0, %v1187_v29  ;;  %v607_v4 = vand.u32 2147483647, %v479_v62  ;;  %v731_v31 = vsub.f32 1.0, %v603_v13 }
  0xc8   : > { %3364 = vst [vmem:[#allocation44_spill] sm:$0xff] %v2774_v14  ;;  %v862_v30 = vmax.f32 %v734_v12, 0.0  ;;  %v542_v15 = vsub.f32 %v2372_v36, %v2774_v14  ;;  %v666_v63 = vand.u32 2147483647, %v538_v19  ;;  %v1319_v22 = vsub.f32 1.0, %v1191_v18 }
  0xc9   : > { %v1507_v27 = vmul.f32 %v1379_v17, %v858_v50  ;;  %v1443_v28 = vmax.f32 %v1315_v0, 0.0  ;;  %v735_v10 = vsub.f32 1.0, %v607_v4  ;;  %v859_v33 = vmax.f32 %v731_v31, 0.0 }
  0xca   : > { %v1511_v24 = vmul.f32 %v1383_v34, %v862_v30  ;;  %v670_v32 = vand.u32 2147483647, %v542_v15  ;;  %v794_v56 = vsub.f32 1.0, %v666_v63  ;;  %v1447_v16 = vmax.f32 %v1319_v22, 0.0 }
  0xcb   : > { %v1000_v23 = vsub.f32 %v2382_v41, %v2735_v8  ;;  %v863_v5 = vmax.f32 %v735_v10, 0.0  ;;  %v1124_v62 = vand.u32 2147483647, %v996_v25  ;;  %v539_v17 = vsub.f32 %v2374_v37, %v2768_v9 }
  0xcc   : > { %v1627_v26 = vpack.c.bf16 %v1511_v24, %v1507_v27  ;;  %v798_v11 = vsub.f32 1.0, %v670_v32  ;;  %v922_v35 = vmax.f32 %v794_v56, 0.0  ;;  %v543_v34 = vsub.f32 %v2374_v37, %v2774_v14 }
  0xcd   : > { %v1128_v12 = vand.u32 2147483647, %v1000_v23  ;;  %v1252_v29 = vsub.f32 1.0, %v1124_v62  ;;  %v667_v13 = vand.u32 2147483647, %v539_v17  ;;  %v1060_v50 = vsub.f32 %v2382_v41, %v2754_v57 }
  0xce   : > { %1700 = vmatpush.bf16.msra.mxu0 %v1627_v26  ;;  %v1064_v19 = vsub.f32 %v2382_v41, %v2760_v7  ;;  %v926_v18 = vmax.f32 %v798_v11, 0.0  ;;  %v1571_v25 = vmul.f32 %v1443_v28, %v922_v35  ;;  %v671_v0 = vand.u32 2147483647, %v543_v34 }
  0xcf   : > { %v1256_v30 = vsub.f32 1.0, %v1128_v12  ;;  %v1380_v4 = vmax.f32 %v1252_v29, 0.0  ;;  %v795_v31 = vsub.f32 1.0, %v667_v13  ;;  %v1188_v27 = vand.u32 2147483647, %v1060_v50 }
  0xd0   : > { %v1192_v15 = vand.u32 2147483647, %v1064_v19  ;;  %v1575_v63 = vmul.f32 %v1447_v16, %v926_v18  ;;  %v799_v24 = vsub.f32 1.0, %v671_v0  ;;  %v195_v10 = vadd.s32 16, %v2344_v1 }
  0xd1   : > { %v1384_v22 = vmax.f32 %v1256_v30, 0.0  ;;  %v1508_v32 = vmul.f32 %v1380_v4, %v859_v33  ;;  %v923_v56 = vmax.f32 %v795_v31, 0.0  ;;  %v1316_v23 = vsub.f32 1.0, %v1188_v27 }
  0xd2   : > { %v1320_v26 = vsub.f32 1.0, %v1192_v15  ;;  %v1659_v62 = vpack.c.bf16 %v1575_v63, %v1571_v25  ;;  %v927_v7 = vmax.f32 %v799_v24, 0.0  ;;  %v196_v28 = vadd.s32 24, %v2344_v1 }
  0xd3   : > { %v1512_v17 = vmul.f32 %v1384_v22, %v863_v5  ;;  %v1444_v11 = vmax.f32 %v1316_v23, 0.0  ;;  %v227_v12 = vcvt.s32.f32 %v195_v10  ;;  %v211_v34 = vadd.s32 144, %v2344_v1 }
  0xd4   : > { %v1448_v35 = vmax.f32 %v1320_v26, 0.0  ;;  %1714 = vmatpush.bf16.msra.mxu1 %v1659_v62  ;;  %v228_v29 = vcvt.s32.f32 %v196_v28  ;;  %v212_v13 = vadd.s32 152, %v2344_v1  ;;  %v194_v33 = vadd.s32 8, %v2344_v1 }
  0xd5   : > { %v1628_v16 = vpack.c.bf16 %v1512_v17, %v1508_v32  ;;  %v1572_v50 = vmul.f32 %v1444_v11, %v923_v56  ;;  %v291_v18 = vadd.f32 0.5, %v227_v12  ;;  %v243_v25 = vcvt.s32.f32 %v211_v34 }
  0xd6   : > { %v1576_v19 = vmul.f32 %v1448_v35, %v927_v7  ;;  %v292_v5 = vadd.f32 0.5, %v228_v29  ;;  %v244_v30 = vcvt.s32.f32 %v212_v13  ;;  %v2796_v0 = vcvt.s32.f32 %v2344_v1 }
  0xd7   : > { %1728 = vmatpush.bf16.msra.mxu2 %v1628_v16  ;;  %v2798_v4 = vcvt.s32.f32 %v194_v33  ;;  %v323_v27 = vmul.f32 0.0625, %v291_v18  ;;  %v307_v15 = vadd.f32 0.5, %v243_v25  ;;  %v2801_v63 = vadd.s32 128, %v2344_v1 }
  0xd8   : > { %v1660_v31 = vpack.c.bf16 %v1576_v19, %v1572_v50  ;;  %v324_v22 = vmul.f32 0.0625, %v292_v5  ;;  %v308_v24 = vadd.f32 0.5, %v244_v30  ;;  %v289_v7 = vadd.f32 0.5, %v2796_v0 }
  0xd9   : > { %v290_v10 = vadd.f32 0.5, %v2798_v4  ;;  %v2805_v32 = vfloor.f32 %v323_v27  ;;  %v339_v56 = vmul.f32 0.0625, %v307_v15  ;;  %v2808_v23 = vadd.s32 136, %v2344_v1 }
  0xda   : > { %1742 = vmatpush.bf16.msra.mxu3 %v1660_v31  ;;  %v2811_v62 = vfloor.f32 %v324_v22  ;;  %v340_v17 = vmul.f32 0.0625, %v308_v24  ;;  %v2813_v28 = vmul.f32 0.0625, %v289_v7 }
  0xdb   : > { %3365 = vst [vmem:[#allocation45_spill] sm:$0xff] %v2805_v32  ;;  %v2815_v11 = vmul.f32 0.0625, %v290_v10  ;;  %v387_v35 = vmul.f32 16.0, %v2805_v32  ;;  %v987_v34 = vsub.f32 %v2380_v40, %v2805_v32  ;;  %v2820_v16 = vfloor.f32 %v339_v56 }
  0xdc   : > { %3366 = vst [vmem:[#allocation46_spill] sm:$0xff] %v2811_v62  ;;  %v988_v1 = vsub.f32 %v2382_v41, %v2805_v32  ;;  %v388_v13 = vmul.f32 16.0, %v2811_v62  ;;  %v991_v33 = vsub.f32 %v2380_v40, %v2811_v62  ;;  %v2827_v50 = vfloor.f32 %v340_v17 }
  0xdd   : > { %v992_v19 = vsub.f32 %v2382_v41, %v2811_v62  ;;  %v2831_v18 = vsub.f32 %v227_v12, %v387_v35  ;;  %v1115_v5 = vand.u32 2147483647, %v987_v34  ;;  %v403_v31 = vmul.f32 16.0, %v2820_v16 }
  0xde   : > { %v1051_v27 = vsub.f32 %v2380_v40, %v2820_v16  ;;  %v2836_v15 = vsub.f32 %v228_v29, %v388_v13  ;;  %v1119_v22 = vand.u32 2147483647, %v991_v33  ;;  %v404_v24 = vmul.f32 16.0, %v2827_v50 }
  0xdf   : > { %3367 = vst [vmem:[#allocation47_spill] sm:$0xff] %v2831_v18  ;;  %v1055_v7 = vsub.f32 %v2380_v40, %v2827_v50  ;;  %v466_v10 = vsub.f32 %v2372_v36, %v2831_v18  ;;  %v1243_v56 = vsub.f32 1.0, %v1115_v5  ;;  %v2843_v12 = vsub.f32 %v243_v25, %v403_v31 }
  0xe0   : > { %v1179_v17 = vand.u32 2147483647, %v1051_v27  ;;  %v470_v35 = vsub.f32 %v2372_v36, %v2836_v15  ;;  %v1247_v34 = vsub.f32 1.0, %v1119_v22  ;;  %v2847_v26 = vsub.f32 %v244_v30, %v404_v24 }
  0xe1   : > { %v1183_v29 = vand.u32 2147483647, %v1055_v7  ;;  %v594_v13 = vand.u32 2147483647, %v466_v10  ;;  %v1371_v33 = vmax.f32 %v1243_v56, 0.0  ;;  %v530_v62 = vsub.f32 %v2372_v36, %v2843_v12 }
  0xe2   : > { %v1307_v32 = vsub.f32 1.0, %v1179_v17  ;;  %v598_v57 = vand.u32 2147483647, %v470_v35  ;;  %v1375_v14 = vmax.f32 %v1247_v34, 0.0  ;;  %v534_v25 = vsub.f32 %v2372_v36, %v2847_v26 }
  0xe3   : > { %v1311_v5 = vsub.f32 1.0, %v1183_v29  ;;  %v722_v31 = vsub.f32 1.0, %v594_v13  ;;  %v658_v27 = vand.u32 2147483647, %v530_v62  ;;  %v467_v30 = vsub.f32 %v2374_v37, %v2831_v18 }
  0xe4   : > { %v1435_v9 = vmax.f32 %v1307_v32, 0.0  ;;  %v726_v22 = vsub.f32 1.0, %v598_v57  ;;  %v662_v24 = vand.u32 2147483647, %v534_v25  ;;  %v471_v10 = vsub.f32 %v2374_v37, %v2836_v15 }
  0xe5   : > { %v1439_v7 = vmax.f32 %v1311_v5, 0.0  ;;  %v850_v56 = vmax.f32 %v722_v31, 0.0  ;;  %v786_v17 = vsub.f32 1.0, %v658_v27  ;;  %v595_v35 = vand.u32 2147483647, %v467_v30 }
  0xe6   : > { %v1116_v34 = vand.u32 2147483647, %v988_v1  ;;  %v854_v8 = vmax.f32 %v726_v22, 0.0  ;;  %v790_v20 = vsub.f32 1.0, %v662_v24  ;;  %v599_v54 = vand.u32 2147483647, %v471_v10 }
  0xe7   : > { %v1120_v29 = vand.u32 2147483647, %v992_v19  ;;  %v1499_v13 = vmul.f32 %v1371_v33, %v850_v56  ;;  %v914_v62 = vmax.f32 %v786_v17, 0.0  ;;  %v723_v32 = vsub.f32 1.0, %v595_v35 }
  0xe8   : > { %v1244_v59 = vsub.f32 1.0, %v1116_v34  ;;  %v1503_v6 = vmul.f32 %v1375_v14, %v854_v8  ;;  %v918_v18 = vmax.f32 %v790_v20, 0.0  ;;  %v727_v57 = vsub.f32 1.0, %v599_v54 }
  0xe9   : > { %v1248_v25 = vsub.f32 1.0, %v1120_v29  ;;  %v1563_v5 = vmul.f32 %v1435_v9, %v914_v62  ;;  %v851_v51 = vmax.f32 %v723_v32, 0.0  ;;  %v531_v31 = vsub.f32 %v2374_v37, %v2843_v12 }
  0xea   : > { %v1372_v21 = vmax.f32 %v1244_v59, 0.0  ;;  %v1623_v27 = vpack.c.bf16 %v1503_v6, %v1499_v13  ;;  %v1567_v1 = vmul.f32 %v1439_v7, %v918_v18  ;;  %v855_v30 = vmax.f32 %v727_v57, 0.0 }
  0xeb   : > { %v1376_v22 = vmax.f32 %v1248_v25, 0.0  ;;  %v535_v19 = vsub.f32 %v2374_v37, %v2847_v26  ;;  %v659_v33 = vand.u32 2147483647, %v531_v31  ;;  %v1052_v20 = vsub.f32 %v2382_v41, %v2820_v16 }
  0xec   : > { %v1500_v24 = vmul.f32 %v1372_v21, %v851_v51  ;;  %1701 = vmatpush.bf16.msra.mxu0 %v1623_v27  ;;  %v1655_v8 = vpack.c.bf16 %v1567_v1, %v1563_v5  ;;  %v1056_v59 = vsub.f32 %v2382_v41, %v2827_v50  ;;  %v2866_v9 = vfloor.f32 %v2813_v28 }
  0xed   : > { %v1504_v54 = vmul.f32 %v1376_v22, %v855_v30  ;;  %v663_v6 = vand.u32 2147483647, %v535_v19  ;;  %v787_v14 = vsub.f32 1.0, %v659_v33  ;;  %v1180_v18 = vand.u32 2147483647, %v1052_v20 }
  0xee   : > { %v2869_v51 = vfloor.f32 %v2815_v11  ;;  %1715 = vmatpush.bf16.msra.mxu1 %v1655_v8  ;;  %v1184_v7 = vand.u32 2147483647, %v1056_v59  ;;  %v385_v10 = vmul.f32 16.0, %v2866_v9  ;;  %v979_v56 = vsub.f32 %v2380_v40, %v2866_v9 }
  0xef   : > { %v1624_v21 = vpack.c.bf16 %v1504_v54, %v1500_v24  ;;  %v791_v17 = vsub.f32 1.0, %v663_v6  ;;  %v915_v35 = vmax.f32 %v787_v14, 0.0  ;;  %v1308_v34 = vsub.f32 1.0, %v1180_v18 }
  0xf0   : > { %v386_v28 = vmul.f32 16.0, %v2869_v51  ;;  %v1312_v29 = vsub.f32 1.0, %v1184_v7  ;;  %v2876_v13 = vsub.f32 %v2796_v0, %v385_v10  ;;  %v983_v11 = vsub.f32 %v2380_v40, %v2869_v51 }
  0xf1   : > { %1729 = vmatpush.bf16.msra.mxu2 %v1624_v21  ;;  %v1107_v62 = vand.u32 2147483647, %v979_v56  ;;  %v919_v32 = vmax.f32 %v791_v17, 0.0  ;;  %v1436_v57 = vmax.f32 %v1308_v34, 0.0  ;;  %v242_v5 = vcvt.s32.f32 %v2808_v23 }
  0xf2   : > { %v2881_v25 = vsub.f32 %v2798_v4, %v386_v28  ;;  %v1440_v31 = vmax.f32 %v1312_v29, 0.0  ;;  %v458_v27 = vsub.f32 %v2372_v36, %v2876_v13  ;;  %v1111_v1 = vand.u32 2147483647, %v983_v11 }
  0xf3   : > { %v1235_v30 = vsub.f32 1.0, %v1107_v62  ;;  %v1564_v22 = vmul.f32 %v1436_v57, %v915_v35  ;;  %v3368_v19 = vcvt.s32.f32 %v2801_v63  ;;  %v306_v20 = vadd.f32 0.5, %v242_v5 }
  0xf4   : > { %v462_v24 = vsub.f32 %v2372_v36, %v2881_v25  ;;  %v1568_v8 = vmul.f32 %v1440_v31, %v919_v32  ;;  %v586_v54 = vand.u32 2147483647, %v458_v27  ;;  %v1239_v59 = vsub.f32 1.0, %v1111_v1 }
  0xf5   : > { %v305_v33 = vadd.f32 0.5, %v3368_v19  ;;  %v1363_v6 = vmax.f32 %v1235_v30, 0.0  ;;  %v338_v18 = vmul.f32 0.0625, %v306_v20  ;;  %v459_v21 = vsub.f32 %v2374_v37, %v2876_v13 }
  0xf6   : > { %v590_v14 = vand.u32 2147483647, %v462_v24  ;;  %v1656_v7 = vpack.c.bf16 %v1568_v8, %v1564_v22  ;;  %v714_v10 = vsub.f32 1.0, %v586_v54  ;;  %v1367_v56 = vmax.f32 %v1239_v59, 0.0 }
  0xf7   : > { %v337_v23 = vmul.f32 0.0625, %v305_v33  ;;  %v463_v17 = vsub.f32 %v2374_v37, %v2881_v25  ;;  %v2896_v28 = vfloor.f32 %v338_v18  ;;  %v587_v29 = vand.u32 2147483647, %v459_v21 }
  0xf8   : > { %v718_v35 = vsub.f32 1.0, %v590_v14  ;;  %1743 = vmatpush.bf16.msra.mxu3 %v1656_v7  ;;  %v842_v11 = vmax.f32 %v714_v10, 0.0  ;;  %v980_v32 = vsub.f32 %v2382_v41, %v2866_v9  ;;  %v984_v57 = vsub.f32 %v2382_v41, %v2869_v51 }
  0xf9   : > { %v2894_v34 = vfloor.f32 %v337_v23  ;;  %v591_v62 = vand.u32 2147483647, %v463_v17  ;;  %v402_v1 = vmul.f32 16.0, %v2896_v28  ;;  %v1047_v24 = vsub.f32 %v2380_v40, %v2896_v28 }
  0xfa   : > { %v846_v31 = vmax.f32 %v718_v35, 0.0  ;;  %v1491_v22 = vmul.f32 %v1363_v6, %v842_v11  ;;  %v715_v19 = vsub.f32 1.0, %v587_v29  ;;  %v3369_v8 = vcvt.s32.f32 %v2801_v63 }
  0xfb   : > { %v401_v27 = vmul.f32 16.0, %v2894_v34  ;;  %v1043_v30 = vsub.f32 %v2380_v40, %v2894_v34  ;;  %v719_v33 = vsub.f32 1.0, %v591_v62  ;;  %v2912_v59 = vsub.f32 %v242_v5, %v402_v1 }
  0xfc   : > { %v1495_v20 = vmul.f32 %v1367_v56, %v846_v31  ;;  %v1175_v23 = vand.u32 2147483647, %v1047_v24  ;;  %v843_v18 = vmax.f32 %v715_v19, 0.0  ;;  %v1108_v7 = vand.u32 2147483647, %v980_v32 }
  0xfd   : > { %v2910_v54 = vsub.f32 %v3369_v8, %v401_v27  ;;  %v1171_v14 = vand.u32 2147483647, %v1043_v30  ;;  %v847_v21 = vmax.f32 %v719_v33, 0.0  ;;  %v526_v40 = vsub.f32 %v2372_v36, %v2912_v59 }
  0xfe   : > { %v1619_v10 = vpack.c.bf16 %v1495_v20, %v1491_v22  ;;  %v1303_v56 = vsub.f32 1.0, %v1175_v23  ;;  %v1112_v35 = vand.u32 2147483647, %v984_v57  ;;  %v1236_v63 = vsub.f32 1.0, %v1108_v7 }
  0xff   : > { %v522_v6 = vsub.f32 %v2372_v36, %v2910_v54  ;;  %v1299_v17 = vsub.f32 1.0, %v1171_v14  ;;  %v523_v5 = vsub.f32 %v2374_v37, %v2910_v54  ;;  %v654_v11 = vand.u32 2147483647, %v526_v40 }
 0x100   : > { %1702 = vmatpush.bf16.msra.mxu0 %v1619_v10  ;;  %v527_v32 = vsub.f32 %v2374_v37, %v2912_v59  ;;  %v1431_v31 = vmax.f32 %v1303_v56, 0.0  ;;  %v1240_v27 = vsub.f32 1.0, %v1112_v35  ;;  %v1364_v1 = vmax.f32 %v1236_v63, 0.0 }
 0x101   : > { %v650_v29 = vand.u32 2147483647, %v522_v6  ;;  %v1427_v62 = vmax.f32 %v1299_v17, 0.0  ;;  %v651_v30 = vand.u32 2147483647, %v523_v5  ;;  %v782_v36 = vsub.f32 1.0, %v654_v11 }
 0x102   : > { %v655_v24 = vand.u32 2147483647, %v527_v32  ;;  %v1044_v57 = vsub.f32 %v2382_v41, %v2894_v34  ;;  %v1368_v19 = vmax.f32 %v1240_v27, 0.0  ;;  %v1492_v33 = vmul.f32 %v1364_v1, %v843_v18 }
 0x103   : > { %v778_v22 = vsub.f32 1.0, %v650_v29  ;;  %v779_v20 = vsub.f32 1.0, %v651_v30  ;;  %v1048_v8 = vsub.f32 %v2382_v41, %v2896_v28  ;;  %v910_v23 = vmax.f32 %v782_v36, 0.0 }
 0x104   : > { %v783_v7 = vsub.f32 1.0, %v655_v24  ;;  %v1172_v37 = vand.u32 2147483647, %v1044_v57  ;;  %v1496_v10 = vmul.f32 %v1368_v19, %v847_v21  ;;  %v516_v17 = vsub.f32 %v2376_v38, %v2420_v60 }
 0x105   : > { %v906_v14 = vmax.f32 %v778_v22, 0.0  ;;  %v907_v6 = vmax.f32 %v779_v20, 0.0  ;;  %v1176_v40 = vand.u32 2147483647, %v1048_v8  ;;  %v1559_v35 = vmul.f32 %v1431_v31, %v910_v23 }
 0x106   : > { %v911_v63 = vmax.f32 %v783_v7, 0.0  ;;  %v1300_v5 = vsub.f32 1.0, %v1172_v37  ;;  %v1620_v29 = vpack.c.bf16 %v1496_v10, %v1492_v33  ;;  %v520_v11 = vsub.f32 %v2376_v38, %v2422_v61 }
 0x107   : > { %v1555_v56 = vmul.f32 %v1427_v62, %v906_v14  ;;  %v1304_v18 = vsub.f32 1.0, %v1176_v40  ;;  %v644_v41 = vand.u32 2147483647, %v516_v17  ;;  %v1037_v21 = vsub.f32 %v2384_v42, %v2388_v44 }
 0x108   : > { %v1428_v27 = vmax.f32 %v1300_v5, 0.0  ;;  %v1041_v1 = vsub.f32 %v2384_v42, %v2390_v45  ;;  %1730 = vmatpush.bf16.msra.mxu2 %v1620_v29  ;;  %v648_v62 = vand.u32 2147483647, %v520_v11  ;;  %v580_v22 = vsub.f32 %v2376_v38, %v2424_v2 }
 0x109   : > { %v1651_v32 = vpack.c.bf16 %v1559_v35, %v1555_v56  ;;  %v1432_v30 = vmax.f32 %v1304_v18, 0.0  ;;  %v772_v31 = vsub.f32 1.0, %v644_v41  ;;  %v1165_v24 = vand.u32 2147483647, %v1037_v21 }
 0x10a   : > { %v1556_v36 = vmul.f32 %v1428_v27, %v907_v6  ;;  %v1169_v57 = vand.u32 2147483647, %v1041_v1  ;;  %v584_v19 = vsub.f32 %v2376_v38, %v2426_v3  ;;  %v776_v20 = vsub.f32 1.0, %v648_v62 }
 0x10b   : > { %1716 = vmatpush.bf16.msra.mxu1 %v1651_v32  ;;  %v1560_v33 = vmul.f32 %v1432_v30, %v911_v63  ;;  %v900_v8 = vmax.f32 %v772_v31, 0.0  ;;  %v708_v14 = vand.u32 2147483647, %v580_v22  ;;  %v1293_v23 = vsub.f32 1.0, %v1165_v24 }
 0x10c   : > { %v1297_v7 = vsub.f32 1.0, %v1169_v57  ;;  %v712_v37 = vand.u32 2147483647, %v584_v19  ;;  %v1101_v10 = vsub.f32 %v2384_v42, %v2392_v46  ;;  %v904_v17 = vmax.f32 %v776_v20, 0.0 }
 0x10d   : > { %v1652_v40 = vpack.c.bf16 %v1560_v33, %v1556_v36  ;;  %v836_v56 = vsub.f32 1.0, %v708_v14  ;;  %v1105_v6 = vsub.f32 %v2384_v42, %v2394_v47  ;;  %v1421_v35 = vmax.f32 %v1293_v23, 0.0  ;;  %v2016_v33 = vld [vmem:[#allocation2] sm:$0xf] }
 0x10e   : > { %v1425_v5 = vmax.f32 %v1297_v7, 0.0  ;;  %v840_v29 = vsub.f32 1.0, %v712_v37  ;;  %v1229_v18 = vand.u32 2147483647, %v1101_v10  ;;  %v517_v41 = vsub.f32 %v2378_v39, %v2420_v60  ;;  %v2028_v10 = vld [vmem:[#allocation2 + $0x4] sm:$0xf0] }
 0x10f   : > { %1744 = vmatpush.bf16.msra.mxu3 %v1652_v40  ;;  %v964_v63 = vmax.f32 %v836_v56, 0.0  ;;  %v1233_v11 = vand.u32 2147483647, %v1105_v6  ;;  %v521_v32 = vsub.f32 %v2378_v39, %v2422_v61  ;;  %v1549_v27 = vmul.f32 %v1421_v35, %v900_v8  ;;  %v2027_v6 = vld [vmem:[#allocation2 + $0x4] sm:$0xf] }
 0x110   : > { %v1553_v21 = vmul.f32 %v1425_v5, %v904_v17  ;;  %v968_v1 = vmax.f32 %v840_v29, 0.0  ;;  %v1357_v30 = vsub.f32 1.0, %v1229_v18  ;;  %v645_v31 = vand.u32 2147483647, %v517_v41  ;;  %v2018_v18 = vld [vmem:[#allocation2 + $0x8] sm:$0xf0] }
 0x111   : > { %v1361_v62 = vsub.f32 1.0, %v1233_v11  ;;  %v649_v22 = vand.u32 2147483647, %v521_v32  ;;  %v1038_v36 = vsub.f32 %v2386_v43, %v2388_v44  ;;  %v1042_v19 = vsub.f32 %v2386_v43, %v2390_v45 }
 0x112   : > { %v1649_v24 = vpack.c.bf16 %v1553_v21, %v1549_v27  ;;  %v1485_v57 = vmax.f32 %v1357_v30, 0.0  ;;  %v581_v60 = vsub.f32 %v2378_v39, %v2424_v2  ;;  %v773_v20 = vsub.f32 1.0, %v645_v31 }
 0x113   : > { %v1489_v61 = vmax.f32 %v1361_v62, 0.0  ;;  %v777_v8 = vsub.f32 1.0, %v649_v22  ;;  %v1166_v14 = vand.u32 2147483647, %v1038_v36  ;;  %v1170_v7 = vand.u32 2147483647, %v1042_v19 }
 0x114   : > { %1751 = vmatpush.bf16.msrb.mxu0 %v1649_v24  ;;  %v1613_v23 = vmul.f32 %v1485_v57, %v964_v63  ;;  %v585_v37 = vsub.f32 %v2378_v39, %v2426_v3  ;;  %v709_v44 = vand.u32 2147483647, %v581_v60  ;;  %v901_v17 = vmax.f32 %v773_v20, 0.0 }
 0x115   : > { %v1617_v40 = vmul.f32 %v1489_v61, %v968_v1  ;;  %v905_v56 = vmax.f32 %v777_v8, 0.0  ;;  %v1294_v45 = vsub.f32 1.0, %v1166_v14  ;;  %v1298_v35 = vsub.f32 1.0, %v1170_v7 }
 0x116   : > { %v713_v2 = vand.u32 2147483647, %v585_v37  ;;  %v837_v5 = vsub.f32 1.0, %v709_v44  ;;  %v1102_v29 = vsub.f32 %v2386_v43, %v2392_v46  ;;  %v1106_v41 = vsub.f32 %v2386_v43, %v2394_v47 }
 0x117   : > { %v1681_v11 = vpack.c.bf16 %v1617_v40, %v1613_v23  ;;  %v1422_v63 = vmax.f32 %v1294_v45, 0.0  ;;  %v2958_v3 = vor.u32 %v2028_v10, %v2016_v33  ;;  %v1426_v32 = vmax.f32 %v1298_v35, 0.0 }
 0x118   : > { %v841_v27 = vsub.f32 1.0, %v713_v2  ;;  %v965_v21 = vmax.f32 %v837_v5, 0.0  ;;  %v1230_v1 = vand.u32 2147483647, %v1102_v29  ;;  %v1234_v62 = vand.u32 2147483647, %v1106_v41 }
 0x119   : > { %1765 = vmatpush.bf16.msrb.mxu1 %v1681_v11  ;;  %v1550_v30 = vmul.f32 %v1422_v63, %v901_v17  ;;  %1731 = vmatmul.bf16.vlgmr.msra.gmra.mxu2 %v2958_v3  ;;  %v2961_v31 = vor.u32 %v2027_v6, %v2018_v18  ;;  %v508_v46 = vsub.f32 %v2376_v38, %v2456_v55  ;;  %v3370_v17 = vld [vmem:[#allocation13_spill] sm:$0xff]  ;;  %v3371_v63 = vld [vmem:[#allocation11_spill] sm:$0xff] }
 0x11a   : > { %v1554_v22 = vmul.f32 %v1426_v32, %v905_v56  ;;  %v969_v36 = vmax.f32 %v841_v27, 0.0  ;;  %v1358_v24 = vsub.f32 1.0, %v1230_v1  ;;  %v512_v47 = vsub.f32 %v2376_v38, %v2460_v58  ;;  %1703 = vmatmul.bf16.vlgmr.msra.gmra.mxu0 %v2958_v3 }
 0x11b   : > { %v1362_v57 = vsub.f32 1.0, %v1234_v62  ;;  %1745 = vmatmul.bf16.vlgmr.msra.gmra.mxu3 %v2961_v31  ;;  %v636_v19 = vand.u32 2147483647, %v508_v46  ;;  %v1029_v60 = vsub.f32 %v2384_v42, %v2396_v48  ;;  %v1033_v33 = vsub.f32 %v2384_v42, %v2398_v49  ;;  %1717 = vmatmul.bf16.vlgmr.msra.gmra.mxu1 %v2961_v31 }
 0x11c   : > { %v1650_v61 = vpack.c.bf16 %v1554_v22, %v1550_v30  ;;  %v1486_v20 = vmax.f32 %v1358_v24, 0.0  ;;  %v640_v8 = vand.u32 2147483647, %v512_v47  ;;  %v572_v14 = vsub.f32 %v2376_v38, %v2484_v53  ;;  %v3372_v30 = vld [vmem:[#allocation12_spill] sm:$0xff] }
 0x11d   : > { %v1490_v23 = vmax.f32 %v1362_v57, 0.0  ;;  %v764_v7 = vsub.f32 1.0, %v636_v19  ;;  %v1157_v37 = vand.u32 2147483647, %v1029_v60  ;;  %v1161_v44 = vand.u32 2147483647, %v1033_v33 }
 0x11e   : > { %1779 = vmatpush.bf16.msrb.mxu2 %v1650_v61  ;;  %v1614_v10 = vmul.f32 %v1486_v20, %v965_v21  ;;  %v768_v40 = vsub.f32 1.0, %v640_v8  ;;  %v576_v56 = vsub.f32 %v2376_v38, %v3370_v17  ;;  %v700_v45 = vand.u32 2147483647, %v572_v14 }
 0x11f   : > { %v1618_v6 = vmul.f32 %v1490_v23, %v969_v36  ;;  %v892_v35 = vmax.f32 %v764_v7, 0.0  ;;  %v1285_v2 = vsub.f32 1.0, %v1157_v37  ;;  %v1289_v5 = vsub.f32 1.0, %v1161_v44 }
 0x120   : > { %v896_v29 = vmax.f32 %v768_v40, 0.0  ;;  %v704_v18 = vand.u32 2147483647, %v576_v56  ;;  %v828_v11 = vsub.f32 1.0, %v700_v45  ;;  %v1093_v41 = vsub.f32 %v2384_v42, %v3371_v63 }
 0x121   : > { %v1682_v32 = vpack.c.bf16 %v1618_v6, %v1614_v10  ;;  %v1413_v27 = vmax.f32 %v1285_v2, 0.0  ;;  %v1417_v1 = vmax.f32 %v1289_v5, 0.0  ;;  %v1097_v21 = vsub.f32 %v2384_v42, %v3372_v30 }
 0x122   : > { %v832_v62 = vsub.f32 1.0, %v704_v18  ;;  %v956_v46 = vmax.f32 %v828_v11, 0.0  ;;  %v1221_v22 = vand.u32 2147483647, %v1093_v41  ;;  %v509_v36 = vsub.f32 %v2378_v39, %v2456_v55 }
 0x123   : > { %1793 = vmatpush.bf16.msrb.mxu3 %v1682_v32  ;;  %v1541_v24 = vmul.f32 %v1413_v27, %v892_v35  ;;  %v1545_v47 = vmul.f32 %v1417_v1, %v896_v29  ;;  %v1225_v57 = vand.u32 2147483647, %v1097_v21  ;;  %v513_v19 = vsub.f32 %v2378_v39, %v2460_v58 }
 0x124   : > { %v960_v60 = vmax.f32 %v832_v62, 0.0  ;;  %v1349_v33 = vsub.f32 1.0, %v1221_v22  ;;  %v637_v61 = vand.u32 2147483647, %v509_v36  ;;  %v1030_v20 = vsub.f32 %v2386_v43, %v2396_v48 }
 0x125   : > { %v1645_v8 = vpack.c.bf16 %v1545_v47, %v1541_v24  ;;  %v1353_v14 = vsub.f32 1.0, %v1225_v57  ;;  %v641_v23 = vand.u32 2147483647, %v513_v19  ;;  %v1034_v7 = vsub.f32 %v2386_v43, %v2398_v49  ;;  %v3374_v19 = vld [vmem:[#allocation19_spill] sm:$0xff] }
 0x126   : > { %v1477_v55 = vmax.f32 %v1349_v33, 0.0  ;;  %v765_v37 = vsub.f32 1.0, %v637_v61  ;;  %v1158_v44 = vand.u32 2147483647, %v1030_v20  ;;  %v573_v10 = vsub.f32 %v2378_v39, %v2484_v53 }
 0x127   : > { %1752 = vmatpush.bf16.msrb.mxu0 %v1645_v8  ;;  %v1481_v58 = vmax.f32 %v1353_v14, 0.0  ;;  %v769_v40 = vsub.f32 1.0, %v641_v23  ;;  %v1162_v56 = vand.u32 2147483647, %v1034_v7  ;;  %v577_v45 = vsub.f32 %v2378_v39, %v3370_v17  ;;  %v3373_v17 = vld [vmem:[#allocation18_spill] sm:$0xff]  ;;  %v3376_v8 = vld [vmem:[#allocation15_spill] sm:$0xff] }
 0x128   : > { %v1605_v48 = vmul.f32 %v1477_v55, %v956_v46  ;;  %v893_v6 = vmax.f32 %v765_v37, 0.0  ;;  %v1286_v35 = vsub.f32 1.0, %v1158_v44  ;;  %v701_v2 = vand.u32 2147483647, %v573_v10  ;;  %v3377_v37 = vld [vmem:[#allocation20_spill] sm:$0xff] }
 0x129   : > { %v1609_v5 = vmul.f32 %v1481_v58, %v960_v60  ;;  %v897_v29 = vmax.f32 %v769_v40, 0.0  ;;  %v1290_v49 = vsub.f32 1.0, %v1162_v56  ;;  %v705_v18 = vand.u32 2147483647, %v577_v45 }
 0x12a   : > { %v1414_v11 = vmax.f32 %v1286_v35, 0.0  ;;  %v829_v41 = vsub.f32 1.0, %v701_v2  ;;  %v1094_v53 = vsub.f32 %v2386_v43, %v3371_v63  ;;  %v1098_v32 = vsub.f32 %v2386_v43, %v3372_v30  ;;  %v3375_v30 = vld [vmem:[#allocation14_spill] sm:$0xff] }
 0x12b   : > { %v1677_v27 = vpack.c.bf16 %v1609_v5, %v1605_v48  ;;  %v1418_v1 = vmax.f32 %v1290_v49, 0.0  ;;  %v833_v21 = vsub.f32 1.0, %v705_v18  ;;  %v500_v62 = vsub.f32 %v2376_v38, %v3373_v17 }
 0x12c   : > { %v1542_v46 = vmul.f32 %v1414_v11, %v893_v6  ;;  %v957_v22 = vmax.f32 %v829_v41, 0.0  ;;  %v1222_v36 = vand.u32 2147483647, %v1094_v53  ;;  %v1226_v24 = vand.u32 2147483647, %v1098_v32  ;;  %v3378_v6 = vld [vmem:[#allocation21_spill] sm:$0xff] }
 0x12d   : > { %1766 = vmatpush.bf16.msrb.mxu1 %v1677_v27  ;;  %v1546_v47 = vmul.f32 %v1418_v1, %v897_v29  ;;  %v961_v57 = vmax.f32 %v833_v21, 0.0  ;;  %v504_v60 = vsub.f32 %v2376_v38, %v3374_v19  ;;  %v628_v63 = vand.u32 2147483647, %v500_v62  ;;  %v3379_v32 = vld [vmem:[#allocation16_spill] sm:$0xff] }
 0x12e   : > { %v1350_v33 = vsub.f32 1.0, %v1222_v36  ;;  %v1354_v61 = vsub.f32 1.0, %v1226_v24  ;;  %v1021_v20 = vsub.f32 %v2384_v42, %v3375_v30  ;;  %v1025_v14 = vsub.f32 %v2384_v42, %v3376_v8 }
 0x12f   : > { %v1646_v23 = vpack.c.bf16 %v1546_v47, %v1542_v46  ;;  %v632_v7 = vand.u32 2147483647, %v504_v60  ;;  %v756_v55 = vsub.f32 1.0, %v628_v63  ;;  %v564_v44 = vsub.f32 %v2376_v38, %v3377_v37  ;;  %v3380_v46 = vld [vmem:[#allocation17_spill] sm:$0xff] }
 0x130   : > { %v1478_v10 = vmax.f32 %v1350_v33, 0.0  ;;  %v1482_v58 = vmax.f32 %v1354_v61, 0.0  ;;  %v1149_v40 = vand.u32 2147483647, %v1021_v20  ;;  %v1153_v56 = vand.u32 2147483647, %v1025_v14 }
 0x131   : > { %1780 = vmatpush.bf16.msrb.mxu2 %v1646_v23  ;;  %v760_v45 = vsub.f32 1.0, %v632_v7  ;;  %v884_v48 = vmax.f32 %v756_v55, 0.0  ;;  %v568_v35 = vsub.f32 %v2376_v38, %v3378_v6  ;;  %v692_v2 = vand.u32 2147483647, %v564_v44 }
 0x132   : > { %v1606_v5 = vmul.f32 %v1478_v10, %v957_v22  ;;  %v1610_v29 = vmul.f32 %v1482_v58, %v961_v57  ;;  %v1277_v49 = vsub.f32 1.0, %v1149_v40  ;;  %v1281_v18 = vsub.f32 1.0, %v1153_v56 }
 0x133   : > { %v888_v11 = vmax.f32 %v760_v45, 0.0  ;;  %v696_v41 = vand.u32 2147483647, %v568_v35  ;;  %v820_v53 = vsub.f32 1.0, %v692_v2  ;;  %v1085_v27 = vsub.f32 %v2384_v42, %v3379_v32 }
 0x134   : > { %v1678_v1 = vpack.c.bf16 %v1610_v29, %v1606_v5  ;;  %v1405_v21 = vmax.f32 %v1277_v49, 0.0  ;;  %v1409_v62 = vmax.f32 %v1281_v18, 0.0  ;;  %v1089_v36 = vsub.f32 %v2384_v42, %v3380_v46 }
 0x135   : > { %v824_v24 = vsub.f32 1.0, %v696_v41  ;;  %v948_v47 = vmax.f32 %v820_v53, 0.0  ;;  %v1213_v60 = vand.u32 2147483647, %v1085_v27  ;;  %v501_v22 = vsub.f32 %v2378_v39, %v3373_v17 }
 0x136   : > { %1794 = vmatpush.bf16.msrb.mxu3 %v1678_v1  ;;  %v1533_v57 = vmul.f32 %v1405_v21, %v884_v48  ;;  %v1537_v63 = vmul.f32 %v1409_v62, %v888_v11  ;;  %v1217_v33 = vand.u32 2147483647, %v1089_v36  ;;  %v505_v61 = vsub.f32 %v2378_v39, %v3374_v19 }
 0x137   : > { %v952_v20 = vmax.f32 %v824_v24, 0.0  ;;  %v1341_v14 = vsub.f32 1.0, %v1213_v60  ;;  %v629_v23 = vand.u32 2147483647, %v501_v22  ;;  %v1022_v7 = vsub.f32 %v2386_v43, %v3375_v30 }
 0x138   : > { %v1641_v55 = vpack.c.bf16 %v1537_v63, %v1533_v57  ;;  %v1345_v44 = vsub.f32 1.0, %v1217_v33  ;;  %v633_v10 = vand.u32 2147483647, %v505_v61  ;;  %v1026_v58 = vsub.f32 %v2386_v43, %v3376_v8  ;;  %v3382_v61 = vld [vmem:[#allocation25_spill] sm:$0xff] }
 0x139   : > { %v1469_v17 = vmax.f32 %v1341_v14, 0.0  ;;  %v757_v40 = vsub.f32 1.0, %v629_v23  ;;  %v1150_v56 = vand.u32 2147483647, %v1022_v7  ;;  %v565_v45 = vsub.f32 %v2378_v39, %v3377_v37 }
 0x13a   : > { %1753 = vmatpush.bf16.msrb.mxu0 %v1641_v55  ;;  %v1473_v19 = vmax.f32 %v1345_v44, 0.0  ;;  %v761_v48 = vsub.f32 1.0, %v633_v10  ;;  %v1154_v35 = vand.u32 2147483647, %v1026_v58  ;;  %v569_v2 = vsub.f32 %v2378_v39, %v3378_v6  ;;  %v3381_v6 = vld [vmem:[#allocation24_spill] sm:$0xff]  ;;  %v3384_v55 = vld [vmem:[#allocation23_spill] sm:$0xff] }
 0x13b   : > { %v1597_v30 = vmul.f32 %v1469_v17, %v948_v47  ;;  %v885_v5 = vmax.f32 %v757_v40, 0.0  ;;  %v1278_v29 = vsub.f32 1.0, %v1150_v56  ;;  %v693_v49 = vand.u32 2147483647, %v565_v45  ;;  %v3385_v40 = vld [vmem:[#allocation28_spill] sm:$0xff] }
 0x13c   : > { %v1601_v18 = vmul.f32 %v1473_v19, %v952_v20  ;;  %v889_v11 = vmax.f32 %v761_v48, 0.0  ;;  %v1282_v8 = vsub.f32 1.0, %v1154_v35  ;;  %v697_v41 = vand.u32 2147483647, %v569_v2 }
 0x13d   : > { %v1406_v53 = vmax.f32 %v1278_v29, 0.0  ;;  %v821_v27 = vsub.f32 1.0, %v693_v49  ;;  %v1086_v37 = vsub.f32 %v2386_v43, %v3379_v32  ;;  %v1090_v1 = vsub.f32 %v2386_v43, %v3380_v46  ;;  %v3383_v46 = vld [vmem:[#allocation22_spill] sm:$0xff] }
 0x13e   : > { %v1673_v21 = vpack.c.bf16 %v1601_v18, %v1597_v30  ;;  %v1410_v62 = vmax.f32 %v1282_v8, 0.0  ;;  %v825_v36 = vsub.f32 1.0, %v697_v41  ;;  %v492_v24 = vsub.f32 %v2376_v38, %v3381_v6 }
 0x13f   : > { %v1534_v47 = vmul.f32 %v1406_v53, %v885_v5  ;;  %v949_v60 = vmax.f32 %v821_v27, 0.0  ;;  %v1214_v22 = vand.u32 2147483647, %v1086_v37  ;;  %v1218_v57 = vand.u32 2147483647, %v1090_v1  ;;  %v3386_v5 = vld [vmem:[#allocation29_spill] sm:$0xff] }
 0x140   : > { %1767 = vmatpush.bf16.msrb.mxu1 %v1673_v21  ;;  %v1538_v63 = vmul.f32 %v1410_v62, %v889_v11  ;;  %v953_v33 = vmax.f32 %v825_v36, 0.0  ;;  %v496_v20 = vsub.f32 %v2376_v38, %v3382_v61  ;;  %v620_v32 = vand.u32 2147483647, %v492_v24  ;;  %v3387_v1 = vld [vmem:[#allocation26_spill] sm:$0xff] }
 0x141   : > { %v1342_v14 = vsub.f32 1.0, %v1214_v22  ;;  %v1346_v23 = vsub.f32 1.0, %v1218_v57  ;;  %v1013_v7 = vsub.f32 %v2384_v42, %v3383_v46  ;;  %v1017_v44 = vsub.f32 %v2384_v42, %v3384_v55 }
 0x142   : > { %v1642_v10 = vpack.c.bf16 %v1538_v63, %v1534_v47  ;;  %v624_v58 = vand.u32 2147483647, %v496_v20  ;;  %v748_v17 = vsub.f32 1.0, %v620_v32  ;;  %v556_v56 = vsub.f32 %v2376_v38, %v3385_v40  ;;  %v3388_v47 = vld [vmem:[#allocation27_spill] sm:$0xff] }
 0x143   : > { %v1470_v45 = vmax.f32 %v1342_v14, 0.0  ;;  %v1474_v19 = vmax.f32 %v1346_v23, 0.0  ;;  %v1141_v48 = vand.u32 2147483647, %v1013_v7  ;;  %v1145_v35 = vand.u32 2147483647, %v1017_v44 }
 0x144   : > { %1781 = vmatpush.bf16.msrb.mxu2 %v1642_v10  ;;  %v752_v2 = vsub.f32 1.0, %v624_v58  ;;  %v876_v30 = vmax.f32 %v748_v17, 0.0  ;;  %v560_v29 = vsub.f32 %v2376_v38, %v3386_v5  ;;  %v684_v49 = vand.u32 2147483647, %v556_v56 }
 0x145   : > { %v1598_v18 = vmul.f32 %v1470_v45, %v949_v60  ;;  %v1602_v11 = vmul.f32 %v1474_v19, %v953_v33  ;;  %v1269_v8 = vsub.f32 1.0, %v1141_v48  ;;  %v1273_v41 = vsub.f32 1.0, %v1145_v35 }
 0x146   : > { %v880_v53 = vmax.f32 %v752_v2, 0.0  ;;  %v688_v27 = vand.u32 2147483647, %v560_v29  ;;  %v812_v37 = vsub.f32 1.0, %v684_v49  ;;  %v1077_v21 = vsub.f32 %v2384_v42, %v3387_v1 }
 0x147   : > { %v1674_v62 = vpack.c.bf16 %v1602_v11, %v1598_v18  ;;  %v1397_v36 = vmax.f32 %v1269_v8, 0.0  ;;  %v1401_v24 = vmax.f32 %v1273_v41, 0.0  ;;  %v1081_v22 = vsub.f32 %v2384_v42, %v3388_v47 }
 0x148   : > { %v816_v57 = vsub.f32 1.0, %v688_v27  ;;  %v940_v63 = vmax.f32 %v812_v37, 0.0  ;;  %v1205_v20 = vand.u32 2147483647, %v1077_v21  ;;  %v493_v60 = vsub.f32 %v2378_v39, %v3381_v6 }
 0x149   : > { %1795 = vmatpush.bf16.msrb.mxu3 %v1674_v62  ;;  %v1525_v33 = vmul.f32 %v1397_v36, %v876_v30  ;;  %v1529_v32 = vmul.f32 %v1401_v24, %v880_v53  ;;  %v1209_v14 = vand.u32 2147483647, %v1081_v22  ;;  %v497_v23 = vsub.f32 %v2378_v39, %v3382_v61 }
 0x14a   : > { %v944_v7 = vmax.f32 %v816_v57, 0.0  ;;  %v1333_v44 = vsub.f32 1.0, %v1205_v20  ;;  %v621_v10 = vand.u32 2147483647, %v493_v60  ;;  %v1014_v58 = vsub.f32 %v2386_v43, %v3383_v46 }
 0x14b   : > { %v1637_v17 = vpack.c.bf16 %v1529_v32, %v1525_v33  ;;  %v1337_v56 = vsub.f32 1.0, %v1209_v14  ;;  %v625_v45 = vand.u32 2147483647, %v497_v23  ;;  %v1018_v19 = vsub.f32 %v2386_v43, %v3384_v55  ;;  %v3390_v23 = vld [vmem:[#allocation35_spill] sm:$0xff] }
 0x14c   : > { %v1461_v6 = vmax.f32 %v1333_v44, 0.0  ;;  %v749_v48 = vsub.f32 1.0, %v621_v10  ;;  %v1142_v35 = vand.u32 2147483647, %v1014_v58  ;;  %v557_v2 = vsub.f32 %v2378_v39, %v3385_v40 }
 0x14d   : > { %1754 = vmatpush.bf16.msrb.mxu0 %v1637_v17  ;;  %v1465_v61 = vmax.f32 %v1337_v56, 0.0  ;;  %v753_v30 = vsub.f32 1.0, %v625_v45  ;;  %v1146_v29 = vand.u32 2147483647, %v1018_v19  ;;  %v561_v49 = vsub.f32 %v2378_v39, %v3386_v5  ;;  %v3389_v5 = vld [vmem:[#allocation32_spill] sm:$0xff]  ;;  %v3392_v17 = vld [vmem:[#allocation31_spill] sm:$0xff] }
 0x14e   : > { %v1589_v46 = vmul.f32 %v1461_v6, %v940_v63  ;;  %v877_v18 = vmax.f32 %v749_v48, 0.0  ;;  %v1270_v11 = vsub.f32 1.0, %v1142_v35  ;;  %v685_v8 = vand.u32 2147483647, %v557_v2 }
 0x14f   : > { %v1593_v41 = vmul.f32 %v1465_v61, %v944_v7  ;;  %v881_v53 = vmax.f32 %v753_v30, 0.0  ;;  %v1274_v55 = vsub.f32 1.0, %v1146_v29  ;;  %v689_v27 = vand.u32 2147483647, %v561_v49 }
 0x150   : > { %v1398_v37 = vmax.f32 %v1270_v11, 0.0  ;;  %v813_v21 = vsub.f32 1.0, %v685_v8  ;;  %v1078_v40 = vsub.f32 %v2386_v43, %v3387_v1  ;;  %v1082_v62 = vsub.f32 %v2386_v43, %v3388_v47  ;;  %v3391_v47 = vld [vmem:[#allocation30_spill] sm:$0xff] }
 0x151   : > { %v1669_v36 = vpack.c.bf16 %v1593_v41, %v1589_v46  ;;  %v1402_v24 = vmax.f32 %v1274_v55, 0.0  ;;  %v817_v22 = vsub.f32 1.0, %v689_v27  ;;  %v484_v57 = vsub.f32 %v2376_v38, %v3389_v5  ;;  %v3393_v46 = vld [vmem:[#allocation36_spill] sm:$0xff] }
 0x152   : > { %v1526_v63 = vmul.f32 %v1398_v37, %v877_v18  ;;  %v941_v20 = vmax.f32 %v813_v21, 0.0  ;;  %v1206_v60 = vand.u32 2147483647, %v1078_v40  ;;  %v1210_v33 = vand.u32 2147483647, %v1082_v62  ;;  %v3394_v40 = vld [vmem:[#allocation33_spill] sm:$0xff] }
 0x153   : > { %1768 = vmatpush.bf16.msrb.mxu1 %v1669_v36  ;;  %v1530_v32 = vmul.f32 %v1402_v24, %v881_v53  ;;  %v945_v14 = vmax.f32 %v817_v22, 0.0  ;;  %v488_v7 = vsub.f32 %v2376_v38, %v3390_v23  ;;  %v612_v1 = vand.u32 2147483647, %v484_v57  ;;  %v3395_v57 = vld [vmem:[#allocation34_spill] sm:$0xff] }
 0x154   : > { %v1334_v44 = vsub.f32 1.0, %v1206_v60  ;;  %v1338_v10 = vsub.f32 1.0, %v1210_v33  ;;  %v1005_v58 = vsub.f32 %v2384_v42, %v3391_v47  ;;  %v1009_v56 = vsub.f32 %v2384_v42, %v3392_v17 }
 0x155   : > { %v1638_v45 = vpack.c.bf16 %v1530_v32, %v1526_v63  ;;  %v616_v19 = vand.u32 2147483647, %v488_v7  ;;  %v740_v6 = vsub.f32 1.0, %v612_v1  ;;  %v548_v48 = vsub.f32 %v2376_v38, %v2710_v52 }
 0x156   : > { %v1462_v35 = vmax.f32 %v1334_v44, 0.0  ;;  %v1466_v2 = vmax.f32 %v1338_v10, 0.0  ;;  %v1133_v61 = vand.u32 2147483647, %v1005_v58  ;;  %v1137_v30 = vand.u32 2147483647, %v1009_v56 }
 0x157   : > { %1782 = vmatpush.bf16.msrb.mxu2 %v1638_v45  ;;  %v744_v29 = vsub.f32 1.0, %v616_v19  ;;  %v868_v49 = vmax.f32 %v740_v6, 0.0  ;;  %v552_v18 = vsub.f32 %v2376_v38, %v3393_v46  ;;  %v676_v11 = vand.u32 2147483647, %v548_v48 }
 0x158   : > { %v1590_v8 = vmul.f32 %v1462_v35, %v941_v20  ;;  %v1594_v41 = vmul.f32 %v1466_v2, %v945_v14  ;;  %v1261_v53 = vsub.f32 1.0, %v1133_v61  ;;  %v1265_v55 = vsub.f32 1.0, %v1137_v30 }
 0x159   : > { %v872_v27 = vmax.f32 %v744_v29, 0.0  ;;  %v680_v37 = vand.u32 2147483647, %v552_v18  ;;  %v804_v21 = vsub.f32 1.0, %v676_v11  ;;  %v1069_v62 = vsub.f32 %v2384_v42, %v3394_v40 }
 0x15a   : > { %v1670_v36 = vpack.c.bf16 %v1594_v41, %v1590_v8  ;;  %v1389_v24 = vmax.f32 %v1261_v53, 0.0  ;;  %v1393_v22 = vmax.f32 %v1265_v55, 0.0  ;;  %v1073_v63 = vsub.f32 %v2384_v42, %v3395_v57 }
 0x15b   : > { %v808_v60 = vsub.f32 1.0, %v680_v37  ;;  %v932_v33 = vmax.f32 %v804_v21, 0.0  ;;  %v1197_v32 = vand.u32 2147483647, %v1069_v62  ;;  %v485_v20 = vsub.f32 %v2378_v39, %v3389_v5 }
 0x15c   : > { %1796 = vmatpush.bf16.msrb.mxu3 %v1670_v36  ;;  %v1517_v14 = vmul.f32 %v1389_v24, %v868_v49  ;;  %v1521_v7 = vmul.f32 %v1393_v22, %v872_v27  ;;  %v1201_v1 = vand.u32 2147483647, %v1073_v63  ;;  %v489_v44 = vsub.f32 %v2378_v39, %v3390_v23 }
 0x15d   : > { %v936_v10 = vmax.f32 %v808_v60, 0.0  ;;  %v1325_v58 = vsub.f32 1.0, %v1197_v32  ;;  %v613_v56 = vand.u32 2147483647, %v485_v20  ;;  %v1006_v45 = vsub.f32 %v2386_v43, %v3391_v47 }
 0x15e   : > { %v1633_v19 = vpack.c.bf16 %v1521_v7, %v1517_v14  ;;  %v1329_v6 = vsub.f32 1.0, %v1201_v1  ;;  %v617_v48 = vand.u32 2147483647, %v489_v44  ;;  %v1010_v35 = vsub.f32 %v2386_v43, %v3392_v17  ;;  %v3397_v1 = vld [vmem:[#allocation40_spill] sm:$0xff] }
 0x15f   : > { %v1453_v5 = vmax.f32 %v1325_v58, 0.0  ;;  %v741_v2 = vsub.f32 1.0, %v613_v56  ;;  %v1134_v61 = vand.u32 2147483647, %v1006_v45  ;;  %v549_v30 = vsub.f32 %v2378_v39, %v2710_v52  ;;  %v3399_v45 = vld [vmem:[#allocation38_spill] sm:$0xff] }
 0x160   : > { %1755 = vmatpush.bf16.msrb.mxu0 %v1633_v19  ;;  %v1457_v23 = vmax.f32 %v1329_v6, 0.0  ;;  %v745_v29 = vsub.f32 1.0, %v617_v48  ;;  %v1138_v49 = vand.u32 2147483647, %v1010_v35  ;;  %v553_v18 = vsub.f32 %v2378_v39, %v3393_v46  ;;  %v3396_v46 = vld [vmem:[#allocation39_spill] sm:$0xff] }
 0x161   : > { %v1581_v47 = vmul.f32 %v1453_v5, %v932_v33  ;;  %v869_v11 = vmax.f32 %v741_v2, 0.0  ;;  %v1262_v8 = vsub.f32 1.0, %v1134_v61  ;;  %v677_v41 = vand.u32 2147483647, %v549_v30  ;;  %v3400_v5 = vld [vmem:[#allocation43_spill] sm:$0xff] }
 0x162   : > { %v1585_v53 = vmul.f32 %v1457_v23, %v936_v10  ;;  %v873_v55 = vmax.f32 %v745_v29, 0.0  ;;  %v1266_v17 = vsub.f32 1.0, %v1138_v49  ;;  %v681_v27 = vand.u32 2147483647, %v553_v18 }
 0x163   : > { %v1390_v37 = vmax.f32 %v1262_v8, 0.0  ;;  %v805_v21 = vsub.f32 1.0, %v677_v41  ;;  %v1070_v52 = vsub.f32 %v2386_v43, %v3394_v40  ;;  %v1074_v62 = vsub.f32 %v2386_v43, %v3395_v57  ;;  %v3398_v57 = vld [vmem:[#allocation37_spill] sm:$0xff] }
 0x164   : > { %v1665_v36 = vpack.c.bf16 %v1585_v53, %v1581_v47  ;;  %v1394_v24 = vmax.f32 %v1266_v17, 0.0  ;;  %v809_v22 = vsub.f32 1.0, %v681_v27  ;;  %v476_v63 = vsub.f32 %v2376_v38, %v3396_v46  ;;  %v3401_v47 = vld [vmem:[#allocation44_spill] sm:$0xff] }
 0x165   : > { %v1518_v60 = vmul.f32 %v1390_v37, %v869_v11  ;;  %v933_v33 = vmax.f32 %v805_v21, 0.0  ;;  %v1198_v32 = vand.u32 2147483647, %v1070_v52  ;;  %v1202_v20 = vand.u32 2147483647, %v1074_v62  ;;  %v3402_v52 = vld [vmem:[#allocation41_spill] sm:$0xff] }
 0x166   : > { %1769 = vmatpush.bf16.msrb.mxu1 %v1665_v36  ;;  %v1522_v14 = vmul.f32 %v1394_v24, %v873_v55  ;;  %v937_v7 = vmax.f32 %v809_v22, 0.0  ;;  %v480_v44 = vsub.f32 %v2376_v38, %v3397_v1  ;;  %v604_v40 = vand.u32 2147483647, %v476_v63  ;;  %v3403_v63 = vld [vmem:[#allocation42_spill] sm:$0xff] }
 0x167   : > { %v1326_v10 = vsub.f32 1.0, %v1198_v32  ;;  %v1330_v58 = vsub.f32 1.0, %v1202_v20  ;;  %v997_v56 = vsub.f32 %v2384_v42, %v3398_v57  ;;  %v1001_v19 = vsub.f32 %v2384_v42, %v3399_v45 }
 0x168   : > { %v1634_v6 = vpack.c.bf16 %v1522_v14, %v1518_v60  ;;  %v608_v48 = vand.u32 2147483647, %v480_v44  ;;  %v732_v35 = vsub.f32 1.0, %v604_v40  ;;  %v540_v2 = vsub.f32 %v2376_v38, %v3400_v5 }
 0x169   : > { %v1454_v61 = vmax.f32 %v1326_v10, 0.0  ;;  %v1458_v30 = vmax.f32 %v1330_v58, 0.0  ;;  %v1125_v23 = vand.u32 2147483647, %v997_v56  ;;  %v1129_v29 = vand.u32 2147483647, %v1001_v19 }
 0x16a   : > { %1783 = vmatpush.bf16.msrb.mxu2 %v1634_v6  ;;  %v736_v49 = vsub.f32 1.0, %v608_v48  ;;  %v860_v18 = vmax.f32 %v732_v35, 0.0  ;;  %v544_v11 = vsub.f32 %v2376_v38, %v3401_v47  ;;  %v668_v8 = vand.u32 2147483647, %v540_v2 }
 0x16b   : > { %v1582_v41 = vmul.f32 %v1454_v61, %v933_v33  ;;  %v1586_v53 = vmul.f32 %v1458_v30, %v937_v7  ;;  %v1253_v55 = vsub.f32 1.0, %v1125_v23  ;;  %v1257_v17 = vsub.f32 1.0, %v1129_v29 }
 0x16c   : > { %v864_v27 = vmax.f32 %v736_v49, 0.0  ;;  %v672_v37 = vand.u32 2147483647, %v544_v11  ;;  %v796_v21 = vsub.f32 1.0, %v668_v8  ;;  %v1061_v62 = vsub.f32 %v2384_v42, %v3402_v52 }
 0x16d   : > { %v1666_v36 = vpack.c.bf16 %v1586_v53, %v1582_v41  ;;  %v1381_v24 = vmax.f32 %v1253_v55, 0.0  ;;  %v1385_v22 = vmax.f32 %v1257_v17, 0.0  ;;  %v1065_v60 = vsub.f32 %v2384_v42, %v3403_v63 }
 0x16e   : > { %v800_v32 = vsub.f32 1.0, %v672_v37  ;;  %v924_v20 = vmax.f32 %v796_v21, 0.0  ;;  %v1189_v14 = vand.u32 2147483647, %v1061_v62  ;;  %v477_v33 = vsub.f32 %v2378_v39, %v3396_v46 }
 0x16f   : > { %1797 = vmatpush.bf16.msrb.mxu3 %v1666_v36  ;;  %v1509_v7 = vmul.f32 %v1381_v24, %v860_v18  ;;  %v1513_v44 = vmul.f32 %v1385_v22, %v864_v27  ;;  %v1193_v40 = vand.u32 2147483647, %v1065_v60  ;;  %v481_v10 = vsub.f32 %v2378_v39, %v3397_v1 }
 0x170   : > { %v928_v58 = vmax.f32 %v800_v32, 0.0  ;;  %v1317_v56 = vsub.f32 1.0, %v1189_v14  ;;  %v605_v19 = vand.u32 2147483647, %v477_v33  ;;  %v998_v6 = vsub.f32 %v2386_v43, %v3398_v57 }
 0x171   : > { %v1629_v48 = vpack.c.bf16 %v1513_v44, %v1509_v7  ;;  %v1321_v35 = vsub.f32 1.0, %v1193_v40  ;;  %v609_v2 = vand.u32 2147483647, %v481_v10  ;;  %v1002_v61 = vsub.f32 %v2386_v43, %v3399_v45 }
 0x172   : > { %v1445_v46 = vmax.f32 %v1317_v56, 0.0  ;;  %v733_v30 = vsub.f32 1.0, %v605_v19  ;;  %v1126_v23 = vand.u32 2147483647, %v998_v6  ;;  %v541_v29 = vsub.f32 %v2378_v39, %v3400_v5  ;;  %v3406_v19 = vld [vmem:[#allocation46_spill] sm:$0xff] }
 0x173   : > { %1756 = vmatpush.bf16.msrb.mxu0 %v1629_v48  ;;  %v1449_v1 = vmax.f32 %v1321_v35, 0.0  ;;  %v737_v49 = vsub.f32 1.0, %v609_v2  ;;  %v1130_v18 = vand.u32 2147483647, %v1002_v61  ;;  %v545_v11 = vsub.f32 %v2378_v39, %v3401_v47  ;;  %v3404_v47 = vld [vmem:[#allocation47_spill] sm:$0xff] }
 0x174   : > { %v1573_v57 = vmul.f32 %v1445_v46, %v924_v20  ;;  %v861_v8 = vmax.f32 %v733_v30, 0.0  ;;  %v1254_v41 = vsub.f32 1.0, %v1126_v23  ;;  %v669_v53 = vand.u32 2147483647, %v541_v29 }
 0x175   : > { %v1577_v55 = vmul.f32 %v1449_v1, %v928_v58  ;;  %v865_v17 = vmax.f32 %v737_v49, 0.0  ;;  %v1258_v45 = vsub.f32 1.0, %v1130_v18  ;;  %v673_v27 = vand.u32 2147483647, %v545_v11 }
 0x176   : > { %v1382_v37 = vmax.f32 %v1254_v41, 0.0  ;;  %v797_v21 = vsub.f32 1.0, %v669_v53  ;;  %v1062_v5 = vsub.f32 %v2386_v43, %v3402_v52  ;;  %v1066_v62 = vsub.f32 %v2386_v43, %v3403_v63  ;;  %v3405_v63 = vld [vmem:[#allocation45_spill] sm:$0xff] }
 0x177   : > { %v1661_v36 = vpack.c.bf16 %v1577_v55, %v1573_v57  ;;  %v1386_v24 = vmax.f32 %v1258_v45, 0.0  ;;  %v801_v22 = vsub.f32 1.0, %v673_v27  ;;  %v468_v60 = vsub.f32 %v2376_v38, %v3404_v47 }
 0x178   : > { %v1510_v32 = vmul.f32 %v1382_v37, %v861_v8  ;;  %v925_v20 = vmax.f32 %v797_v21, 0.0  ;;  %v1190_v14 = vand.u32 2147483647, %v1062_v5  ;;  %v1194_v33 = vand.u32 2147483647, %v1066_v62 }
 0x179   : > { %1770 = vmatpush.bf16.msrb.mxu1 %v1661_v36  ;;  %v1514_v7 = vmul.f32 %v1386_v24, %v865_v17  ;;  %v929_v44 = vmax.f32 %v801_v22, 0.0  ;;  %v472_v40 = vsub.f32 %v2376_v38, %v2836_v15  ;;  %v596_v52 = vand.u32 2147483647, %v468_v60 }
 0x17a   : > { %v1318_v10 = vsub.f32 1.0, %v1190_v14  ;;  %v1322_v58 = vsub.f32 1.0, %v1194_v33  ;;  %v989_v56 = vsub.f32 %v2384_v42, %v3405_v63  ;;  %v993_v6 = vsub.f32 %v2384_v42, %v3406_v19 }
 0x17b   : > { %v1630_v48 = vpack.c.bf16 %v1514_v7, %v1510_v32  ;;  %v600_v35 = vand.u32 2147483647, %v472_v40  ;;  %v724_v2 = vsub.f32 1.0, %v596_v52  ;;  %v532_v61 = vsub.f32 %v2376_v38, %v2843_v12 }
 0x17c   : > { %v1446_v46 = vmax.f32 %v1318_v10, 0.0  ;;  %v1450_v30 = vmax.f32 %v1322_v58, 0.0  ;;  %v1117_v23 = vand.u32 2147483647, %v989_v56  ;;  %v1121_v29 = vand.u32 2147483647, %v993_v6 }
 0x17d   : > { %1784 = vmatpush.bf16.msrb.mxu2 %v1630_v48  ;;  %v728_v1 = vsub.f32 1.0, %v600_v35  ;;  %v852_v49 = vmax.f32 %v724_v2, 0.0  ;;  %v536_v18 = vsub.f32 %v2376_v38, %v2847_v26  ;;  %v660_v11 = vand.u32 2147483647, %v532_v61 }
 0x17e   : > { %v1574_v57 = vmul.f32 %v1446_v46, %v925_v20  ;;  %v1578_v8 = vmul.f32 %v1450_v30, %v929_v44  ;;  %v1245_v41 = vsub.f32 1.0, %v1117_v23  ;;  %v1249_v53 = vsub.f32 1.0, %v1121_v29 }
 0x17f   : > { %v856_v55 = vmax.f32 %v728_v1, 0.0  ;;  %v664_v17 = vand.u32 2147483647, %v536_v18  ;;  %v788_v45 = vsub.f32 1.0, %v660_v11  ;;  %v1053_v27 = vsub.f32 %v2384_v42, %v2820_v16 }
 0x180   : > { %v1662_v37 = vpack.c.bf16 %v1578_v8, %v1574_v57  ;;  %v1373_v21 = vmax.f32 %v1245_v41, 0.0  ;;  %v1377_v5 = vmax.f32 %v1249_v53, 0.0  ;;  %v1057_v62 = vsub.f32 %v2384_v42, %v2827_v50 }
 0x181   : > { %v792_v36 = vsub.f32 1.0, %v664_v17  ;;  %v916_v24 = vmax.f32 %v788_v45, 0.0  ;;  %v1181_v22 = vand.u32 2147483647, %v1053_v27  ;;  %v469_v60 = vsub.f32 %v2378_v39, %v3404_v47 }
 0x182   : > { %1798 = vmatpush.bf16.msrb.mxu3 %v1662_v37  ;;  %v1501_v32 = vmul.f32 %v1373_v21, %v852_v49  ;;  %v1505_v20 = vmul.f32 %v1377_v5, %v856_v55  ;;  %v1185_v14 = vand.u32 2147483647, %v1057_v62  ;;  %v473_v33 = vsub.f32 %v2378_v39, %v2836_v15 }
 0x183   : > { %v920_v7 = vmax.f32 %v792_v36, 0.0  ;;  %v1309_v44 = vsub.f32 1.0, %v1181_v22  ;;  %v597_v40 = vand.u32 2147483647, %v469_v60  ;;  %v990_v52 = vsub.f32 %v2386_v43, %v3405_v63 }
 0x184   : > { %v1625_v10 = vpack.c.bf16 %v1505_v20, %v1501_v32  ;;  %v1313_v58 = vsub.f32 1.0, %v1185_v14  ;;  %v601_v56 = vand.u32 2147483647, %v473_v33  ;;  %v994_v6 = vsub.f32 %v2386_v43, %v3406_v19 }
 0x185   : > { %v1437_v47 = vmax.f32 %v1309_v44, 0.0  ;;  %v725_v48 = vsub.f32 1.0, %v597_v40  ;;  %v1118_v35 = vand.u32 2147483647, %v990_v52  ;;  %v533_v2 = vsub.f32 %v2378_v39, %v2843_v12 }
 0x186   : > { %1757 = vmatpush.bf16.msrb.mxu0 %v1625_v10  ;;  %v1441_v15 = vmax.f32 %v1313_v58, 0.0  ;;  %v729_v61 = vsub.f32 1.0, %v601_v56  ;;  %v1122_v46 = vand.u32 2147483647, %v994_v6  ;;  %v537_v30 = vsub.f32 %v2378_v39, %v2847_v26 }
 0x187   : > { %v1565_v63 = vmul.f32 %v1437_v47, %v916_v24  ;;  %v853_v23 = vmax.f32 %v725_v48, 0.0  ;;  %v1246_v29 = vsub.f32 1.0, %v1118_v35  ;;  %v661_v1 = vand.u32 2147483647, %v533_v2 }
 0x188   : > { %v1569_v49 = vmul.f32 %v1441_v15, %v920_v7  ;;  %v857_v18 = vmax.f32 %v729_v61, 0.0  ;;  %v1250_v19 = vsub.f32 1.0, %v1122_v46  ;;  %v665_v11 = vand.u32 2147483647, %v537_v30 }
 0x189   : > { %v1374_v57 = vmax.f32 %v1246_v29, 0.0  ;;  %v789_v8 = vsub.f32 1.0, %v661_v1  ;;  %v1054_v12 = vsub.f32 %v2386_v43, %v2820_v16  ;;  %v1058_v41 = vsub.f32 %v2386_v43, %v2827_v50 }
 0x18a   : > { %v1657_v53 = vpack.c.bf16 %v1569_v49, %v1565_v63  ;;  %v1378_v55 = vmax.f32 %v1250_v19, 0.0  ;;  %v793_v17 = vsub.f32 1.0, %v665_v11  ;;  %v460_v26 = vsub.f32 %v2376_v38, %v2876_v13 }
 0x18b   : > { %v1502_v45 = vmul.f32 %v1374_v57, %v853_v23  ;;  %v917_v27 = vmax.f32 %v789_v8, 0.0  ;;  %v1182_v37 = vand.u32 2147483647, %v1054_v12  ;;  %v1186_v21 = vand.u32 2147483647, %v1058_v41 }
 0x18c   : > { %1771 = vmatpush.bf16.msrb.mxu1 %v1657_v53  ;;  %v1506_v5 = vmul.f32 %v1378_v55, %v857_v18  ;;  %v921_v62 = vmax.f32 %v793_v17, 0.0  ;;  %v464_v36 = vsub.f32 %v2376_v38, %v2881_v25  ;;  %v588_v16 = vand.u32 2147483647, %v460_v26 }
 0x18d   : > { %v1310_v24 = vsub.f32 1.0, %v1182_v37  ;;  %v1314_v22 = vsub.f32 1.0, %v1186_v21  ;;  %v981_v50 = vsub.f32 %v2384_v42, %v2866_v9  ;;  %v985_v60 = vsub.f32 %v2384_v42, %v2869_v51 }
 0x18e   : > { %v1626_v32 = vpack.c.bf16 %v1506_v5, %v1502_v45  ;;  %v592_v20 = vand.u32 2147483647, %v464_v36  ;;  %v716_v14 = vsub.f32 1.0, %v588_v16  ;;  %v524_v33 = vsub.f32 %v2376_v38, %v2910_v54 }
 0x18f   : > { %v1438_v7 = vmax.f32 %v1310_v24, 0.0  ;;  %v1442_v44 = vmax.f32 %v1314_v22, 0.0  ;;  %v1109_v40 = vand.u32 2147483647, %v981_v50  ;;  %v1113_v52 = vand.u32 2147483647, %v985_v60 }
 0x190   : > { %1785 = vmatpush.bf16.msrb.mxu2 %v1626_v32  ;;  %v720_v10 = vsub.f32 1.0, %v592_v20  ;;  %v844_v58 = vmax.f32 %v716_v14, 0.0  ;;  %v528_v56 = vsub.f32 %v2376_v38, %v2912_v59  ;;  %v652_v6 = vand.u32 2147483647, %v524_v33 }
 0x191   : > { %v1566_v47 = vmul.f32 %v1438_v7, %v917_v27  ;;  %v1570_v48 = vmul.f32 %v1442_v44, %v921_v62  ;;  %v1237_v35 = vsub.f32 1.0, %v1109_v40  ;;  %v1241_v2 = vsub.f32 1.0, %v1113_v52 }
 0x192   : > { %v848_v15 = vmax.f32 %v720_v10, 0.0  ;;  %v656_v61 = vand.u32 2147483647, %v528_v56  ;;  %v780_v46 = vsub.f32 1.0, %v652_v6  ;;  %v1045_v30 = vsub.f32 %v2384_v42, %v2894_v34 }
 0x193   : > { %v1658_v63 = vpack.c.bf16 %v1570_v48, %v1566_v47  ;;  %v1365_v23 = vmax.f32 %v1237_v35, 0.0  ;;  %v1369_v29 = vmax.f32 %v1241_v2, 0.0  ;;  %v1049_v1 = vsub.f32 %v2384_v42, %v2896_v28 }
 0x194   : > { %v784_v49 = vsub.f32 1.0, %v656_v61  ;;  %v908_v18 = vmax.f32 %v780_v46, 0.0  ;;  %v1173_v38 = vand.u32 2147483647, %v1045_v30  ;;  %v461_v19 = vsub.f32 %v2378_v39, %v2876_v13 }
 0x195   : > { %1799 = vmatpush.bf16.msrb.mxu3 %v1658_v63  ;;  %v1493_v11 = vmul.f32 %v1365_v23, %v844_v58  ;;  %v1497_v57 = vmul.f32 %v1369_v29, %v848_v15  ;;  %v1177_v8 = vand.u32 2147483647, %v1049_v1  ;;  %v465_v12 = vsub.f32 %v2378_v39, %v2881_v25  ;;  %v2013_v61 = vld [vmem:[%s2337_s6 + $0x2] ss:$4 sm:$0xf] }
 0x196   : > { %v912_v41 = vmax.f32 %v784_v49, 0.0  ;;  %v1301_v53 = vsub.f32 1.0, %v1173_v38  ;;  %v589_v55 = vand.u32 2147483647, %v461_v19  ;;  %v982_v17 = vsub.f32 %v2386_v43, %v2866_v9 }
 0x197   : > { %v1621_v42 = vpack.c.bf16 %v1497_v57, %v1493_v11  ;;  %v1305_v26 = vsub.f32 1.0, %v1177_v8  ;;  %v593_v45 = vand.u32 2147483647, %v465_v12  ;;  %v986_v27 = vsub.f32 %v2386_v43, %v2869_v51  ;;  %v1704_v46 = vpop.f32.mrf.mxu0 }
 0x198   : > { %v1429_v13 = vmax.f32 %v1301_v53, 0.0  ;;  %v717_v37 = vsub.f32 1.0, %v589_v55  ;;  %v1110_v21 = vand.u32 2147483647, %v982_v17  ;;  %v525_v5 = vsub.f32 %v2378_v39, %v2910_v54  ;;  %v1718_v63 = vpop.f32.mrf.mxu1 }
 0x199   : > { %1758 = vmatpush.bf16.msrb.mxu0 %v1621_v42  ;;  %v1433_v25 = vmax.f32 %v1305_v26, 0.0  ;;  %v721_v62 = vsub.f32 1.0, %v593_v45  ;;  %v1114_v36 = vand.u32 2147483647, %v986_v27  ;;  %v529_v16 = vsub.f32 %v2378_v39, %v2912_v59 }
 0x19a   : > { %v1557_v9 = vmul.f32 %v1429_v13, %v908_v18  ;;  %v845_v24 = vmax.f32 %v717_v37, 0.0  ;;  %v1238_v22 = vsub.f32 1.0, %v1110_v21  ;;  %v653_v50 = vand.u32 2147483647, %v525_v5 }
 0x19b   : > { %v1561_v60 = vmul.f32 %v1433_v25, %v912_v41  ;;  %v849_v32 = vmax.f32 %v721_v62, 0.0  ;;  %v1242_v51 = vsub.f32 1.0, %v1114_v36  ;;  %v657_v20 = vand.u32 2147483647, %v529_v16 }
 0x19c   : > { %v1366_v14 = vmax.f32 %v1238_v22, 0.0  ;;  %v781_v33 = vsub.f32 1.0, %v653_v50  ;;  %v1046_v54 = vsub.f32 %v2386_v43, %v2894_v34  ;;  %v1050_v7 = vsub.f32 %v2386_v43, %v2896_v28  ;;  %1759 = vmatmul.bf16.vlgmr.msrb.gmra.mxu0 %v2958_v3  ;;  %v1732_v49 = vpop.f32.mrf.mxu2 }
 0x19d   : > { %v1653_v44 = vpack.c.bf16 %v1561_v60, %v1557_v9  ;;  %v1370_v39 = vmax.f32 %v1242_v51, 0.0  ;;  %v785_v59 = vsub.f32 1.0, %v657_v20  ;;  %v190_v30 = vadd.f32 1.0, %v2013_v61 }
 0x19e   : > { %v1494_v40 = vmul.f32 %v1366_v14, %v845_v24  ;;  %v1174_v52 = vand.u32 2147483647, %v1046_v54  ;;  %v1178_v10 = vand.u32 2147483647, %v1050_v7  ;;  %v909_v56 = vmax.f32 %v781_v33, 0.0  ;;  %v1746_v18 = vpop.f32.mrf.mxu3 }
 0x19f   : > { %1772 = vmatpush.bf16.msrb.mxu1 %v1653_v44  ;;  %v1498_v58 = vmul.f32 %v1370_v39, %v849_v32  ;;  %v913_v6 = vmax.f32 %v785_v59, 0.0  ;;  %v191_v23 = vmul.f32 3.5, %v190_v30  ;;  %v1706_v1 = vpop.f32.mrf.mxu0  ;;  %v1747_v62 = vadd.f32 %v1746_v18, %v1732_v49 }
 0x1a0   : > { %v1302_v47 = vsub.f32 1.0, %v1174_v52  ;;  %v1306_v48 = vsub.f32 1.0, %v1178_v10  ;;  %v1720_v19 = vpop.f32.mrf.mxu1  ;;  %v1719_v20 = vadd.f32 %v1718_v63, %v1704_v46 }
 0x1a1   : > { %v1622_v35 = vpack.c.bf16 %v1498_v58, %v1494_v40  ;;  %v1809_v29 = vperm.slane %v191_v23, 1  ;;  %v1810_v57 = vperm.slane %v191_v23, 2  ;;  %v1808_v8 = vperm.slane %v191_v23, 0 }
 0x1a2   : > { %v1430_v34 = vmax.f32 %v1302_v47, 0.0  ;;  %v1434_v2 = vmax.f32 %v1306_v48, 0.0  ;;  %1773 = vmatmul.bf16.vlgmr.msrb.gmra.mxu1 %v2961_v31  ;;  %v1811_v32 = vperm.slane %v191_v23, 3  ;;  %v1721_v40 = vadd.f32 %v1720_v19, %v1706_v1 }
 0x1a3   : > { %1786 = vmatpush.bf16.msrb.mxu2 %v1622_v35  ;;  %v1817_v38 = vsub.f32 %v1809_v29, %v2796_v0  ;;  %v1821_v11 = vsub.f32 %v1809_v29, %v2798_v4  ;;  %v1818_v53 = vsub.f32 %v1810_v57, %v2796_v0  ;;  %v1816_v55 = vsub.f32 %v1808_v8, %v2796_v0 }
 0x1a4   : > { %v1558_v43 = vmul.f32 %v1430_v34, %v909_v56  ;;  %v1562_v28 = vmul.f32 %v1434_v2, %v913_v6  ;;  %v1820_v17 = vsub.f32 %v1808_v8, %v2798_v4  ;;  %v1734_v5 = vpop.f32.mrf.mxu2  ;;  %v1819_v58 = vsub.f32 %v1811_v32, %v2796_v0 }
 0x1a5   : > { %v1825_v12 = vand.u32 2147483647, %v1817_v38  ;;  %v1826_v13 = vand.u32 2147483647, %v1818_v53  ;;  %v1824_v37 = vand.u32 2147483647, %v1816_v55  ;;  %v1823_v56 = vsub.f32 %v1811_v32, %v2798_v4 }
 0x1a6   : > { %v1654_v15 = vpack.c.bf16 %v1562_v28, %v1558_v43  ;;  %1787 = vmatmul.bf16.vlgmr.msrb.gmra.mxu2 %v2958_v3  ;;  %v1822_v3 = vsub.f32 %v1810_v57, %v2798_v4  ;;  %v1828_v21 = vand.u32 2147483647, %v1820_v17  ;;  %v1748_v25 = vpop.f32.mrf.mxu3  ;;  %v1827_v43 = vand.u32 2147483647, %v1819_v58 }
 0x1a7   : > { %v1833_v26 = vsub.f32 1.0, %v1825_v12  ;;  %v1749_v9 = vadd.f32 %v1748_v25, %v1734_v5  ;;  %v1834_v22 = vsub.f32 1.0, %v1826_v13  ;;  %v1832_v50 = vsub.f32 1.0, %v1824_v37 }
 0x1a8   : > { %1800 = vmatpush.bf16.msrb.mxu3 %v1654_v15  ;;  %v1830_v42 = vand.u32 2147483647, %v1822_v3  ;;  %v1836_v60 = vsub.f32 1.0, %v1828_v21  ;;  %v1831_v15 = vand.u32 2147483647, %v1823_v56  ;;  %v1835_v63 = vsub.f32 1.0, %v1827_v43 }
 0x1a9   : > { %v1841_v16 = vmax.f32 %v1833_v26, 0.0  ;;  %v1842_v44 = vmax.f32 %v1834_v22, 0.0  ;;  %v1840_v59 = vmax.f32 %v1832_v50, 0.0  ;;  %v3407_v32 = vlaneseq }
 0x1aa   : > { %v1838_v36 = vsub.f32 1.0, %v1830_v42  ;;  %v1844_v52 = vmax.f32 %v1836_v60, 0.0  ;;  %v1839_v29 = vsub.f32 1.0, %v1831_v15  ;;  %v1843_v4 = vmax.f32 %v1835_v63, 0.0 }
 0x1ab   : > { %1801 = vmatmul.bf16.vlgmr.msrb.gmra.mxu3 %v2961_v31  ;;  %v1829_v31 = vand.u32 2147483647, %v1821_v11  ;;  %v1849_v33 = vmul.f32 %v1841_v16, %v1747_v62  ;;  %v1848_v34 = vmul.f32 %v1840_v59, %v1719_v20  ;;  %vm1900_vm3 = vcmp.lt.s32.totalorder %v3407_v32, 512 }
 0x1ac   : > { %v1846_v14 = vmax.f32 %v1838_v36, 0.0  ;;  %v1852_v2 = vmul.f32 %v1844_v52, %v1721_v40  ;;  %v1847_v19 = vmax.f32 %v1839_v29, 0.0 }
 0x1ad   : > { %v1837_v45 = vsub.f32 1.0, %v1829_v31 }
 0x1ae   : > { %v1856_v30 = vadd.f32 %v1852_v2, %v1848_v34 }
 0x1af   : > { %v1845_v24 = vmax.f32 %v1837_v45, 0.0 }
 0x1b0   : > { %v1857_v49 = vrot.slane %v1856_v30, 4 }
 0x1b1   : > { %v1853_v54 = vmul.f32 %v1845_v24, %v1749_v9 }
 0x1b2   : > { %v1858_v3 = vadd.f32 %v1857_v49, %v1856_v30 }
 0x1b3   : > { %v1863_v48 = vadd.f32 %v1853_v54, %v1849_v33 }
 0x1b4   : > { %v1859_v17 = vrot.slane %v1858_v3, 2 }
 0x1b5   : > { %v1864_v46 = vrot.slane %v1863_v48, 4 }
 0x1b6   : > { %v1860_v13 = vadd.f32 %v1859_v17, %v1858_v3 }
 0x1b7   : > { %v1865_v1 = vadd.f32 %v1864_v46, %v1863_v48 }
 0x1b8   : > { %v1861_v62 = vrot.slane %v1860_v13, 1 }
 0x1b9   : > { %v1866_v57 = vrot.slane %v1865_v1, 2 }
 0x1ba   : > { %v1862_v22 = vadd.f32 %v1861_v62, %v1860_v13 }
 0x1bb   : > { %v1867_v53 = vadd.f32 %v1866_v57, %v1865_v1 }
 0x1bd   : > { %v1868_v45 = vrot.slane %v1867_v53, 1 }
 0x1bf   : > { %v1869_v5 = vadd.f32 %v1868_v45, %v1867_v53 }
 0x1c1   : > { %v1888_v9 = vrot.slane %v1869_v5, 7 }
 0x219   : > { %v1760_v41 = vpop.f32.mrf.mxu0 }
 0x21f   : > { %v1774_v27 = vpop.f32.mrf.mxu1 }
 0x220   : > { %v1775_v7 = vadd.f32 %v1774_v27, %v1760_v41 }
 0x221   : > { %v1762_v51 = vpop.f32.mrf.mxu0 }
 0x222   : > { %v1850_v35 = vmul.f32 %v1842_v44, %v1775_v7 }
 0x227   : > { %v1776_v39 = vpop.f32.mrf.mxu1 }
 0x228   : > { %v1777_v10 = vadd.f32 %v1776_v39, %v1762_v51  ;;  %v1892_v51 = vsel %vm1891_vm0, %v1862_v22, %v1888_v9 }
 0x229   : > { %v1788_v6 = vpop.f32.mrf.mxu2 }
 0x22a   : > { %v1854_v47 = vmul.f32 %v1846_v14, %v1777_v10 }
 0x22c   : > { %v1870_v28 = vadd.f32 %v1854_v47, %v1850_v35 }
 0x22e   : > { %v1802_v61 = vpop.f32.mrf.mxu3  ;;  %v1871_v23 = vrot.slane %v1870_v28, 4 }
 0x22f   : > { %v1803_v18 = vadd.f32 %v1802_v61, %v1788_v6 }
 0x230   : > { %v1872_v38 = vadd.f32 %v1871_v23, %v1870_v28 }
 0x231   : > { %v1790_v0 = vpop.f32.mrf.mxu2  ;;  %v1851_v12 = vmul.f32 %v1843_v4, %v1803_v18 }
 0x232   : > { %v1873_v31 = vrot.slane %v1872_v38, 2 }
 0x234   : > { %v1874_v42 = vadd.f32 %v1873_v31, %v1872_v38 }
 0x236   : > { %v1804_v11 = vpop.f32.mrf.mxu3  ;;  %v1875_v37 = vrot.slane %v1874_v42, 1 }
 0x237   : > { %v1805_v8 = vadd.f32 %v1804_v11, %v1790_v0 }
 0x238   : > { %v1876_v36 = vadd.f32 %v1875_v37, %v1874_v42 }
 0x239   : > { %v1855_v41 = vmul.f32 %v1847_v19, %v1805_v8 }
 0x23a   : > { %v1889_v50 = vrot.slane %v1876_v36, 6 }
 0x23b   : > { %v1877_v55 = vadd.f32 %v1855_v41, %v1851_v12 }
 0x23d   : > { %v1878_v26 = vrot.slane %v1877_v55, 4 }
 0x23f   : > { %v1879_v27 = vadd.f32 %v1878_v26, %v1877_v55 }
 0x241   : > { %v1880_v21 = vrot.slane %v1879_v27, 2 }
 0x243   : > { %v1881_v25 = vadd.f32 %v1880_v21, %v1879_v27 }
 0x245   : > { %v1882_v16 = vrot.slane %v1881_v25, 1 }
 0x247   : > { %v1883_v24 = vadd.f32 %v1882_v16, %v1881_v25 }
 0x249   : > { %v1890_v60 = vrot.slane %v1883_v24, 5 }
 0x24b   : > { %v1894_v20 = vsel %vm1893_vm1, %v1889_v50, %v1890_v60 }
 0x24c   : > { %v1896_v14 = vsel %vm1895_vm2, %v1892_v51, %v1894_v20 }
 0x24d   : > { %1902 = vst.msk [vmem:[%s178_s14] sm:$0xf] %vm1900_vm3, %v1896_v14 }
 0x24e   : > { %2175 = shalt.err (!%p2172_p9)
}
 0x24f   : > { %2035 = dma.vmem_to_hbm [thread:$0]  (%p2298_p13), %s1917_s15, 64, %s1919_s18, %s1904_s16  }
 0x250 PF: > { %s1930_s29 = sand.u32 1, %s2206_s9   ;;  %p3408_p10 = scmp.ge.s32.totalorder %s2218_s12, 2 }
 0x251   : > { %s1931_s4 = scalar_lea.sflag [#allocation4], %s1930_s29 }
 0x252   : > { %p2046_p11 = pnand %p3408_p10, %p2303_p4 }
 0x254   : > { %p2047_p0 = pneg %p2046_p11 }
 0x256   : > { %2201 = dma.done.wait (%p2047_p0), %s1931_s4, 64  }
 0x257   : > { %2203 = vsyncadd (%p2047_p0), %s1931_s4, 4294967232  ;;  %p16_p2 = scmp.ge.s32.totalorder %s2278_s23, 4   ;;  %s3409_s9 = smov %s2210_s10 }
 0x258   : > { %s3410_s10 = smov %s2214_s11  ;;  %s3411_s11 = smov %s2290_s26 }
 0x259   : > { %s3412_s12 = smov %s2278_s23  ;;  %18 = sbr.rel (!%p16_p2) target bundleno = 6 (0x6), region = 80 }
 0x25e   :  { %1937 = vsyncpa [#allocation3], 1 }
 0x25f   :  { %1939 = vsyncpa [#allocation3 + $0x1], 1 }
 0x260   :  { %1940 = vsyncpa [#allocation6], 1 }
 0x261   :  { %1942 = vsyncpa [#allocation6 + $0x1], 1 }
 0x262   :  { %1943 = vsyncpa [#allocation4], 1 }
 0x263   :  { %1945 = vsyncpa [#allocation4 + $0x1], 1 }

</bundles_post_ra>
